<compile_context>
chip_gen: v5e
topology: v5e:2x2
jax: 0.10.0
libtpu: 0.0.40
codegen_flags: <defaults>
</compile_context>

<pallas_src>
import jax
import jax.numpy as jnp
from jax import lax
from jax.experimental import pallas as pl
from jax.experimental.pallas import tpu as pltpu

_LANES = 128
_MAX_TILE_ROWS = 2048      # ~1 MiB f32 per block
_ACC_ROWS = 64             # 8 vregs of f32 accumulator
FM_WEIGHT = 10.0


# ---------------------------------------------------------------------------
# Layout helpers (wrapper side)
# ---------------------------------------------------------------------------
def _sublane_multiple(dtype):
    # minimum second-minor tile multiple per dtype width (f32:8, bf16:16, int8:32)
    return {4: 8, 2: 16, 1: 32}.get(jnp.dtype(dtype).itemsize, 8)


def _ceil_to(x, m):
    return -(-x // m) * m


def _cdiv(a, b):
    return -(-a // b)


def _vmem_capacity_bytes():
    """Physical VMEM of the current generation; conservative fallback = v7x."""
    try:
        info = pltpu.get_tpu_info()
        cap = getattr(info, "vmem_capacity_bytes", None)
        if cap:
            return int(cap)
    except Exception:
        pass
    return 64 << 20


def _flatten_to_slab(x, rows):
    """Reshape x to a (rows, 128) lane-dense slab in its native dtype.
    Zero padding (an HBM copy) only happens when x.size != rows*128."""
    flat = jnp.ravel(x)
    total = rows * _LANES
    if total != flat.shape[0]:
        flat = jnp.pad(flat, (0, total - flat.shape[0]))
    return flat.reshape(rows, _LANES)


def _held_index_map(start, ntiles):
    """Advances only while this tensor's segment of the 1-D tile grid is
    active; otherwise holds (same block index => no re-fetch)."""
    def index_map(i):
        return (jnp.clip(i - start, 0, ntiles - 1), 0)
    return index_map


# ---------------------------------------------------------------------------
# Fused kernel
# ---------------------------------------------------------------------------
def _make_fused_kernel(seg_meta):
    """seg_meta[k] = dict(start, ntiles, rows, tile_rows, is_pair).
    Segment 0 is the plain sum(r_hat); the rest are sum(|a-b|)."""

    def kernel(*args):
        in_refs = args[:-2]
        o_ref = args[-2]          # (out_rows, 128) resident f32 output
        acc_ref = args[-1]        # (64, 128) f32 VMEM scratch accumulator
        i = pl.program_id(0)

        @pl.when(i == 0)
        def _():
            o_ref[...] = jnp.zeros_like(o_ref)

        ref_pos = 0
        for seg_id, m in enumerate(seg_meta):
            start, ntiles = m["start"], m["ntiles"]
            rows, tile_rows = m["rows"], m["tile_rows"]
            is_pair = m["is_pair"]
            a_ref = in_refs[ref_pos]
            b_ref = in_refs[ref_pos + 1] if is_pair else None
            ref_pos += 2 if is_pair else 1

            local = i - start
            active = jnp.logical_and(i >= start, i < start + ntiles)
            ragged = (ntiles * tile_rows != rows)   # last tile overhangs the slab

            @pl.when(active)
            def _(seg_id=seg_id, a_ref=a_ref, b_ref=b_ref, local=local,
                  ntiles=ntiles, rows=rows, tile_rows=tile_rows, ragged=ragged):
                # fresh accumulator at this segment's first tile
                @pl.when(local == 0)
                def _():
                    acc_ref[...] = jnp.zeros_like(acc_ref)

                a = a_ref[...].astype(jnp.float32)
                if b_ref is None:                       # plain sum (r_hat)
                    vals = a
                else:                                   # L1 feature matching (f32 sub)
                    vals = jnp.abs(a - b_ref[...].astype(jnp.float32))

                def accum(v):
                    # fold (tile_rows,128) into a wide 8-vreg accumulator (bulk)
                    # plus a small remainder; breaks the VALU dependency chain.
                    bulk = (tile_rows // _ACC_ROWS) * _ACC_ROWS
                    if bulk:
                        acc_ref[0:_ACC_ROWS, :] += (
                            v[0:bulk].reshape(-1, _ACC_ROWS, _LANES).sum(axis=0))
                    rem = tile_rows - bulk
                    if rem:
                        acc_ref[0:rem, :] += v[bulk:tile_rows]

                if ragged:
                    is_last = local == ntiles - 1

                    @pl.when(jnp.logical_not(is_last))
                    def _():
                        accum(vals)                     # fast unmasked path

                    @pl.when(is_last)
                    def _():
                        # mask stale VMEM rows past the slab's end (clipped DMA)
                        valid = rows - (ntiles - 1) * tile_rows
                        row_id = lax.broadcasted_iota(jnp.int32, vals.shape, 0)
                        accum(jnp.where(row_id < valid, vals, 0.0))
                else:
                    accum(vals)

                # segment epilogue: one cross-lane reduce into row seg_id
                @pl.when(local == ntiles - 1)
                def _():
                    total = jnp.sum(acc_ref[...])
                    out_row = lax.broadcasted_iota(jnp.int32, o_ref.shape, 0)
                    o_ref[...] += jnp.where(out_row == seg_id, total, 0.0)

    return kernel


# ---------------------------------------------------------------------------
# Public wrapper
# ---------------------------------------------------------------------------
def loss_adv(r_hat, D_res_list, D_hat_res_list, FM_weight=FM_WEIGHT):
    """Pallas implementation of LossAdv.forward."""
    if len(D_res_list) != len(D_hat_res_list):
        raise ValueError("D_res_list and D_hat_res_list must have the same length")

    num_inputs = 1 + 2 * len(D_res_list)
    num_segments = 1 + len(D_res_list)
    out_rows = _ceil_to(num_segments, 8)

    # Generation-aware VMEM budget: every input is double-buffered at its tile
    # size even while held, so cost scales with TOTAL tensor count.
    capacity = _vmem_capacity_bytes()
    fixed_bytes = (2 * out_rows * _LANES * 4            # double-buffered output
                   + _ACC_ROWS * _LANES * 4)            # accumulator scratch
    headroom = 2 << 20
    budget = int(capacity * 0.6)
    per_input_budget = max((budget - fixed_bytes - headroom) // (2 * num_inputs),
                           8 * _LANES * 4)

    slabs, in_specs, seg_meta, seg_counts = [], [], [], []
    used_tile_bytes = 0
    start = 0

    def add_segment(tensors):
        nonlocal start, used_tile_bytes
        n = int(tensors[0].size)
        for t in tensors:
            if int(t.size) != n:
                raise ValueError("paired feature maps must have equal element counts")
        sub = max(_sublane_multiple(t.dtype) for t in tensors)
        itemsize = max(jnp.dtype(t.dtype).itemsize for t in tensors)
        rows = _ceil_to(_cdiv(n, _LANES), sub)

        # VMEM-budgeted tile cap, then balanced ragged tiling.
        cap_rows = min(_MAX_TILE_ROWS, per_input_budget // (_LANES * itemsize))
        cap_rows = max((cap_rows // sub) * sub, sub)
        ntiles = _cdiv(rows, cap_rows)
        tile_rows = min(_ceil_to(_cdiv(rows, ntiles), sub), rows)

        for t in tensors:
            slabs.append(_flatten_to_slab(t, rows))
            in_specs.append(
                pl.BlockSpec((tile_rows, _LANES), _held_index_map(start, ntiles)))
            used_tile_bytes += 2 * tile_rows * _LANES * jnp.dtype(t.dtype).itemsize

        seg_meta.append(dict(start=start, ntiles=ntiles, rows=rows,
                             tile_rows=tile_rows, is_pair=(len(tensors) == 2)))
        seg_counts.append(n)
        start += ntiles

    add_segment((r_hat,))                              # segment 0: sum(r_hat)
    for res, res_hat in zip(D_res_list, D_hat_res_list):
        add_segment((res, res_hat))                    # segment p: sum(|a-b|)

    total_tiles = start
    vmem_limit = min(int(capacity * 0.9),
                     max(used_tile_bytes + fixed_bytes + headroom, 16 << 20))

    out = pl.pallas_call(
        _make_fused_kernel(seg_meta),
        out_shape=jax.ShapeDtypeStruct((out_rows, _LANES), jnp.float32),
        grid=(total_tiles,),
        in_specs=in_specs,
        out_specs=pl.BlockSpec((out_rows, _LANES), lambda i: (0, 0)),
        scratch_shapes=[pltpu.VMEM((_ACC_ROWS, _LANES), jnp.float32)],
        compiler_params=pltpu.CompilerParams(
            dimension_semantics=("arbitrary",),
            vmem_limit_bytes=int(vmem_limit)),
    )(*slabs)

    seg_sums = out[:num_segments, 0]
    inv_n = jnp.asarray([1.0 / c for c in seg_counts], dtype=jnp.float32)
    means = seg_sums * inv_n
    return -means[0] + jnp.float32(FM_weight) * jnp.sum(means[1:])


# ---------------------------------------------------------------------------
# Reference (plain JAX) for sanity checking
# ---------------------------------------------------------------------------
def loss_adv_ref(r_hat, D_res_list, D_hat_res_list, FM_weight=FM_WEIGHT):
    loss_fm = jnp.float32(0.0)
    for res, res_hat in zip(D_res_list, D_hat_res_list):
        loss_fm = loss_fm + jnp.mean(jnp.abs(res.astype(jnp.float32)
                                             - res_hat.astype(jnp.float32)))
    return -jnp.mean(r_hat.astype(jnp.float32)) + loss_fm * jnp.float32(FM_weight)


if __name__ == "__main__":
    key = jax.random.PRNGKey(0)
    k_r, *ks = jax.random.split(key, 9)

    # Discriminator patch scores for the generated image (NCHW).
    r_hat = jax.random.normal(k_r, (2, 1, 16, 16), dtype=jnp.float32)

    # Multi-scale discriminator feature maps, real vs. generated (NCHW).
    # Shapes chosen to exercise every code path:
    #   (2,257,32,16) f32  -> 2056 rows: multi-tile, balanced + ragged last tile
    #   (2,8,8,8)     f32  -> perfectly aligned, no padding at all
    #   (2,16,4,4)    bf16 -> bf16 streaming path (16-sublane rows)
    #   (2,3,7,9)     f32  -> lane padding path
    feat_shapes = [(2, 257, 32, 16), (2, 8, 8, 8), (2, 16, 4, 4), (2, 3, 7, 9)]
    feat_dtypes = [jnp.float32, jnp.float32, jnp.bfloat16, jnp.float32]
    D_res_list = [jax.random.normal(ks[i], s, dtype=dt)
                  for i, (s, dt) in enumerate(zip(feat_shapes, feat_dtypes))]
    D_hat_res_list = [jax.random.normal(ks[4 + i], s, dtype=dt)
                      for i, (s, dt) in enumerate(zip(feat_shapes, feat_dtypes))]

    out = loss_adv(r_hat, D_res_list, D_hat_res_list)
    out = jax.block_until_ready(out)

    ref = loss_adv_ref(r_hat, D_res_list, D_hat_res_list)
    assert jnp.allclose(out, ref, rtol=1e-3, atol=1e-3), (out, ref)

    print("KERNEL_OK")
</pallas_src>

<mosaic_0001>
module attributes {stable_mosaic.version = 11 : i64} {
  func.func @kernel(%arg0: i32, %arg1: memref<8x128xf32, #tpu.memory_space<vmem>>, %arg2: memref<1032x128xf32, #tpu.memory_space<vmem>>, %arg3: memref<1032x128xf32, #tpu.memory_space<vmem>>, %arg4: memref<8x128xf32, #tpu.memory_space<vmem>>, %arg5: memref<8x128xf32, #tpu.memory_space<vmem>>, %arg6: memref<16x128xbf16, #tpu.memory_space<vmem>>, %arg7: memref<16x128xbf16, #tpu.memory_space<vmem>>, %arg8: memref<8x128xf32, #tpu.memory_space<vmem>>, %arg9: memref<8x128xf32, #tpu.memory_space<vmem>>, %arg10: memref<8x128xf32, #tpu.memory_space<vmem>>, %arg11: memref<64x128xf32, #tpu.memory_space<vmem>>) attributes {dimension_semantics = [#tpu.dimension_semantics<arbitrary>], iteration_bounds = array<i64: 6>, scalar_prefetch = 0 : i64, scratch_operands = 1 : i64, tpu.core_type = #tpu.core_type<tc>, window_params = [{transform_indices = @transform_0, window_bounds = array<i64: 8, 128>}, {transform_indices = @transform_1, window_bounds = array<i64: 1032, 128>}, {transform_indices = @transform_2, window_bounds = array<i64: 1032, 128>}, {transform_indices = @transform_3, window_bounds = array<i64: 8, 128>}, {transform_indices = @transform_4, window_bounds = array<i64: 8, 128>}, {transform_indices = @transform_5, window_bounds = array<i64: 16, 128>}, {transform_indices = @transform_6, window_bounds = array<i64: 16, 128>}, {transform_indices = @transform_7, window_bounds = array<i64: 8, 128>}, {transform_indices = @transform_8, window_bounds = array<i64: 8, 128>}, {pipeline_mode = #tpu.pipeline_mode<synchronous>, transform_indices = @transform_9, window_bounds = array<i64: 8, 128>}]} {
    %c0_i32 = arith.constant 0 : i32
    %0 = arith.cmpi eq, %arg0, %c0_i32 : i32
    %1 = arith.extui %0 : i1 to i32
    %c0_i32_0 = arith.constant 0 : i32
    %2 = arith.cmpi ne, %1, %c0_i32_0 : i32
    scf.if %2 {
      %cst = arith.constant 0.000000e+00 : f32
      %33 = vector.broadcast %cst : f32 to vector<8x128xf32>
      %c0 = arith.constant 0 : index
      %c0_16 = arith.constant 0 : index
      %34 = vector.load %arg10[%c0, %c0_16] : memref<8x128xf32, #tpu.memory_space<vmem>>, vector<8x128xf32>
      tpu.vector_store %arg10[%c0, %c0_16], %33 {strides = array<i32>} : memref<8x128xf32, #tpu.memory_space<vmem>>, vector<8x128xf32>,
    } else {
    }
    %c0_i32_1 = arith.constant 0 : i32
    %3 = arith.subi %arg0, %c0_i32_1 : i32
    %c0_i32_2 = arith.constant 0 : i32
    %4 = arith.cmpi sge, %arg0, %c0_i32_2 : i32
    %c1_i32 = arith.constant 1 : i32
    %5 = arith.cmpi slt, %arg0, %c1_i32 : i32
    %6 = arith.andi %4, %5 : i1
    %7 = arith.extui %6 : i1 to i32
    %c0_i32_3 = arith.constant 0 : i32
    %8 = arith.cmpi ne, %7, %c0_i32_3 : i32
    scf.if %8 {
      %c0_i32_16 = arith.constant 0 : i32
      %33 = arith.cmpi eq, %3, %c0_i32_16 : i32
      %34 = arith.extui %33 : i1 to i32
      %c0_i32_17 = arith.constant 0 : i32
      %35 = arith.cmpi ne, %34, %c0_i32_17 : i32
      scf.if %35 {
        %cst = arith.constant 0.000000e+00 : f32
        %43 = vector.broadcast %cst : f32 to vector<64x128xf32>
        %c0_25 = arith.constant 0 : index
        %c0_26 = arith.constant 0 : index
        %44 = vector.load %arg11[%c0_25, %c0_26] : memref<64x128xf32, #tpu.memory_space<vmem>>, vector<64x128xf32>
        tpu.vector_store %arg11[%c0_25, %c0_26], %43 {strides = array<i32>} : memref<64x128xf32, #tpu.memory_space<vmem>>, vector<64x128xf32>,
      } else {
      }
      %c0 = arith.constant 0 : index
      %c0_18 = arith.constant 0 : index
      %36 = vector.load %arg1[%c0, %c0_18] : memref<8x128xf32, #tpu.memory_space<vmem>>, vector<8x128xf32>
      %c0_19 = arith.constant 0 : index
      %c0_20 = arith.constant 0 : index
      %37 = vector.load %arg11[%c0_19, %c0_20] : memref<64x128xf32, #tpu.memory_space<vmem>>, vector<8x128xf32>
      %38 = arith.addf %37, %36 : vector<8x128xf32>
      %c0_21 = arith.constant 0 : index
      %c0_22 = arith.constant 0 : index
      %39 = vector.load %arg11[%c0_21, %c0_22] : memref<64x128xf32, #tpu.memory_space<vmem>>, vector<8x128xf32>
      tpu.vector_store %arg11[%c0_21, %c0_22], %38 {strides = array<i32>} : memref<64x128xf32, #tpu.memory_space<vmem>>, vector<8x128xf32>,
      %c0_i32_23 = arith.constant 0 : i32
      %40 = arith.cmpi eq, %3, %c0_i32_23 : i32
      %41 = arith.extui %40 : i1 to i32
      %c0_i32_24 = arith.constant 0 : i32
      %42 = arith.cmpi ne, %41, %c0_i32_24 : i32
      scf.if %42 {
        %c0_25 = arith.constant 0 : index
        %c0_26 = arith.constant 0 : index
        %43 = vector.load %arg11[%c0_25, %c0_26] : memref<64x128xf32, #tpu.memory_space<vmem>>, vector<64x128xf32>
        %44 = vector.shape_cast %43 : vector<64x128xf32> to vector<1x64x128xf32>
        %cst = arith.constant dense<0.000000e+00> : vector<1xf32>
        %45 = vector.multi_reduction <add>, %44, %cst [1, 2] : vector<1x64x128xf32> to vector<1xf32>
        %46 = vector.shape_cast %45 : vector<1xf32> to vector<1x1x1xf32>
        %47 = vector.extract %46[0, 0, 0] : f32 from vector<1x1x1xf32>
        %48 = tpu.iota {dimensions = array<i32: 0>} : vector<8x128xi32>
        %c0_27 = arith.constant 0 : index
        %c0_28 = arith.constant 0 : index
        %49 = vector.load %arg10[%c0_27, %c0_28] : memref<8x128xf32, #tpu.memory_space<vmem>>, vector<8x128xf32>
        %c0_i32_29 = arith.constant 0 : i32
        %50 = vector.broadcast %c0_i32_29 : i32 to vector<8x128xi32>
        %51 = arith.cmpi eq, %48, %50 : vector<8x128xi32>
        %cst_30 = arith.constant 0.000000e+00 : f32
        %52 = vector.broadcast %47 : f32 to vector<8x128xf32>
        %53 = vector.broadcast %cst_30 : f32 to vector<8x128xf32>
        %54 = arith.select %51, %52, %53 : vector<8x128xi1>, vector<8x128xf32>
        %55 = arith.addf %49, %54 : vector<8x128xf32>
        %c0_31 = arith.constant 0 : index
        %c0_32 = arith.constant 0 : index
        %56 = vector.load %arg10[%c0_31, %c0_32] : memref<8x128xf32, #tpu.memory_space<vmem>>, vector<8x128xf32>
        tpu.vector_store %arg10[%c0_31, %c0_32], %55 {strides = array<i32>} : memref<8x128xf32, #tpu.memory_space<vmem>>, vector<8x128xf32>,
      } else {
      }
    } else {
    }
    %c1_i32_4 = arith.constant 1 : i32
    %9 = arith.subi %arg0, %c1_i32_4 : i32
    %c1_i32_5 = arith.constant 1 : i32
    %10 = arith.cmpi sge, %arg0, %c1_i32_5 : i32
    %c3_i32 = arith.constant 3 : i32
    %11 = arith.cmpi slt, %arg0, %c3_i32 : i32
    %12 = arith.andi %10, %11 : i1
    %13 = arith.extui %12 : i1 to i32
    %c0_i32_6 = arith.constant 0 : i32
    %14 = arith.cmpi ne, %13, %c0_i32_6 : i32
    scf.if %14 {
      %c0_i32_16 = arith.constant 0 : i32
      %33 = arith.cmpi eq, %9, %c0_i32_16 : i32
      %34 = arith.extui %33 : i1 to i32
      %c0_i32_17 = arith.constant 0 : i32
      %35 = arith.cmpi ne, %34, %c0_i32_17 : i32
      scf.if %35 {
        %cst = arith.constant 0.000000e+00 : f32
        %49 = vector.broadcast %cst : f32 to vector<64x128xf32>
        %c0_26 = arith.constant 0 : index
        %c0_27 = arith.constant 0 : index
        %50 = vector.load %arg11[%c0_26, %c0_27] : memref<64x128xf32, #tpu.memory_space<vmem>>, vector<64x128xf32>
        tpu.vector_store %arg11[%c0_26, %c0_27], %49 {strides = array<i32>} : memref<64x128xf32, #tpu.memory_space<vmem>>, vector<64x128xf32>,
      } else {
      }
      %c0 = arith.constant 0 : index
      %c0_18 = arith.constant 0 : index
      %36 = vector.load %arg2[%c0, %c0_18] : memref<1032x128xf32, #tpu.memory_space<vmem>>, vector<1032x128xf32>
      %c0_19 = arith.constant 0 : index
      %c0_20 = arith.constant 0 : index
      %37 = vector.load %arg3[%c0_19, %c0_20] : memref<1032x128xf32, #tpu.memory_space<vmem>>, vector<1032x128xf32>
      %38 = arith.subf %36, %37 : vector<1032x128xf32>
      %39 = math.absf %38 : vector<1032x128xf32>
      %c1_i32_21 = arith.constant 1 : i32
      %40 = arith.cmpi eq, %9, %c1_i32_21 : i32
      %true = arith.constant true
      %41 = arith.xori %40, %true : i1
      %42 = arith.extui %41 : i1 to i32
      %c0_i32_22 = arith.constant 0 : i32
      %43 = arith.cmpi ne, %42, %c0_i32_22 : i32
      scf.if %43 {
        %c0_26 = arith.constant 0 : index
        %c0_27 = arith.constant 0 : index
        %49 = vector.load %arg11[%c0_26, %c0_27] : memref<64x128xf32, #tpu.memory_space<vmem>>, vector<64x128xf32>
        %50 = vector.extract_strided_slice %39 {offsets = [0, 0], sizes = [1024, 128], strides = [1, 1]} : vector<1032x128xf32> to vector<1024x128xf32>
        %51 = vector.shape_cast %50 : vector<1024x128xf32> to vector<16x64x128xf32>
        %cst = arith.constant dense<0.000000e+00> : vector<64x128xf32>
        %52 = vector.multi_reduction <add>, %51, %cst [0] : vector<16x64x128xf32> to vector<64x128xf32>
        %53 = arith.addf %49, %52 : vector<64x128xf32>
        %c0_28 = arith.constant 0 : index
        %c0_29 = arith.constant 0 : index
        %54 = vector.load %arg11[%c0_28, %c0_29] : memref<64x128xf32, #tpu.memory_space<vmem>>, vector<64x128xf32>
        tpu.vector_store %arg11[%c0_28, %c0_29], %53 {strides = array<i32>} : memref<64x128xf32, #tpu.memory_space<vmem>>, vector<64x128xf32>,
        %c0_30 = arith.constant 0 : index
        %c0_31 = arith.constant 0 : index
        %55 = vector.load %arg11[%c0_30, %c0_31] : memref<64x128xf32, #tpu.memory_space<vmem>>, vector<8x128xf32>
        %56 = vector.extract_strided_slice %39 {offsets = [1024, 0], sizes = [8, 128], strides = [1, 1]} : vector<1032x128xf32> to vector<8x128xf32>
        %57 = arith.addf %55, %56 : vector<8x128xf32>
        %c0_32 = arith.constant 0 : index
        %c0_33 = arith.constant 0 : index
        %58 = vector.load %arg11[%c0_32, %c0_33] : memref<64x128xf32, #tpu.memory_space<vmem>>, vector<8x128xf32>
        tpu.vector_store %arg11[%c0_32, %c0_33], %57 {strides = array<i32>} : memref<64x128xf32, #tpu.memory_space<vmem>>, vector<8x128xf32>,
      } else {
      }
      %44 = arith.extui %40 : i1 to i32
      %c0_i32_23 = arith.constant 0 : i32
      %45 = arith.cmpi ne, %44, %c0_i32_23 : i32
      scf.if %45 {
        %49 = tpu.iota {dimensions = array<i32: 0>} : vector<1032x128xi32>
        %c1024_i32 = arith.constant 1024 : i32
        %50 = vector.broadcast %c1024_i32 : i32 to vector<1032x128xi32>
        %51 = arith.cmpi slt, %49, %50 : vector<1032x128xi32>
        %cst = arith.constant 0.000000e+00 : f32
        %52 = vector.broadcast %cst : f32 to vector<1032x128xf32>
        %53 = arith.select %51, %39, %52 : vector<1032x128xi1>, vector<1032x128xf32>
        %c0_26 = arith.constant 0 : index
        %c0_27 = arith.constant 0 : index
        %54 = vector.load %arg11[%c0_26, %c0_27] : memref<64x128xf32, #tpu.memory_space<vmem>>, vector<64x128xf32>
        %55 = vector.extract_strided_slice %53 {offsets = [0, 0], sizes = [1024, 128], strides = [1, 1]} : vector<1032x128xf32> to vector<1024x128xf32>
        %56 = vector.shape_cast %55 : vector<1024x128xf32> to vector<16x64x128xf32>
        %cst_28 = arith.constant dense<0.000000e+00> : vector<64x128xf32>
        %57 = vector.multi_reduction <add>, %56, %cst_28 [0] : vector<16x64x128xf32> to vector<64x128xf32>
        %58 = arith.addf %54, %57 : vector<64x128xf32>
        %c0_29 = arith.constant 0 : index
        %c0_30 = arith.constant 0 : index
        %59 = vector.load %arg11[%c0_29, %c0_30] : memref<64x128xf32, #tpu.memory_space<vmem>>, vector<64x128xf32>
        tpu.vector_store %arg11[%c0_29, %c0_30], %58 {strides = array<i32>} : memref<64x128xf32, #tpu.memory_space<vmem>>, vector<64x128xf32>,
        %c0_31 = arith.constant 0 : index
        %c0_32 = arith.constant 0 : index
        %60 = vector.load %arg11[%c0_31, %c0_32] : memref<64x128xf32, #tpu.memory_space<vmem>>, vector<8x128xf32>
        %61 = vector.extract_strided_slice %53 {offsets = [1024, 0], sizes = [8, 128], strides = [1, 1]} : vector<1032x128xf32> to vector<8x128xf32>
        %62 = arith.addf %60, %61 : vector<8x128xf32>
        %c0_33 = arith.constant 0 : index
        %c0_34 = arith.constant 0 : index
        %63 = vector.load %arg11[%c0_33, %c0_34] : memref<64x128xf32, #tpu.memory_space<vmem>>, vector<8x128xf32>
        tpu.vector_store %arg11[%c0_33, %c0_34], %62 {strides = array<i32>} : memref<64x128xf32, #tpu.memory_space<vmem>>, vector<8x128xf32>,
      } else {
      }
      %c1_i32_24 = arith.constant 1 : i32
      %46 = arith.cmpi eq, %9, %c1_i32_24 : i32
      %47 = arith.extui %46 : i1 to i32
      %c0_i32_25 = arith.constant 0 : i32
      %48 = arith.cmpi ne, %47, %c0_i32_25 : i32
      scf.if %48 {
        %c0_26 = arith.constant 0 : index
        %c0_27 = arith.constant 0 : index
        %49 = vector.load %arg11[%c0_26, %c0_27] : memref<64x128xf32, #tpu.memory_space<vmem>>, vector<64x128xf32>
        %50 = vector.shape_cast %49 : vector<64x128xf32> to vector<1x64x128xf32>
        %cst = arith.constant dense<0.000000e+00> : vector<1xf32>
        %51 = vector.multi_reduction <add>, %50, %cst [1, 2] : vector<1x64x128xf32> to vector<1xf32>
        %52 = vector.shape_cast %51 : vector<1xf32> to vector<1x1x1xf32>
        %53 = vector.extract %52[0, 0, 0] : f32 from vector<1x1x1xf32>
        %54 = tpu.iota {dimensions = array<i32: 0>} : vector<8x128xi32>
        %c0_28 = arith.constant 0 : index
        %c0_29 = arith.constant 0 : index
        %55 = vector.load %arg10[%c0_28, %c0_29] : memref<8x128xf32, #tpu.memory_space<vmem>>, vector<8x128xf32>
        %c1_i32_30 = arith.constant 1 : i32
        %56 = vector.broadcast %c1_i32_30 : i32 to vector<8x128xi32>
        %57 = arith.cmpi eq, %54, %56 : vector<8x128xi32>
        %cst_31 = arith.constant 0.000000e+00 : f32
        %58 = vector.broadcast %53 : f32 to vector<8x128xf32>
        %59 = vector.broadcast %cst_31 : f32 to vector<8x128xf32>
        %60 = arith.select %57, %58, %59 : vector<8x128xi1>, vector<8x128xf32>
        %61 = arith.addf %55, %60 : vector<8x128xf32>
        %c0_32 = arith.constant 0 : index
        %c0_33 = arith.constant 0 : index
        %62 = vector.load %arg10[%c0_32, %c0_33] : memref<8x128xf32, #tpu.memory_space<vmem>>, vector<8x128xf32>
        tpu.vector_store %arg10[%c0_32, %c0_33], %61 {strides = array<i32>} : memref<8x128xf32, #tpu.memory_space<vmem>>, vector<8x128xf32>,
      } else {
      }
    } else {
    }
    %c3_i32_7 = arith.constant 3 : i32
    %15 = arith.subi %arg0, %c3_i32_7 : i32
    %c3_i32_8 = arith.constant 3 : i32
    %16 = arith.cmpi sge, %arg0, %c3_i32_8 : i32
    %c4_i32 = arith.constant 4 : i32
    %17 = arith.cmpi slt, %arg0, %c4_i32 : i32
    %18 = arith.andi %16, %17 : i1
    %19 = arith.extui %18 : i1 to i32
    %c0_i32_9 = arith.constant 0 : i32
    %20 = arith.cmpi ne, %19, %c0_i32_9 : i32
    scf.if %20 {
      %c0_i32_16 = arith.constant 0 : i32
      %33 = arith.cmpi eq, %15, %c0_i32_16 : i32
      %34 = arith.extui %33 : i1 to i32
      %c0_i32_17 = arith.constant 0 : i32
      %35 = arith.cmpi ne, %34, %c0_i32_17 : i32
      scf.if %35 {
        %cst = arith.constant 0.000000e+00 : f32
        %46 = vector.broadcast %cst : f32 to vector<64x128xf32>
        %c0_27 = arith.constant 0 : index
        %c0_28 = arith.constant 0 : index
        %47 = vector.load %arg11[%c0_27, %c0_28] : memref<64x128xf32, #tpu.memory_space<vmem>>, vector<64x128xf32>
        tpu.vector_store %arg11[%c0_27, %c0_28], %46 {strides = array<i32>} : memref<64x128xf32, #tpu.memory_space<vmem>>, vector<64x128xf32>,
      } else {
      }
      %c0 = arith.constant 0 : index
      %c0_18 = arith.constant 0 : index
      %36 = vector.load %arg4[%c0, %c0_18] : memref<8x128xf32, #tpu.memory_space<vmem>>, vector<8x128xf32>
      %c0_19 = arith.constant 0 : index
      %c0_20 = arith.constant 0 : index
      %37 = vector.load %arg5[%c0_19, %c0_20] : memref<8x128xf32, #tpu.memory_space<vmem>>, vector<8x128xf32>
      %38 = arith.subf %36, %37 : vector<8x128xf32>
      %39 = math.absf %38 : vector<8x128xf32>
      %c0_21 = arith.constant 0 : index
      %c0_22 = arith.constant 0 : index
      %40 = vector.load %arg11[%c0_21, %c0_22] : memref<64x128xf32, #tpu.memory_space<vmem>>, vector<8x128xf32>
      %41 = arith.addf %40, %39 : vector<8x128xf32>
      %c0_23 = arith.constant 0 : index
      %c0_24 = arith.constant 0 : index
      %42 = vector.load %arg11[%c0_23, %c0_24] : memref<64x128xf32, #tpu.memory_space<vmem>>, vector<8x128xf32>
      tpu.vector_store %arg11[%c0_23, %c0_24], %41 {strides = array<i32>} : memref<64x128xf32, #tpu.memory_space<vmem>>, vector<8x128xf32>,
      %c0_i32_25 = arith.constant 0 : i32
      %43 = arith.cmpi eq, %15, %c0_i32_25 : i32
      %44 = arith.extui %43 : i1 to i32
      %c0_i32_26 = arith.constant 0 : i32
      %45 = arith.cmpi ne, %44, %c0_i32_26 : i32
      scf.if %45 {
        %c0_27 = arith.constant 0 : index
        %c0_28 = arith.constant 0 : index
        %46 = vector.load %arg11[%c0_27, %c0_28] : memref<64x128xf32, #tpu.memory_space<vmem>>, vector<64x128xf32>
        %47 = vector.shape_cast %46 : vector<64x128xf32> to vector<1x64x128xf32>
        %cst = arith.constant dense<0.000000e+00> : vector<1xf32>
        %48 = vector.multi_reduction <add>, %47, %cst [1, 2] : vector<1x64x128xf32> to vector<1xf32>
        %49 = vector.shape_cast %48 : vector<1xf32> to vector<1x1x1xf32>
        %50 = vector.extract %49[0, 0, 0] : f32 from vector<1x1x1xf32>
        %51 = tpu.iota {dimensions = array<i32: 0>} : vector<8x128xi32>
        %c0_29 = arith.constant 0 : index
        %c0_30 = arith.constant 0 : index
        %52 = vector.load %arg10[%c0_29, %c0_30] : memref<8x128xf32, #tpu.memory_space<vmem>>, vector<8x128xf32>
        %c2_i32 = arith.constant 2 : i32
        %53 = vector.broadcast %c2_i32 : i32 to vector<8x128xi32>
        %54 = arith.cmpi eq, %51, %53 : vector<8x128xi32>
        %cst_31 = arith.constant 0.000000e+00 : f32
        %55 = vector.broadcast %50 : f32 to vector<8x128xf32>
        %56 = vector.broadcast %cst_31 : f32 to vector<8x128xf32>
        %57 = arith.select %54, %55, %56 : vector<8x128xi1>, vector<8x128xf32>
        %58 = arith.addf %52, %57 : vector<8x128xf32>
        %c0_32 = arith.constant 0 : index
        %c0_33 = arith.constant 0 : index
        %59 = vector.load %arg10[%c0_32, %c0_33] : memref<8x128xf32, #tpu.memory_space<vmem>>, vector<8x128xf32>
        tpu.vector_store %arg10[%c0_32, %c0_33], %58 {strides = array<i32>} : memref<8x128xf32, #tpu.memory_space<vmem>>, vector<8x128xf32>,
      } else {
      }
    } else {
    }
    %c4_i32_10 = arith.constant 4 : i32
    %21 = arith.subi %arg0, %c4_i32_10 : i32
    %c4_i32_11 = arith.constant 4 : i32
    %22 = arith.cmpi sge, %arg0, %c4_i32_11 : i32
    %c5_i32 = arith.constant 5 : i32
    %23 = arith.cmpi slt, %arg0, %c5_i32 : i32
    %24 = arith.andi %22, %23 : i1
    %25 = arith.extui %24 : i1 to i32
    %c0_i32_12 = arith.constant 0 : i32
    %26 = arith.cmpi ne, %25, %c0_i32_12 : i32
    scf.if %26 {
      %c0_i32_16 = arith.constant 0 : i32
      %33 = arith.cmpi eq, %21, %c0_i32_16 : i32
      %34 = arith.extui %33 : i1 to i32
      %c0_i32_17 = arith.constant 0 : i32
      %35 = arith.cmpi ne, %34, %c0_i32_17 : i32
      scf.if %35 {
        %cst = arith.constant 0.000000e+00 : f32
        %48 = vector.broadcast %cst : f32 to vector<64x128xf32>
        %c0_27 = arith.constant 0 : index
        %c0_28 = arith.constant 0 : index
        %49 = vector.load %arg11[%c0_27, %c0_28] : memref<64x128xf32, #tpu.memory_space<vmem>>, vector<64x128xf32>
        tpu.vector_store %arg11[%c0_27, %c0_28], %48 {strides = array<i32>} : memref<64x128xf32, #tpu.memory_space<vmem>>, vector<64x128xf32>,
      } else {
      }
      %c0 = arith.constant 0 : index
      %c0_18 = arith.constant 0 : index
      %36 = vector.load %arg6[%c0, %c0_18] : memref<16x128xbf16, #tpu.memory_space<vmem>>, vector<16x128xbf16>
      %37 = arith.extf %36 : vector<16x128xbf16> to vector<16x128xf32>
      %c0_19 = arith.constant 0 : index
      %c0_20 = arith.constant 0 : index
      %38 = vector.load %arg7[%c0_19, %c0_20] : memref<16x128xbf16, #tpu.memory_space<vmem>>, vector<16x128xbf16>
      %39 = arith.extf %38 : vector<16x128xbf16> to vector<16x128xf32>
      %40 = arith.subf %37, %39 : vector<16x128xf32>
      %41 = math.absf %40 : vector<16x128xf32>
      %c0_21 = arith.constant 0 : index
      %c0_22 = arith.constant 0 : index
      %42 = vector.load %arg11[%c0_21, %c0_22] : memref<64x128xf32, #tpu.memory_space<vmem>>, vector<16x128xf32>
      %43 = arith.addf %42, %41 : vector<16x128xf32>
      %c0_23 = arith.constant 0 : index
      %c0_24 = arith.constant 0 : index
      %44 = vector.load %arg11[%c0_23, %c0_24] : memref<64x128xf32, #tpu.memory_space<vmem>>, vector<16x128xf32>
      tpu.vector_store %arg11[%c0_23, %c0_24], %43 {strides = array<i32>} : memref<64x128xf32, #tpu.memory_space<vmem>>, vector<16x128xf32>,
      %c0_i32_25 = arith.constant 0 : i32
      %45 = arith.cmpi eq, %21, %c0_i32_25 : i32
      %46 = arith.extui %45 : i1 to i32
      %c0_i32_26 = arith.constant 0 : i32
      %47 = arith.cmpi ne, %46, %c0_i32_26 : i32
      scf.if %47 {
        %c0_27 = arith.constant 0 : index
        %c0_28 = arith.constant 0 : index
        %48 = vector.load %arg11[%c0_27, %c0_28] : memref<64x128xf32, #tpu.memory_space<vmem>>, vector<64x128xf32>
        %49 = vector.shape_cast %48 : vector<64x128xf32> to vector<1x64x128xf32>
        %cst = arith.constant dense<0.000000e+00> : vector<1xf32>
        %50 = vector.multi_reduction <add>, %49, %cst [1, 2] : vector<1x64x128xf32> to vector<1xf32>
        %51 = vector.shape_cast %50 : vector<1xf32> to vector<1x1x1xf32>
        %52 = vector.extract %51[0, 0, 0] : f32 from vector<1x1x1xf32>
        %53 = tpu.iota {dimensions = array<i32: 0>} : vector<8x128xi32>
        %c0_29 = arith.constant 0 : index
        %c0_30 = arith.constant 0 : index
        %54 = vector.load %arg10[%c0_29, %c0_30] : memref<8x128xf32, #tpu.memory_space<vmem>>, vector<8x128xf32>
        %c3_i32_31 = arith.constant 3 : i32
        %55 = vector.broadcast %c3_i32_31 : i32 to vector<8x128xi32>
        %56 = arith.cmpi eq, %53, %55 : vector<8x128xi32>
        %cst_32 = arith.constant 0.000000e+00 : f32
        %57 = vector.broadcast %52 : f32 to vector<8x128xf32>
        %58 = vector.broadcast %cst_32 : f32 to vector<8x128xf32>
        %59 = arith.select %56, %57, %58 : vector<8x128xi1>, vector<8x128xf32>
        %60 = arith.addf %54, %59 : vector<8x128xf32>
        %c0_33 = arith.constant 0 : index
        %c0_34 = arith.constant 0 : index
        %61 = vector.load %arg10[%c0_33, %c0_34] : memref<8x128xf32, #tpu.memory_space<vmem>>, vector<8x128xf32>
        tpu.vector_store %arg10[%c0_33, %c0_34], %60 {strides = array<i32>} : memref<8x128xf32, #tpu.memory_space<vmem>>, vector<8x128xf32>,
      } else {
      }
    } else {
    }
    %c5_i32_13 = arith.constant 5 : i32
    %27 = arith.subi %arg0, %c5_i32_13 : i32
    %c5_i32_14 = arith.constant 5 : i32
    %28 = arith.cmpi sge, %arg0, %c5_i32_14 : i32
    %c6_i32 = arith.constant 6 : i32
    %29 = arith.cmpi slt, %arg0, %c6_i32 : i32
    %30 = arith.andi %28, %29 : i1
    %31 = arith.extui %30 : i1 to i32
    %c0_i32_15 = arith.constant 0 : i32
    %32 = arith.cmpi ne, %31, %c0_i32_15 : i32
    scf.if %32 {
      %c0_i32_16 = arith.constant 0 : i32
      %33 = arith.cmpi eq, %27, %c0_i32_16 : i32
      %34 = arith.extui %33 : i1 to i32
      %c0_i32_17 = arith.constant 0 : i32
      %35 = arith.cmpi ne, %34, %c0_i32_17 : i32
      scf.if %35 {
        %cst = arith.constant 0.000000e+00 : f32
        %46 = vector.broadcast %cst : f32 to vector<64x128xf32>
        %c0_27 = arith.constant 0 : index
        %c0_28 = arith.constant 0 : index
        %47 = vector.load %arg11[%c0_27, %c0_28] : memref<64x128xf32, #tpu.memory_space<vmem>>, vector<64x128xf32>
        tpu.vector_store %arg11[%c0_27, %c0_28], %46 {strides = array<i32>} : memref<64x128xf32, #tpu.memory_space<vmem>>, vector<64x128xf32>,
      } else {
      }
      %c0 = arith.constant 0 : index
      %c0_18 = arith.constant 0 : index
      %36 = vector.load %arg8[%c0, %c0_18] : memref<8x128xf32, #tpu.memory_space<vmem>>, vector<8x128xf32>
      %c0_19 = arith.constant 0 : index
      %c0_20 = arith.constant 0 : index
      %37 = vector.load %arg9[%c0_19, %c0_20] : memref<8x128xf32, #tpu.memory_space<vmem>>, vector<8x128xf32>
      %38 = arith.subf %36, %37 : vector<8x128xf32>
      %39 = math.absf %38 : vector<8x128xf32>
      %c0_21 = arith.constant 0 : index
      %c0_22 = arith.constant 0 : index
      %40 = vector.load %arg11[%c0_21, %c0_22] : memref<64x128xf32, #tpu.memory_space<vmem>>, vector<8x128xf32>
      %41 = arith.addf %40, %39 : vector<8x128xf32>
      %c0_23 = arith.constant 0 : index
      %c0_24 = arith.constant 0 : index
      %42 = vector.load %arg11[%c0_23, %c0_24] : memref<64x128xf32, #tpu.memory_space<vmem>>, vector<8x128xf32>
      tpu.vector_store %arg11[%c0_23, %c0_24], %41 {strides = array<i32>} : memref<64x128xf32, #tpu.memory_space<vmem>>, vector<8x128xf32>,
      %c0_i32_25 = arith.constant 0 : i32
      %43 = arith.cmpi eq, %27, %c0_i32_25 : i32
      %44 = arith.extui %43 : i1 to i32
      %c0_i32_26 = arith.constant 0 : i32
      %45 = arith.cmpi ne, %44, %c0_i32_26 : i32
      scf.if %45 {
        %c0_27 = arith.constant 0 : index
        %c0_28 = arith.constant 0 : index
        %46 = vector.load %arg11[%c0_27, %c0_28] : memref<64x128xf32, #tpu.memory_space<vmem>>, vector<64x128xf32>
        %47 = vector.shape_cast %46 : vector<64x128xf32> to vector<1x64x128xf32>
        %cst = arith.constant dense<0.000000e+00> : vector<1xf32>
        %48 = vector.multi_reduction <add>, %47, %cst [1, 2] : vector<1x64x128xf32> to vector<1xf32>
        %49 = vector.shape_cast %48 : vector<1xf32> to vector<1x1x1xf32>
        %50 = vector.extract %49[0, 0, 0] : f32 from vector<1x1x1xf32>
        %51 = tpu.iota {dimensions = array<i32: 0>} : vector<8x128xi32>
        %c0_29 = arith.constant 0 : index
        %c0_30 = arith.constant 0 : index
        %52 = vector.load %arg10[%c0_29, %c0_30] : memref<8x128xf32, #tpu.memory_space<vmem>>, vector<8x128xf32>
        %c4_i32_31 = arith.constant 4 : i32
        %53 = vector.broadcast %c4_i32_31 : i32 to vector<8x128xi32>
        %54 = arith.cmpi eq, %51, %53 : vector<8x128xi32>
        %cst_32 = arith.constant 0.000000e+00 : f32
        %55 = vector.broadcast %50 : f32 to vector<8x128xf32>
        %56 = vector.broadcast %cst_32 : f32 to vector<8x128xf32>
        %57 = arith.select %54, %55, %56 : vector<8x128xi1>, vector<8x128xf32>
        %58 = arith.addf %52, %57 : vector<8x128xf32>
        %c0_33 = arith.constant 0 : index
        %c0_34 = arith.constant 0 : index
        %59 = vector.load %arg10[%c0_33, %c0_34] : memref<8x128xf32, #tpu.memory_space<vmem>>, vector<8x128xf32>
        tpu.vector_store %arg10[%c0_33, %c0_34], %58 {strides = array<i32>} : memref<8x128xf32, #tpu.memory_space<vmem>>, vector<8x128xf32>,
      } else {
      }
    } else {
    }
    return
  }
  func.func @transform_0(%arg0: i32) -> (i32, i32) {
    %c0_i32 = arith.constant 0 : i32
    %0 = arith.subi %arg0, %c0_i32 : i32
    %c0_i32_0 = arith.constant 0 : i32
    %c0_i32_1 = arith.constant 0 : i32
    %1 = arith.maxsi %c0_i32_0, %0 : i32
    %2 = arith.minsi %c0_i32_1, %1 : i32
    %c0_i32_2 = arith.constant 0 : i32
    %c0_i32_3 = arith.constant 0 : i32
    return %2, %c0_i32_2 : i32, i32
  }
  func.func @transform_1(%arg0: i32) -> (i32, i32) {
    %c1_i32 = arith.constant 1 : i32
    %0 = arith.subi %arg0, %c1_i32 : i32
    %c0_i32 = arith.constant 0 : i32
    %c1_i32_0 = arith.constant 1 : i32
    %1 = arith.maxsi %c0_i32, %0 : i32
    %2 = arith.minsi %c1_i32_0, %1 : i32
    %c0_i32_1 = arith.constant 0 : i32
    %c0_i32_2 = arith.constant 0 : i32
    return %2, %c0_i32_1 : i32, i32
  }
  func.func @transform_2(%arg0: i32) -> (i32, i32) {
    %c1_i32 = arith.constant 1 : i32
    %0 = arith.subi %arg0, %c1_i32 : i32
    %c0_i32 = arith.constant 0 : i32
    %c1_i32_0 = arith.constant 1 : i32
    %1 = arith.maxsi %c0_i32, %0 : i32
    %2 = arith.minsi %c1_i32_0, %1 : i32
    %c0_i32_1 = arith.constant 0 : i32
    %c0_i32_2 = arith.constant 0 : i32
    return %2, %c0_i32_1 : i32, i32
  }
  func.func @transform_3(%arg0: i32) -> (i32, i32) {
    %c3_i32 = arith.constant 3 : i32
    %0 = arith.subi %arg0, %c3_i32 : i32
    %c0_i32 = arith.constant 0 : i32
    %c0_i32_0 = arith.constant 0 : i32
    %1 = arith.maxsi %c0_i32, %0 : i32
    %2 = arith.minsi %c0_i32_0, %1 : i32
    %c0_i32_1 = arith.constant 0 : i32
    %c0_i32_2 = arith.constant 0 : i32
    return %2, %c0_i32_1 : i32, i32
  }
  func.func @transform_4(%arg0: i32) -> (i32, i32) {
    %c3_i32 = arith.constant 3 : i32
    %0 = arith.subi %arg0, %c3_i32 : i32
    %c0_i32 = arith.constant 0 : i32
    %c0_i32_0 = arith.constant 0 : i32
    %1 = arith.maxsi %c0_i32, %0 : i32
    %2 = arith.minsi %c0_i32_0, %1 : i32
    %c0_i32_1 = arith.constant 0 : i32
    %c0_i32_2 = arith.constant 0 : i32
    return %2, %c0_i32_1 : i32, i32
  }
  func.func @transform_5(%arg0: i32) -> (i32, i32) {
    %c4_i32 = arith.constant 4 : i32
    %0 = arith.subi %arg0, %c4_i32 : i32
    %c0_i32 = arith.constant 0 : i32
    %c0_i32_0 = arith.constant 0 : i32
    %1 = arith.maxsi %c0_i32, %0 : i32
    %2 = arith.minsi %c0_i32_0, %1 : i32
    %c0_i32_1 = arith.constant 0 : i32
    %c0_i32_2 = arith.constant 0 : i32
    return %2, %c0_i32_1 : i32, i32
  }
  func.func @transform_6(%arg0: i32) -> (i32, i32) {
    %c4_i32 = arith.constant 4 : i32
    %0 = arith.subi %arg0, %c4_i32 : i32
    %c0_i32 = arith.constant 0 : i32
    %c0_i32_0 = arith.constant 0 : i32
    %1 = arith.maxsi %c0_i32, %0 : i32
    %2 = arith.minsi %c0_i32_0, %1 : i32
    %c0_i32_1 = arith.constant 0 : i32
    %c0_i32_2 = arith.constant 0 : i32
    return %2, %c0_i32_1 : i32, i32
  }
  func.func @transform_7(%arg0: i32) -> (i32, i32) {
    %c5_i32 = arith.constant 5 : i32
    %0 = arith.subi %arg0, %c5_i32 : i32
    %c0_i32 = arith.constant 0 : i32
    %c0_i32_0 = arith.constant 0 : i32
    %1 = arith.maxsi %c0_i32, %0 : i32
    %2 = arith.minsi %c0_i32_0, %1 : i32
    %c0_i32_1 = arith.constant 0 : i32
    %c0_i32_2 = arith.constant 0 : i32
    return %2, %c0_i32_1 : i32, i32
  }
  func.func @transform_8(%arg0: i32) -> (i32, i32) {
    %c5_i32 = arith.constant 5 : i32
    %0 = arith.subi %arg0, %c5_i32 : i32
    %c0_i32 = arith.constant 0 : i32
    %c0_i32_0 = arith.constant 0 : i32
    %1 = arith.maxsi %c0_i32, %0 : i32
    %2 = arith.minsi %c0_i32_0, %1 : i32
    %c0_i32_1 = arith.constant 0 : i32
    %c0_i32_2 = arith.constant 0 : i32
    return %2, %c0_i32_1 : i32, i32
  }
  func.func @transform_9(%arg0: i32) -> (i32, i32) {
    %c0_i32 = arith.constant 0 : i32
    %c0_i32_0 = arith.constant 0 : i32
    %c0_i32_1 = arith.constant 0 : i32
    return %c0_i32, %c0_i32_0 : i32, i32
  }
}

</mosaic_0001>

<bundles_post_ra>
// kernel: tpu_custom_call.1
= control target key start
LH: loop header
LB: loop body
LE: loop exit
PB: predicated region body
PF: predicated region fallthrough
CT: control target
= control target key end

     0   :  { %s5498_s0 = inlined_call_operand.hbm [shape: f32[8,128], index: 0, kind: input, shape index: {}]   ;;  %s5499_s1 = inlined_call_operand.hbm [shape: f32[2056,128], index: 1, kind: input, shape index: {}]   ;;  %s5500_s2 = inlined_call_operand.hbm [shape: f32[2056,128], index: 2, kind: input, shape index: {}]   ;;  %s5501_s3 = inlined_call_operand.hbm [shape: f32[8,128], index: 3, kind: input, shape index: {}]   ;;  %s5502_s4 = inlined_call_operand.hbm [shape: f32[8,128], index: 4, kind: input, shape index: {}]   ;;  %s5503_s5 = inlined_call_operand.hbm [shape: bf16[16,128], index: 5, kind: input, shape index: {}]   ;;  %s5504_s6 = inlined_call_operand.hbm [shape: bf16[16,128], index: 6, kind: input, shape index: {}]   ;;  %s5505_s7 = inlined_call_operand.hbm [shape: f32[8,128], index: 7, kind: input, shape index: {}]   ;;  %s5506_s8 = inlined_call_operand.hbm [shape: f32[8,128], index: 8, kind: input, shape index: {}]   ;;  %s5507_s9 = inlined_call_operand.hbm [shape: f32[8,128], index: 9, kind: output, shape index: {}]  }
   0x1   :  { %5672 = sst [smem:[#allocation176_spill]] %s5498_s0 }
   0x2   :  { %5673 = sst [smem:[#allocation177_spill]] %s5507_s9 }
   0x3   :  { %14 = vsyncpa [#allocation4], 0 }
   0x4   :  { %16 = vsyncpa [#allocation4 + $0x1], 0 }
   0x5   :  { %17 = vsyncpa [#allocation7], 0 }
   0x6   :  { %19 = vsyncpa [#allocation7 + $0x1], 0 }
   0x7   :  { %20 = vsyncpa [#allocation10], 0 }
   0x8   :  { %22 = vsyncpa [#allocation10 + $0x1], 0 }
   0x9   :  { %23 = vsyncpa [#allocation13], 0 }
   0xa   :  { %25 = vsyncpa [#allocation13 + $0x1], 0 }
   0xb   :  { %26 = vsyncpa [#allocation16], 0 }
   0xc   :  { %28 = vsyncpa [#allocation16 + $0x1], 0 }
   0xd   :  { %29 = vsyncpa [#allocation5], 0  ;;  %s3348_s30 = smov 0   ;;  %s3350_s10 = smov 0  }
   0xe   :  { %s3352_s11 = smov 0   ;;  %s3354_s12 = smov 0  }
   0xf LB: > { %s3367_s13 = sadd.s32 4294967295, %s3274_s12   ;;  %s3370_s14 = sadd.s32 1, %s3274_s12   ;;  %s3274_s12 = sphi %s3354_s12, %s6412_s12   ;;  %s3270_s11 = sphi %s3352_s11, %s6416_s11   ;;  %s3266_s10 = sphi %s3350_s10, %s6415_s10   ;;  %s3262_s30 = sphi %s3348_s30, %s6414_s30  }
  0x10   : > { %5674 = sst [smem:[#allocation25_spill]] %s3370_s14  ;;  %p58_p0 = scmp.eq.s32.totalorder %s3274_s12, 0 }
  0x11   : > { %p74_p1 = scmp.gt.s32.totalorder %s3367_s13, 0  ;;  %p5510_p2 = scmp.lt.s32.totalorder %s3367_s13, 1 }
  0x12   : > { %p5511_p3 = scmp.eq.s32.totalorder %s3367_s13, 0  ;;  %s2610_s15 = sadd.s32 4294967295, %s3370_s14 }
  0x13   : > { %s75_s16 = scalar_select %p74_p1, %s3367_s13, 0 }
  0x14   : > { %p79_p4 = scmp.gt.s32.totalorder %s2610_s15, 0  ;;  %p2611_p5 = scmp.lt.s32.totalorder %s2610_s15, 1 }
  0x15   : > { %s6418_s16 = smov (!%p5510_p2, %s75_s16), 1  ;;  %p93_p6 = scmp.ne.s32.totalorder %s3270_s11, %s3266_s10 }
  0x16   : > { %s6420_s15 = smov (!%p79_p4, %s2610_s15), 0  ;;  %p99_p7 = scmp.ne.s32.totalorder %s3266_s10, %s3262_s30 }
  0x17   : > { %s6422_s15 = smov (!%p2611_p5, %s6420_s15), 1  ;;  %p3387_p8 = por %p93_p6, %p58_p0 }
  0x18   : > { %p3393_p9 = por %p99_p7, %p5511_p3  ;;  %s83_s19 = ssub.s32 %s6418_s16, %s6422_s15 }
  0x19   : > { %s86_s20 = sadd.s32 1, %s3270_s11  ;;  %p84_p10 = scmp.eq.s32.totalorder %s83_s19, 0 }
  0x1a   : > { %p2701_p11 = scmp.ge.s32.totalorder %s3274_s12, 6 }
  0x1b   : > { %s3400_s21 = scalar_select %p84_p10, %s3270_s11, %s86_s20  }
  0x1c   : > { %392 = sbr.rel (%p2701_p11) target bundleno = 130 (0x82), region = 16  ;;  %s5678_s0 = sld [smem:[#allocation176_spill]] (!%p2701_p11) }
  0x1d   : > { %5677 = sst [smem:[#allocation26_spill]] %s3400_s21  ;;  %s3276_s25 = smov (!%p2701_p11), [#allocation3]  }
  0x1e   : > { %s412_s26 = sshll.u32 (!%p2701_p11), %s3276_s25, 4  ;;  %s413_s26 = int_to_ptr.vmem [resolvable:$true] %s412_s26 }
  0x21   : > { %418 = sbr.rel (!%p3387_p8) target bundleno = 74 (0x4a), region = 24  ;;  %s419_s27 = sand.u32 (%p3387_p8), 1, %s3274_s12  }
  0x22   : > { %s410_s24 = sshll.u32 %s5678_s0, 4  ;;  %s421_s28 = sand.u32 (%p3387_p8), 1, %s3270_s11   ;;  %s411_s24 = int_to_ptr.hbm [resolvable:$true] %s410_s24 }
  0x23   : > { %2844 = dma.hbm_to_vmem [thread:$0]  (%p58_p0), %s411_s24, 128, %s413_s26, [#allocation4]  }
  0x24   : > { %s2831_s29 = smul.u32 (%p3387_p8), 1032, %s421_s28  ;;  %s3416_s23 = scalar_lea.sflag (%p3387_p8), [#allocation7], %s419_s27 }
  0x25   : > { %s429_s30 = smul.u32 (%p3387_p8), 129, %s6418_s16 }
  0x26   : > { %s423_s24 = scalar_lea.vmem [#allocation6], %s2831_s29 }
  0x27   : > { %s430_s15 = ssub.s32 257, %s429_s30 }
  0x28   : > { %p431_p12 = scmp.lt.s32.totalorder %s430_s15, 129 }
  0x2a   : > { %s6424_s15 = smov (!%p431_p12, %s430_s15), 129 }
  0x2b   : > { %s2715_s19 = sshll.u32 %s6424_s15, 3 }
  0x2c   : > { %s434_s20 = ssub.s32 1032, %s2715_s19 }
  0x2d   : > { %s435_s22 = sshll.u32 %s434_s20, 4 }
  0x2e   : > { %436 = vsyncadd %s3416_s23, %s435_s22  ;;  %p3419_p13 = scmp.ne.s32.totalorder %s2715_s19, 0  ;;  %s2819_s26 = smul.u32 1032, %s6418_s16 }
  0x2f   : > { %s3424_s28 = sshll.u32 %s423_s24, 4  ;;  %s2719_s30 = sshll.u32 %s6424_s15, 7  ;;  %s444_s28 = int_to_ptr.vmem [resolvable:$true] %s3424_s28 }
  0x30   : > { %s439_s27 = scalar_lea.hbm %s5499_s1, %s2819_s26  ;;  %s2948_s19 = sshrl.u32 %s2719_s30, 4 }
  0x31   : > { %s441_s29 = sshll.u32 %s439_s27, 4  ;;  %s2957_s9 = scalar_lea.hbm %s5499_s1, 2056  ;;  %s3431_s29 = int_to_ptr.hbm [resolvable:$true] %s441_s29 }
  0x32   : > { %s2946_s22 = sshra.s32 %s3431_s29, 4  ;;  %s2947_s22 = int_to_ptr.hbm [resolvable:$true] %s2946_s22 }
  0x33   : > { %s2953_s21 = scalar_lea.hbm %s2947_s22, %s2948_s19  ;;  %p2958_p6 = scmp.lt.s32.totalorder %s2947_s22, %s5499_s1 }
  0x34   : > { %p2954_p1 = scmp.ne.s32.totalorder %s2947_s22, %s2953_s21  ;;  %p2959_p7 = scmp.lt.s32.totalorder %s2957_s9, %s2953_s21 }
  0x36   : > { %p2955_p4 = pnand %p2954_p1, %p3419_p13  ;;  %p2960_p10 = por %p2959_p7, %p2958_p6 }
  0x38   : > { %p2956_p5 = pneg %p2955_p4 }
  0x3a   : > { %p2961_p11 = pnand %p2960_p10, %p2956_p5 }
  0x3c   : > { %2964 = shalt.err (!%p2961_p11)
}
  0x3d   : > { %s2965_s20 = sshra.s32 %s444_s28, 4  ;;  %s3277_s14 = smov [#allocation6]   ;;  %s2966_s20 = int_to_ptr.vmem [resolvable:$true] %s2965_s20 }
  0x3e   : > { %s2972_s27 = scalar_lea.vmem %s2966_s20, %s2948_s19  ;;  %s2976_s24 = scalar_lea.vmem %s3277_s14, 2064 }
  0x3f   : > { %p2973_p12 = scmp.ne.s32.totalorder %s2966_s20, %s2972_s27  ;;  %p2978_p2 = scmp.lt.s32.totalorder %s2976_s24, %s2972_s27 }
  0x41   : > { %p2974_p1 = pnand %p2973_p12, %p3419_p13 }
  0x43   : > { %p2975_p4 = pneg %p2974_p1 }
  0x45   : > { %p2980_p3 = pnand %p2978_p2, %p2975_p4 }
  0x47   : > { %2983 = shalt.err (!%p2980_p3)
}
  0x48   : > { %s3278_s22 = smov 128   ;;  %s3279_s9 = smov 8  }
  0x49   : > { %449 = dma.hbm_to_vmem [thread:$0]  (%p3419_p13), %s3431_s29, %s2719_s30, %s444_s28, %s3416_s23, %s3278_s22, %s3278_s22, %s3279_s9  }
  0x4a PF: > { %452 = sbr.rel (!%p3387_p8) target bundleno = 112 (0x70), region = 28  ;;  %s453_s21 = sand.u32 (%p3387_p8), 1, %s3274_s12  }
  0x4b   : > { %s455_s19 = sand.u32 (%p3387_p8), 1, %s3270_s11   ;;  %s463_s26 = smul.u32 (%p3387_p8), 129, %s6418_s16 }
  0x4c   : > { %s2832_s0 = smul.u32 (%p3387_p8), 1032, %s455_s19  ;;  %s3464_s23 = scalar_lea.sflag (%p3387_p8), [#allocation7], %s453_s21 }
  0x4d   : > { %s464_s20 = ssub.s32 (%p3387_p8), 257, %s463_s26 }
  0x4e   : > { %p465_p2 = scmp.lt.s32.totalorder (%p3387_p8), %s464_s20, 129  ;;  %s457_s17 = scalar_lea.vmem (%p3387_p8), [#allocation8], %s2832_s0 }
  0x50   : > { %s6426_s20 = smov (!%p465_p2, %s464_s20), 129 }
  0x51   : > { %s2726_s25 = sshll.u32 %s6426_s20, 3 }
  0x52   : > { %s468_s27 = ssub.s32 1032, %s2726_s25 }
  0x53   : > { %s469_s15 = sshll.u32 %s468_s27, 4 }
  0x54   : > { %470 = vsyncadd %s3464_s23, %s469_s15  ;;  %p3467_p3 = scmp.ne.s32.totalorder %s2726_s25, 0  ;;  %s2822_s30 = smul.u32 1032, %s6418_s16 }
  0x55   : > { %s3472_s29 = sshll.u32 %s457_s17, 4  ;;  %s2730_s14 = sshll.u32 %s6426_s20, 7  ;;  %s478_s29 = int_to_ptr.vmem [resolvable:$true] %s3472_s29 }
  0x56   : > { %s473_s9 = scalar_lea.hbm %s5500_s2, %s2822_s30  ;;  %s2987_s0 = sshrl.u32 %s2730_s14, 4 }
  0x57   : > { %s475_s21 = sshll.u32 %s473_s9, 4  ;;  %s2996_s27 = scalar_lea.hbm %s5500_s2, 2056  ;;  %s3479_s21 = int_to_ptr.hbm [resolvable:$true] %s475_s21 }
  0x58   : > { %s2985_s19 = sshra.s32 %s3479_s21, 4  ;;  %s2986_s19 = int_to_ptr.hbm [resolvable:$true] %s2985_s19 }
  0x59   : > { %s2992_s26 = scalar_lea.hbm %s2986_s19, %s2987_s0  ;;  %p2997_p6 = scmp.lt.s32.totalorder %s2986_s19, %s5500_s2 }
  0x5a   : > { %p2993_p8 = scmp.ne.s32.totalorder %s2986_s19, %s2992_s26  ;;  %p2998_p7 = scmp.lt.s32.totalorder %s2996_s27, %s2992_s26 }
  0x5c   : > { %p2994_p13 = pnand %p2993_p8, %p3467_p3  ;;  %p2999_p10 = por %p2998_p7, %p2997_p6 }
  0x5e   : > { %p2995_p5 = pneg %p2994_p13 }
  0x60   : > { %p3000_p11 = pnand %p2999_p10, %p2995_p5 }
  0x62   : > { %3003 = shalt.err (!%p3000_p11)
}
  0x63   : > { %s3004_s30 = sshra.s32 %s478_s29, 4  ;;  %s3280_s22 = smov [#allocation8]   ;;  %s3005_s30 = int_to_ptr.vmem [resolvable:$true] %s3004_s30 }
  0x64   : > { %s3011_s24 = scalar_lea.vmem %s3005_s30, %s2987_s0  ;;  %s3015_s9 = scalar_lea.vmem %s3280_s22, 2064 }
  0x65   : > { %p3012_p12 = scmp.ne.s32.totalorder %s3005_s30, %s3011_s24  ;;  %p3017_p2 = scmp.lt.s32.totalorder %s3015_s9, %s3011_s24 }
  0x67   : > { %p3013_p1 = pnand %p3012_p12, %p3467_p3 }
  0x69   : > { %p3014_p4 = pneg %p3013_p1 }
  0x6b   : > { %p3019_p8 = pnand %p3017_p2, %p3014_p4 }
  0x6d   : > { %3022 = shalt.err (!%p3019_p8)
}
  0x6e   : > { %s3281_s19 = smov 128   ;;  %s3282_s26 = smov 8  }
  0x6f   : > { %483 = dma.hbm_to_vmem [thread:$0]  (%p3467_p3), %s3479_s21, %s2730_s14, %s478_s29, %s3464_s23, %s3281_s19, %s3281_s19, %s3282_s26  }
  0x70 PF: > { %s3505_s0 = sand.u32 1, %s3274_s12   ;;  %s502_s27 = sshll.u32 %s5501_s3, 4  ;;  %s503_s27 = int_to_ptr.hbm [resolvable:$true] %s502_s27 }
  0x71   : > { %s3283_s15 = smov [#allocation9]   ;;  %s550_s20 = sshll.u32 %s5503_s5, 4  ;;  %s551_s20 = int_to_ptr.hbm [resolvable:$true] %s550_s20 }
  0x72   : > { %s504_s17 = sshll.u32 %s3283_s15, 4  ;;  %s488_s23 = scalar_lea.sflag [#allocation10], %s3505_s0  ;;  %s505_s17 = int_to_ptr.vmem [resolvable:$true] %s504_s17 }
  0x73   : > { %2845 = dma.hbm_to_vmem [thread:$0]  (%p58_p0), %s503_s27, 128, %s505_s17, %s488_s23  }
  0x74   : > { %s3284_s29 = smov [#allocation12]   ;;  %s536_s21 = scalar_lea.sflag [#allocation13], %s3505_s0 }
  0x75   : > { %s552_s14 = sshll.u32 %s3284_s29, 4  ;;  %s3285_s24 = smov 64   ;;  %s553_s14 = int_to_ptr.vmem [resolvable:$true] %s552_s14 }
  0x76   : > { %s3286_s22 = smov 4   ;;  %s604_s26 = sshll.u32 %s5505_s7, 4  ;;  %s605_s26 = int_to_ptr.hbm [resolvable:$true] %s604_s26 }
  0x77   : > { %2847 = dma.hbm_to_vmem [thread:$0]  (%p58_p0), %s551_s20, 128, %s553_s14, %s536_s21, %s3285_s24, %s3285_s24, %s3286_s22  }
  0x78   : > { %s3287_s16 = smov [#allocation15]   ;;  %s526_s27 = sshll.u32 %s5502_s4, 4  ;;  %s527_s27 = int_to_ptr.hbm [resolvable:$true] %s526_s27 }
  0x79   : > { %s606_s25 = sshll.u32 %s3287_s16, 4  ;;  %s590_s17 = scalar_lea.sflag [#allocation16], %s3505_s0  ;;  %s607_s25 = int_to_ptr.vmem [resolvable:$true] %s606_s25 }
  0x7a   : > { %2849 = dma.hbm_to_vmem [thread:$0]  (%p58_p0), %s605_s26, 128, %s607_s25, %s590_s17  }
  0x7b   : > { %s3288_s28 = smov [#allocation11]   ;;  %s577_s9 = sshll.u32 %s5504_s6, 4  ;;  %s578_s9 = int_to_ptr.hbm [resolvable:$true] %s577_s9 }
  0x7c   : > { %s528_s20 = sshll.u32 %s3288_s28, 4  ;;  %s628_s15 = sshll.u32 %s5506_s8, 4  ;;  %s529_s20 = int_to_ptr.vmem [resolvable:$true] %s528_s20  ;;  %s629_s15 = int_to_ptr.hbm [resolvable:$true] %s628_s15 }
  0x7d   : > { %2846 = dma.hbm_to_vmem [thread:$0]  (%p58_p0), %s527_s27, 128, %s529_s20, %s488_s23  }
  0x7e   : > { %s3289_s30 = smov [#allocation14]   ;;  %s3290_s26 = smov [#allocation17]  }
  0x7f   : > { %s579_s0 = sshll.u32 %s3289_s30, 4  ;;  %s630_s25 = sshll.u32 %s3290_s26, 4  ;;  %s580_s0 = int_to_ptr.vmem [resolvable:$true] %s579_s0  ;;  %s631_s25 = int_to_ptr.vmem [resolvable:$true] %s630_s25 }
  0x80   : > { %2848 = dma.hbm_to_vmem [thread:$0]  (%p58_p0), %s578_s9, 128, %s580_s0, %s536_s21, %s3285_s24, %s3285_s24, %s3286_s22  }
  0x81   : > { %2850 = dma.hbm_to_vmem [thread:$0]  (%p58_p0), %s629_s15, 128, %s631_s25, %s590_s17  }
  0x82 PF: > { %p2781_p3 = scmp.ge.s32.totalorder %s3274_s12, 1  ;;  %p635_p13 = scmp.lt.s32.totalorder %s3274_s12, 7 }
  0x84   : > { %p636_p5 = pnand %p2781_p3, %p635_p13 }
  0x85   : > { %p5681_p6 = scmp.eq.s32.totalorder (!%p636_p5), %s3367_s13, 0 }
  0x86   : > { %639 = sbr.rel (%p636_p5) target bundleno = 1716 (0x6b4), region = 56 }
  0x8b   : > { %3237 = dma.done.wait (%p5681_p6), [#allocation4], 128   ;;  %p5682_p7 = pmov %p5681_p6 }
  0x8c   : > { %s651_s23 = sand.u32 1, %s3367_s13   ;;  %s653_s21 = sand.u32 1, %s3266_s10  }
  0x8d   : > { %3239 = vsyncadd (%p5682_p7), [#allocation4], 4294967168  ;;  %s2833_s24 = smul.u32 1032, %s653_s21  ;;  %s652_s22 = scalar_lea.sflag [#allocation7], %s651_s23 }
  0x8f   : > { %s3548_s27 = scalar_lea.vmem [#allocation6], %s2833_s24 }
  0x90   : > { %3241 = dma.done.wait (%p3393_p9), %s652_s22, 33024  }
  0x91   : > { %3243 = vsyncadd (%p3393_p9), %s652_s22, 4294934272  ;;  %s3554_s12 = scalar_lea.vmem [#allocation8], %s2833_s24  ;;  %s672_s17 = scalar_lea.sflag [#allocation10], %s651_s23 }
  0x92   : > { %p5683_p0 = pmov %p5681_p6 }
  0x94   : > { %3245 = dma.done.wait (%p5683_p0), %s672_s17, 256   ;;  %p5684_p10 = pmov %p5683_p0 }
  0x95   : > { %s692_s28 = scalar_lea.sflag [#allocation13], %s651_s23  ;;  %p5685_p11 = pmov %p5683_p0 }
  0x96   : > { %3247 = vsyncadd (%p5684_p10), %s672_s17, 4294967040 }
  0x97   : > { %3249 = dma.done.wait (%p5685_p11), %s692_s28, 256   ;;  %p5686_p12 = pmov %p5683_p0 }
  0x98   : > { %s712_s20 = scalar_lea.sflag [#allocation16], %s651_s23  ;;  %p5687_p1 = pmov %p5683_p0 }
  0x99   : > { %3251 = vsyncadd (%p5686_p12), %s692_s28, 4294967040 }
  0x9a   : > { %3253 = dma.done.wait (%p5687_p1), %s712_s20, 256   ;;  %p5688_p9 = pmov %p5683_p0 }
  0x9b   : > { %p2789_p4 = scmp.ne.s32.totalorder %s3367_s13, 0 }
  0x9c   : > { %3255 = vsyncadd (%p5688_p9), %s712_s20, 4294967040 }
  0x9d   : > { %855 = sbr.rel (%p2789_p4) target bundleno = 164 (0xa4), region = 96 }
  0xa2   : > { %v3291_v0 = vmov 0.0  }
  0xa3   : > { %856 = vst [vmem:[#allocation18] sm:$0xff] %v3291_v0 }
  0xa4 PF: > { %p857_p2 = scmp.ge.s32.totalorder %s3367_s13, 0  ;;  %p5689_p8 = scmp.lt.s32.totalorder %s3367_s13, 1 }
  0xa6   : > { %p859_p3 = pnand %p5689_p8, %p857_p2 }
  0xa8   : > { %862 = sbr.rel (%p859_p3) target bundleno = 395 (0x18b), region = 100 }
  0xad   : > { %865 = sbr.rel (%p2789_p4) target bundleno = 187 (0xbb), region = 104 }
  0xb2   : > { %v3292_v1 = vmov 0.0  }
  0xb3   : > { %866 = vst [vmem:[#allocation2 + $0x30] sm:$0xff] %v3292_v1 }
  0xb4   : > { %867 = vst [vmem:[#allocation2] sm:$0xff] %v3292_v1 }
  0xb5   : > { %868 = vst [vmem:[#allocation2 + $0x18] sm:$0xff] %v3292_v1 }
  0xb6   : > { %869 = vst [vmem:[#allocation2 + $0x10] sm:$0xff] %v3292_v1 }
  0xb7   : > { %870 = vst [vmem:[#allocation2 + $0x8] sm:$0xff] %v3292_v1 }
  0xb8   : > { %871 = vst [vmem:[#allocation2 + $0x20] sm:$0xff] %v3292_v1 }
  0xb9   : > { %872 = vst [vmem:[#allocation2 + $0x28] sm:$0xff] %v3292_v1 }
  0xba   : > { %873 = vst [vmem:[#allocation2 + $0x38] sm:$0xff] %v3292_v1 }
  0xbb PF: > { %v874_v2 = vld [vmem:[#allocation3] sm:$0xff]  ;;  %v875_v3 = vld [vmem:[#allocation2 + $0x30] sm:$0xff]  ;;  %880 = sbr.rel (%p2789_p4) target bundleno = 395 (0x18b), region = 108 }
  0xbc   : > { %v876_v4 = vadd.f32 %v875_v3, %v874_v2 }
  0xbe   : > { %877 = vst [vmem:[#allocation2 + $0x30] sm:$0xff] %v876_v4 }
  0xc0   : > { %v882_v6 = vld [vmem:[#allocation2] sm:$0xff]  ;;  %v883_v7 = vld [vmem:[#allocation2 + $0x18] sm:$0xff]  ;;  %v884_v9 = vld [vmem:[#allocation2 + $0x10] sm:$0xff]  ;;  %v905_v27 = vlaneseq }
  0xc1   : > { %v885_v11 = vld [vmem:[#allocation2 + $0x8] sm:$0xff]  ;;  %v886_v13 = vld [vmem:[#allocation2 + $0x20] sm:$0xff]  ;;  %v888_v17 = vld [vmem:[#allocation2 + $0x38] sm:$0xff] }
  0xc2   : > { %v887_v15 = vld [vmem:[#allocation2 + $0x28] sm:$0xff]  ;;  %v906_v28 = vshrl.u32 %v905_v27, 7  ;;  %v907_v29 = vld [vmem:[#allocation18] sm:$0xff] }
  0xc4   : > { %vm908_vm0 = vcmp.eq.s32.totalorder %v906_v28, 0 }
  0xc5   : > { %v881_v5 = vld [vmem:[#allocation2 + $0x30] sm:$0xff] }
  0xc6   : > { %v889_v8 = vadd.f32 %v882_v6, %v881_v5 }
  0xc8   : > { %v890_v10 = vadd.f32 %v889_v8, %v883_v7 }
  0xca   : > { %v891_v12 = vadd.f32 %v890_v10, %v884_v9 }
  0xcc   : > { %v892_v14 = vadd.f32 %v891_v12, %v885_v11 }
  0xce   : > { %v893_v16 = vadd.f32 %v892_v14, %v886_v13 }
  0xd0   : > { %v894_v18 = vadd.f32 %v893_v16, %v887_v15 }
  0xd2   : > { %v895_v19 = vadd.f32 %v894_v18, %v888_v17 }
  0xd4   : > { %896 = vadd.xlane.f32.xlu0 %v895_v19 }
 0x147   : > { %v897_v20 = vpop.xlane.xlu0 %896 }
 0x148   : > { %v898_v21 = vrot.slane %v897_v20, 4 }
 0x14a   : > { %v899_v22 = vadd.f32 %v898_v21, %v897_v20 }
 0x14c   : > { %v900_v23 = vrot.slane %v899_v22, 2 }
 0x14e   : > { %v901_v24 = vadd.f32 %v900_v23, %v899_v22 }
 0x150   : > { %v902_v25 = vrot.slane %v901_v24, 1 }
 0x152   : > { %v903_v26 = vadd.f32 %v902_v25, %v901_v24 }
 0x154   : > { %2834 = vpush %v903_v26 }
 0x185   : > { %s2835_s18 = spop %2834 }
 0x186   : > { %v909_v30 = vstv %s2835_s18 }
 0x187   : > { %v910_v31 = vsel %vm908_vm0, %v909_v30, 0.0 }
 0x188   : > { %v911_v32 = vadd.f32 %v910_v31, %v907_v29 }
 0x18a   : > { %912 = vst [vmem:[#allocation18] sm:$0xff] %v911_v32 }
 0x18b PF: > { %s3579_s29 = sadd.s32 4294967295, %s3367_s13  ;;  %p914_p13 = scmp.ge.s32.totalorder %s3367_s13, 1 }
 0x18c   : > { %p915_p5 = scmp.lt.s32.totalorder %s3367_s13, 3 }
 0x18e   : > { %p916_p6 = pnand %p915_p5, %p914_p13 }
 0x190   : > { %919 = sbr.rel (%p916_p6) target bundleno = 995 (0x3e3), region = 112 }
 0x195   : > { %p2793_p7 = scmp.ne.s32.totalorder %s3579_s29, 0 }
 0x197   : > { %923 = sbr.rel (%p2793_p7) target bundleno = 421 (0x1a5), region = 116 }
 0x19c   : > { %v3293_v33 = vmov 0.0  }
 0x19d   : > { %924 = vst [vmem:[#allocation2 + $0x30] sm:$0xff] %v3293_v33 }
 0x19e   : > { %925 = vst [vmem:[#allocation2] sm:$0xff] %v3293_v33 }
 0x19f   : > { %926 = vst [vmem:[#allocation2 + $0x18] sm:$0xff] %v3293_v33 }
 0x1a0   : > { %927 = vst [vmem:[#allocation2 + $0x10] sm:$0xff] %v3293_v33 }
 0x1a1   : > { %928 = vst [vmem:[#allocation2 + $0x8] sm:$0xff] %v3293_v33 }
 0x1a2   : > { %929 = vst [vmem:[#allocation2 + $0x20] sm:$0xff] %v3293_v33 }
 0x1a3   : > { %930 = vst [vmem:[#allocation2 + $0x28] sm:$0xff] %v3293_v33 }
 0x1a4   : > { %931 = vst [vmem:[#allocation2 + $0x38] sm:$0xff] %v3293_v33 }
 0x1a5 PF: > { %v3585_v34 = vld [vmem:[%s3548_s27] sm:$0xff]  ;;  %v3588_v35 = vld [vmem:[%s3548_s27 + $0x8] sm:$0xff]  ;;  %v3591_v36 = vld [vmem:[%s3548_s27 + $0x10] sm:$0xff]  ;;  %p2794_p0 = scmp.eq.s32.totalorder %s3579_s29, 1 }
 0x1a6   : > { %v3594_v37 = vld [vmem:[%s3554_s12] sm:$0xff]  ;;  %v3597_v38 = vld [vmem:[%s3554_s12 + $0x8] sm:$0xff]  ;;  %v3600_v39 = vld [vmem:[%s3554_s12 + $0x10] sm:$0xff] }
 0x1a7   : > { %v3603_v40 = vld [vmem:[%s3548_s27 + $0x18] sm:$0xff]  ;;  %v3606_v41 = vld [vmem:[%s3548_s27 + $0x20] sm:$0xff]  ;;  %v3609_v42 = vld [vmem:[%s3548_s27 + $0x28] sm:$0xff] }
 0x1a8   : > { %5690 = vst [vmem:[#allocation27_spill] sm:$0xff] %v3609_v42  ;;  %v3612_v43 = vld [vmem:[%s3548_s27 + $0x30] sm:$0xff]  ;;  %v3615_v44 = vld [vmem:[%s3554_s12 + $0x18] sm:$0xff]  ;;  %v3621_v46 = vld [vmem:[%s3554_s12 + $0x28] sm:$0xff] }
 0x1a9   : > { %5691 = vst [vmem:[#allocation28_spill] sm:$0xff] %v3612_v43  ;;  %v3618_v45 = vld [vmem:[%s3554_s12 + $0x20] sm:$0xff]  ;;  %v3624_v47 = vld [vmem:[%s3554_s12 + $0x30] sm:$0xff]  ;;  %v3627_v48 = vld [vmem:[%s3548_s27 + $0x38] sm:$0xff] }
 0x1aa   : > { %5692 = vst [vmem:[#allocation29_spill] sm:$0xff] %v3621_v46  ;;  %v3630_v49 = vld [vmem:[%s3548_s27 + $0x40] sm:$0xff]  ;;  %v3633_v50 = vld [vmem:[%s3548_s27 + $0x48] sm:$0xff]  ;;  %v3636_v51 = vld [vmem:[%s3548_s27 + $0x50] sm:$0xff] }
 0x1ab   : > { %5693 = vst [vmem:[#allocation30_spill] sm:$0xff] %v3624_v47  ;;  %v3639_v52 = vld [vmem:[%s3554_s12 + $0x38] sm:$0xff]  ;;  %v3642_v53 = vld [vmem:[%s3554_s12 + $0x40] sm:$0xff]  ;;  %v3645_v54 = vld [vmem:[%s3554_s12 + $0x48] sm:$0xff] }
 0x1ac   : > { %5694 = vst [vmem:[#allocation31_spill] sm:$0xff] %v3627_v48  ;;  %v3648_v55 = vld [vmem:[%s3554_s12 + $0x50] sm:$0xff]  ;;  %v3651_v56 = vld [vmem:[%s3548_s27 + $0x58] sm:$0xff]  ;;  %v3657_v58 = vld [vmem:[%s3548_s27 + $0x68] sm:$0xff] }
 0x1ad   : > { %5695 = vst [vmem:[#allocation32_spill] sm:$0xff] %v3630_v49  ;;  %v3654_v57 = vld [vmem:[%s3548_s27 + $0x60] sm:$0xff]  ;;  %v3660_v59 = vld [vmem:[%s3548_s27 + $0x70] sm:$0xff]  ;;  %v3663_v60 = vld [vmem:[%s3554_s12 + $0x58] sm:$0xff] }
 0x1ae   : > { %5696 = vst [vmem:[#allocation33_spill] sm:$0xff] %v3633_v50  ;;  %v3666_v61 = vld [vmem:[%s3554_s12 + $0x60] sm:$0xff]  ;;  %v3669_v62 = vld [vmem:[%s3554_s12 + $0x68] sm:$0xff]  ;;  %v3672_v63 = vld [vmem:[%s3554_s12 + $0x70] sm:$0xff] }
 0x1af   : > { %5697 = vst [vmem:[#allocation34_spill] sm:$0xff] %v3636_v51  ;;  %v3675_v0 = vld [vmem:[%s3548_s27 + $0x78] sm:$0xff]  ;;  %v3678_v1 = vld [vmem:[%s3548_s27 + $0x80] sm:$0xff]  ;;  %v3681_v2 = vld [vmem:[%s3548_s27 + $0x88] sm:$0xff] }
 0x1b0   : > { %5698 = vst [vmem:[#allocation35_spill] sm:$0xff] %v3639_v52  ;;  %v3684_v3 = vld [vmem:[%s3548_s27 + $0x90] sm:$0xff]  ;;  %v3687_v4 = vld [vmem:[%s3554_s12 + $0x78] sm:$0xff]  ;;  %v3693_v6 = vld [vmem:[%s3554_s12 + $0x88] sm:$0xff] }
 0x1b1   : > { %5699 = vst [vmem:[#allocation36_spill] sm:$0xff] %v3642_v53  ;;  %v3690_v5 = vld [vmem:[%s3554_s12 + $0x80] sm:$0xff]  ;;  %v3696_v7 = vld [vmem:[%s3554_s12 + $0x90] sm:$0xff]  ;;  %v3699_v8 = vld [vmem:[%s3548_s27 + $0x98] sm:$0xff] }
 0x1b2   : > { %5700 = vst [vmem:[#allocation37_spill] sm:$0xff] %v3645_v54  ;;  %v3702_v9 = vld [vmem:[%s3548_s27 + $0xa0] sm:$0xff]  ;;  %v3705_v10 = vld [vmem:[%s3548_s27 + $0xa8] sm:$0xff]  ;;  %v3708_v11 = vld [vmem:[%s3548_s27 + $0xb0] sm:$0xff] }
 0x1b3   : > { %5701 = vst [vmem:[#allocation38_spill] sm:$0xff] %v3648_v55  ;;  %v3711_v12 = vld [vmem:[%s3554_s12 + $0x98] sm:$0xff]  ;;  %v3714_v13 = vld [vmem:[%s3554_s12 + $0xa0] sm:$0xff]  ;;  %v3717_v14 = vld [vmem:[%s3554_s12 + $0xa8] sm:$0xff] }
 0x1b4   : > { %5702 = vst [vmem:[#allocation39_spill] sm:$0xff] %v3651_v56  ;;  %v3720_v15 = vld [vmem:[%s3554_s12 + $0xb0] sm:$0xff]  ;;  %v3729_v19 = vld [vmem:[%s3548_s27 + $0xb8] sm:$0xff]  ;;  %v3735_v21 = vld [vmem:[%s3548_s27 + $0xc8] sm:$0xff] }
 0x1b5   : > { %5703 = vst [vmem:[#allocation40_spill] sm:$0xff] %v3654_v57  ;;  %v3732_v20 = vld [vmem:[%s3548_s27 + $0xc0] sm:$0xff]  ;;  %v3738_v22 = vld [vmem:[%s3548_s27 + $0xd0] sm:$0xff]  ;;  %v3741_v23 = vld [vmem:[%s3554_s12 + $0xb8] sm:$0xff] }
 0x1b6   : > { %5704 = vst [vmem:[#allocation41_spill] sm:$0xff] %v3657_v58  ;;  %v3744_v24 = vld [vmem:[%s3554_s12 + $0xc0] sm:$0xff]  ;;  %v3747_v25 = vld [vmem:[%s3554_s12 + $0xc8] sm:$0xff]  ;;  %v3750_v26 = vld [vmem:[%s3554_s12 + $0xd0] sm:$0xff] }
 0x1b7   : > { %5705 = vst [vmem:[#allocation42_spill] sm:$0xff] %v3660_v59  ;;  %v3761_v31 = vld [vmem:[%s3548_s27 + $0xd8] sm:$0xff]  ;;  %v3764_v32 = vld [vmem:[%s3548_s27 + $0xe0] sm:$0xff]  ;;  %v3767_v33 = vld [vmem:[%s3548_s27 + $0xe8] sm:$0xff] }
 0x1b8   : > { %5706 = vst [vmem:[#allocation43_spill] sm:$0xff] %v3663_v60  ;;  %v3770_v27 = vld [vmem:[%s3548_s27 + $0xf0] sm:$0xff]  ;;  %v3773_v28 = vld [vmem:[%s3554_s12 + $0xd8] sm:$0xff]  ;;  %v3779_v18 = vld [vmem:[%s3554_s12 + $0xe8] sm:$0xff] }
 0x1b9   : > { %5707 = vst [vmem:[#allocation44_spill] sm:$0xff] %v3666_v61  ;;  %v3776_v29 = vld [vmem:[%s3554_s12 + $0xe0] sm:$0xff]  ;;  %v3782_v30 = vld [vmem:[%s3554_s12 + $0xf0] sm:$0xff]  ;;  %v3793_v46 = vld [vmem:[%s3548_s27 + $0xf8] sm:$0xff] }
 0x1ba   : > { %5708 = vst [vmem:[#allocation45_spill] sm:$0xff] %v3669_v62  ;;  %v3796_v42 = vld [vmem:[%s3548_s27 + $0x100] sm:$0xff]  ;;  %v3799_v17 = vld [vmem:[%s3548_s27 + $0x108] sm:$0xff]  ;;  %v3802_v52 = vld [vmem:[%s3548_s27 + $0x110] sm:$0xff] }
 0x1bb   : > { %5709 = vst [vmem:[#allocation46_spill] sm:$0xff] %v3672_v63  ;;  %v3805_v16 = vld [vmem:[%s3554_s12 + $0xf8] sm:$0xff]  ;;  %v3808_v47 = vld [vmem:[%s3554_s12 + $0x100] sm:$0xff]  ;;  %v3811_v54 = vld [vmem:[%s3554_s12 + $0x108] sm:$0xff] }
 0x1bc   : > { %5710 = vst [vmem:[#allocation47_spill] sm:$0xff] %v3675_v0  ;;  %v3814_v43 = vld [vmem:[%s3554_s12 + $0x110] sm:$0xff]  ;;  %v3825_v49 = vld [vmem:[%s3548_s27 + $0x118] sm:$0xff]  ;;  %v3831_v55 = vld [vmem:[%s3548_s27 + $0x128] sm:$0xff] }
 0x1bd   : > { %5711 = vst [vmem:[#allocation48_spill] sm:$0xff] %v3678_v1  ;;  %v3828_v48 = vld [vmem:[%s3548_s27 + $0x120] sm:$0xff]  ;;  %v3834_v60 = vld [vmem:[%s3548_s27 + $0x130] sm:$0xff]  ;;  %v3837_v51 = vld [vmem:[%s3554_s12 + $0x118] sm:$0xff] }
 0x1be   : > { %5712 = vst [vmem:[#allocation49_spill] sm:$0xff] %v3681_v2  ;;  %v3840_v50 = vld [vmem:[%s3554_s12 + $0x120] sm:$0xff]  ;;  %v3843_v62 = vld [vmem:[%s3554_s12 + $0x128] sm:$0xff]  ;;  %v3846_v53 = vld [vmem:[%s3554_s12 + $0x130] sm:$0xff] }
 0x1bf   : > { %5713 = vst [vmem:[#allocation50_spill] sm:$0xff] %v3684_v3  ;;  %v3857_v57 = vld [vmem:[%s3548_s27 + $0x138] sm:$0xff]  ;;  %v3860_v56 = vld [vmem:[%s3548_s27 + $0x140] sm:$0xff]  ;;  %v3863_v63 = vld [vmem:[%s3548_s27 + $0x148] sm:$0xff] }
 0x1c0   : > { %5714 = vst [vmem:[#allocation51_spill] sm:$0xff] %v3687_v4  ;;  %v3866_v4 = vld [vmem:[%s3548_s27 + $0x150] sm:$0xff]  ;;  %v3869_v59 = vld [vmem:[%s3554_s12 + $0x138] sm:$0xff]  ;;  %v3878_v61 = vld [vmem:[%s3554_s12 + $0x150] sm:$0xff] }
 0x1c1   : > { %5715 = vst [vmem:[#allocation52_spill] sm:$0xff] %v3690_v5  ;;  %v3872_v58 = vld [vmem:[%s3554_s12 + $0x140] sm:$0xff]  ;;  %v3889_v1 = vld [vmem:[%s3548_s27 + $0x158] sm:$0xff]  ;;  %v3892_v0 = vld [vmem:[%s3548_s27 + $0x160] sm:$0xff] }
 0x1c2   : > { %5716 = vst [vmem:[#allocation53_spill] sm:$0xff] %v3693_v6  ;;  %v3875_v6 = vld [vmem:[%s3554_s12 + $0x148] sm:$0xff]  ;;  %v3901_v3 = vld [vmem:[%s3554_s12 + $0x158] sm:$0xff] }
 0x1c3   : > { %5717 = vst [vmem:[#allocation54_spill] sm:$0xff] %v3696_v7  ;;  %v3895_v7 = vld [vmem:[%s3548_s27 + $0x168] sm:$0xff]  ;;  %v3907_v2 = vld [vmem:[%s3554_s12 + $0x168] sm:$0xff] }
 0x1c4   : > { %5718 = vst [vmem:[#allocation55_spill] sm:$0xff] %v3699_v8  ;;  %v3924_v8 = vld [vmem:[%s3548_s27 + $0x180] sm:$0xff]  ;;  %v3927_v5 = vld [vmem:[%s3548_s27 + $0x188] sm:$0xff] }
 0x1c5   : > { %5719 = vst [vmem:[#allocation56_spill] sm:$0xff] %v3702_v9  ;;  %v3921_v9 = vld [vmem:[%s3548_s27 + $0x178] sm:$0xff] }
 0x1c6   : > { %5720 = vst [vmem:[#allocation57_spill] sm:$0xff] %v3705_v10  ;;  %v3956_v10 = vld [vmem:[%s3548_s27 + $0x1a8] sm:$0xff] }
 0x1c7   : > { %5721 = vst [vmem:[#allocation58_spill] sm:$0xff] %v3708_v11  ;;  %v3939_v11 = vld [vmem:[%s3554_s12 + $0x188] sm:$0xff] }
 0x1c8   : > { %5722 = vst [vmem:[#allocation59_spill] sm:$0xff] %v3711_v12  ;;  %v3898_v12 = vld [vmem:[%s3548_s27 + $0x170] sm:$0xff] }
 0x1c9   : > { %5723 = vst [vmem:[#allocation60_spill] sm:$0xff] %v3714_v13  ;;  %v3904_v13 = vld [vmem:[%s3554_s12 + $0x160] sm:$0xff] }
 0x1ca   : > { %5724 = vst [vmem:[#allocation61_spill] sm:$0xff] %v3717_v14  ;;  %v3910_v14 = vld [vmem:[%s3554_s12 + $0x170] sm:$0xff] }
 0x1cb   : > { %5725 = vst [vmem:[#allocation62_spill] sm:$0xff] %v3720_v15  ;;  %v3933_v15 = vld [vmem:[%s3554_s12 + $0x178] sm:$0xff] }
 0x1cc   : > { %5726 = vst [vmem:[#allocation63_spill] sm:$0xff] %v3732_v20  ;;  %v3953_v20 = vld [vmem:[%s3548_s27 + $0x1a0] sm:$0xff] }
 0x1cd   : > { %5727 = vst [vmem:[#allocation64_spill] sm:$0xff] %v3735_v21  ;;  %v3950_v21 = vld [vmem:[%s3548_s27 + $0x198] sm:$0xff] }
 0x1ce   : > { %5728 = vst [vmem:[#allocation65_spill] sm:$0xff] %v3738_v22  ;;  %v3968_v22 = vld [vmem:[%s3554_s12 + $0x1a0] sm:$0xff] }
 0x1cf   : > { %5729 = vst [vmem:[#allocation66_spill] sm:$0xff] %v3741_v23  ;;  %v3930_v23 = vld [vmem:[%s3548_s27 + $0x190] sm:$0xff] }
 0x1d0   : > { %5730 = vst [vmem:[#allocation67_spill] sm:$0xff] %v3744_v24  ;;  %v3936_v24 = vld [vmem:[%s3554_s12 + $0x180] sm:$0xff] }
 0x1d1   : > { %5731 = vst [vmem:[#allocation68_spill] sm:$0xff] %v3747_v25  ;;  %v3985_v25 = vld [vmem:[%s3548_s27 + $0x1c8] sm:$0xff] }
 0x1d2   : > { %5732 = vst [vmem:[#allocation69_spill] sm:$0xff] %v3750_v26  ;;  %v3962_v26 = vld [vmem:[%s3554_s12 + $0x190] sm:$0xff] }
 0x1d3   : > { %5733 = vst [vmem:[#allocation70_spill] sm:$0xff] %v3764_v32  ;;  %v3982_v32 = vld [vmem:[%s3548_s27 + $0x1c0] sm:$0xff] }
 0x1d4   : > { %5734 = vst [vmem:[#allocation71_spill] sm:$0xff] %v3767_v33  ;;  %v3979_v33 = vld [vmem:[%s3548_s27 + $0x1b8] sm:$0xff] }
 0x1d5   : > { %5735 = vst [vmem:[#allocation72_spill] sm:$0xff] %v3770_v27  ;;  %v3997_v27 = vld [vmem:[%s3554_s12 + $0x1b8] sm:$0xff] }
 0x1d6   : > { %5736 = vst [vmem:[#allocation73_spill] sm:$0xff] %v3773_v28  ;;  %v3959_v28 = vld [vmem:[%s3548_s27 + $0x1b0] sm:$0xff] }
 0x1d7   : > { %5737 = vst [vmem:[#allocation74_spill] sm:$0xff] %v3776_v29  ;;  %v3965_v29 = vld [vmem:[%s3554_s12 + $0x198] sm:$0xff] }
 0x1d8   : > { %5738 = vst [vmem:[#allocation75_spill] sm:$0xff] %v3779_v18  ;;  %v4014_v18 = vld [vmem:[%s3548_s27 + $0x1e8] sm:$0xff] }
 0x1d9   : > { %5739 = vst [vmem:[#allocation76_spill] sm:$0xff] %v3782_v30  ;;  %v3991_v30 = vld [vmem:[%s3554_s12 + $0x1a8] sm:$0xff] }
 0x1da   : > { %5740 = vst [vmem:[#allocation77_spill] sm:$0xff] %v3796_v42  ;;  %v4011_v42 = vld [vmem:[%s3548_s27 + $0x1e0] sm:$0xff] }
 0x1db   : > { %5741 = vst [vmem:[#allocation78_spill] sm:$0xff] %v3799_v17  ;;  %v4008_v17 = vld [vmem:[%s3548_s27 + $0x1d8] sm:$0xff] }
 0x1dc   : > { %5742 = vst [vmem:[#allocation79_spill] sm:$0xff] %v3802_v52  ;;  %v4026_v52 = vld [vmem:[%s3554_s12 + $0x1d0] sm:$0xff] }
 0x1dd   : > { %5743 = vst [vmem:[#allocation80_spill] sm:$0xff] %v3805_v16  ;;  %v3988_v16 = vld [vmem:[%s3548_s27 + $0x1d0] sm:$0xff] }
 0x1de   : > { %5744 = vst [vmem:[#allocation81_spill] sm:$0xff] %v3808_v47  ;;  %v3994_v47 = vld [vmem:[%s3554_s12 + $0x1b0] sm:$0xff] }
 0x1df   : > { %5745 = vst [vmem:[#allocation82_spill] sm:$0xff] %v3811_v54  ;;  %v4043_v54 = vld [vmem:[%s3548_s27 + $0x208] sm:$0xff] }
 0x1e0   : > { %5746 = vst [vmem:[#allocation83_spill] sm:$0xff] %v3814_v43  ;;  %v4020_v43 = vld [vmem:[%s3554_s12 + $0x1c0] sm:$0xff] }
 0x1e1   : > { %5747 = vst [vmem:[#allocation84_spill] sm:$0xff] %v3828_v48  ;;  %v4040_v48 = vld [vmem:[%s3548_s27 + $0x200] sm:$0xff] }
 0x1e2   : > { %5748 = vst [vmem:[#allocation85_spill] sm:$0xff] %v3831_v55  ;;  %v4037_v55 = vld [vmem:[%s3548_s27 + $0x1f8] sm:$0xff] }
 0x1e3   : > { %5749 = vst [vmem:[#allocation86_spill] sm:$0xff] %v3834_v60  ;;  %v4055_v60 = vld [vmem:[%s3554_s12 + $0x1e8] sm:$0xff] }
 0x1e4   : > { %5750 = vst [vmem:[#allocation87_spill] sm:$0xff] %v3837_v51  ;;  %v4017_v51 = vld [vmem:[%s3548_s27 + $0x1f0] sm:$0xff] }
 0x1e5   : > { %5751 = vst [vmem:[#allocation88_spill] sm:$0xff] %v3840_v50  ;;  %v4023_v50 = vld [vmem:[%s3554_s12 + $0x1c8] sm:$0xff] }
 0x1e6   : > { %5752 = vst [vmem:[#allocation89_spill] sm:$0xff] %v3843_v62  ;;  %v4075_v62 = vld [vmem:[%s3548_s27 + $0x230] sm:$0xff] }
 0x1e7   : > { %5753 = vst [vmem:[#allocation90_spill] sm:$0xff] %v3846_v53  ;;  %v4049_v53 = vld [vmem:[%s3554_s12 + $0x1d8] sm:$0xff] }
 0x1e8   : > { %5754 = vst [vmem:[#allocation91_spill] sm:$0xff] %v3857_v57  ;;  %v4072_v57 = vld [vmem:[%s3548_s27 + $0x228] sm:$0xff] }
 0x1e9   : > { %5755 = vst [vmem:[#allocation92_spill] sm:$0xff] %v3860_v56  ;;  %v4069_v56 = vld [vmem:[%s3548_s27 + $0x220] sm:$0xff] }
 0x1ea   : > { %5756 = vst [vmem:[#allocation93_spill] sm:$0xff] %v3863_v63  ;;  %v4066_v63 = vld [vmem:[%s3548_s27 + $0x218] sm:$0xff] }
 0x1eb   : > { %5757 = vst [vmem:[#allocation94_spill] sm:$0xff] %v3866_v4  ;;  %v4084_v4 = vld [vmem:[%s3554_s12 + $0x200] sm:$0xff] }
 0x1ec   : > { %5758 = vst [vmem:[#allocation95_spill] sm:$0xff] %v3869_v59  ;;  %v4046_v59 = vld [vmem:[%s3548_s27 + $0x210] sm:$0xff] }
 0x1ed   : > { %5759 = vst [vmem:[#allocation96_spill] sm:$0xff] %v3872_v58  ;;  %v4052_v58 = vld [vmem:[%s3554_s12 + $0x1e0] sm:$0xff] }
 0x1ee   : > { %5760 = vst [vmem:[#allocation97_spill] sm:$0xff] %v3875_v6  ;;  %v4104_v6 = vld [vmem:[%s3554_s12 + $0x208] sm:$0xff] }
 0x1ef   : > { %5761 = vst [vmem:[#allocation98_spill] sm:$0xff] %v3878_v61  ;;  %v4081_v61 = vld [vmem:[%s3554_s12 + $0x1f8] sm:$0xff] }
 0x1f0   : > { %5762 = vst [vmem:[#allocation99_spill] sm:$0xff] %v3892_v0  ;;  %v4101_v0 = vld [vmem:[%s3548_s27 + $0x248] sm:$0xff] }
 0x1f1   : > { %5763 = vst [vmem:[#allocation100_spill] sm:$0xff] %v3895_v7  ;;  %v4095_v7 = vld [vmem:[%s3548_s27 + $0x238] sm:$0xff] }
 0x1f2   : > { %5764 = vst [vmem:[#allocation101_spill] sm:$0xff] %v3898_v12  ;;  %v4130_v12 = vld [vmem:[%s3554_s12 + $0x220] sm:$0xff] }
 0x1f3   : > { %5765 = vst [vmem:[#allocation102_spill] sm:$0xff] %v3901_v3  ;;  %v4078_v3 = vld [vmem:[%s3554_s12 + $0x1f0] sm:$0xff] }
 0x1f4   : > { %5766 = vst [vmem:[#allocation103_spill] sm:$0xff] %v3904_v13  ;;  %v4098_v13 = vld [vmem:[%s3548_s27 + $0x240] sm:$0xff] }
 0x1f5   : > { %5767 = vst [vmem:[#allocation104_spill] sm:$0xff] %v3907_v2  ;;  %v4136_v2 = vld [vmem:[%s3554_s12 + $0x230] sm:$0xff] }
 0x1f6   : > { %5768 = vst [vmem:[#allocation105_spill] sm:$0xff] %v3910_v14  ;;  %v4110_v14 = vld [vmem:[%s3554_s12 + $0x218] sm:$0xff] }
 0x1f7   : > { %5769 = vst [vmem:[#allocation106_spill] sm:$0xff] %v3927_v5  ;;  %v4124_v5 = vld [vmem:[%s3548_s27 + $0x258] sm:$0xff] }
 0x1f8   : > { %5770 = vst [vmem:[#allocation107_spill] sm:$0xff] %v3930_v23  ;;  %v4162_v23 = vld [vmem:[%s3554_s12 + $0x248] sm:$0xff] }
 0x1f9   : > { %5771 = vst [vmem:[#allocation108_spill] sm:$0xff] %v3933_v15  ;;  %v4107_v15 = vld [vmem:[%s3554_s12 + $0x210] sm:$0xff] }
 0x1fa   : > { %5772 = vst [vmem:[#allocation109_spill] sm:$0xff] %v3936_v24  ;;  %v4127_v24 = vld [vmem:[%s3548_s27 + $0x260] sm:$0xff] }
 0x1fb   : > { %5773 = vst [vmem:[#allocation110_spill] sm:$0xff] %v3939_v11  ;;  %v4121_v11 = vld [vmem:[%s3548_s27 + $0x250] sm:$0xff] }
 0x1fc   : > { %5774 = vst [vmem:[#allocation111_spill] sm:$0xff] %v3956_v10  ;;  %v4150_v10 = vld [vmem:[%s3548_s27 + $0x270] sm:$0xff] }
 0x1fd   : > { %5775 = vst [vmem:[#allocation112_spill] sm:$0xff] %v3959_v28  ;;  %v4188_v28 = vld [vmem:[%s3554_s12 + $0x260] sm:$0xff] }
 0x1fe   : > { %5776 = vst [vmem:[#allocation113_spill] sm:$0xff] %v3962_v26  ;;  %v4156_v26 = vld [vmem:[%s3554_s12 + $0x238] sm:$0xff] }
 0x1ff   : > { %5777 = vst [vmem:[#allocation114_spill] sm:$0xff] %v3965_v29  ;;  %v4133_v29 = vld [vmem:[%s3554_s12 + $0x228] sm:$0xff] }
 0x200   : > { %5778 = vst [vmem:[#allocation115_spill] sm:$0xff] %v3968_v22  ;;  %v4153_v22 = vld [vmem:[%s3548_s27 + $0x278] sm:$0xff] }
 0x201   : > { %5779 = vst [vmem:[#allocation116_spill] sm:$0xff] %v3985_v25  ;;  %v4176_v25 = vld [vmem:[%s3548_s27 + $0x288] sm:$0xff] }
 0x202   : > { %5780 = vst [vmem:[#allocation117_spill] sm:$0xff] %v3988_v16  ;;  %v4214_v16 = vld [vmem:[%s3554_s12 + $0x278] sm:$0xff] }
 0x203   : > { %5781 = vst [vmem:[#allocation118_spill] sm:$0xff] %v3991_v30  ;;  %v4147_v30 = vld [vmem:[%s3548_s27 + $0x268] sm:$0xff] }
 0x204   : > { %5782 = vst [vmem:[#allocation119_spill] sm:$0xff] %v3994_v47  ;;  %v4182_v47 = vld [vmem:[%s3554_s12 + $0x250] sm:$0xff] }
 0x205   : > { %5783 = vst [vmem:[#allocation120_spill] sm:$0xff] %v3997_v27  ;;  %v4159_v27 = vld [vmem:[%s3554_s12 + $0x240] sm:$0xff] }
 0x206   : > { %5784 = vst [vmem:[#allocation121_spill] sm:$0xff] %v4014_v18  ;;  %v4202_v18 = vld [vmem:[%s3548_s27 + $0x2a0] sm:$0xff] }
 0x207   : > { %5785 = vst [vmem:[#allocation122_spill] sm:$0xff] %v4017_v51  ;;  %v4240_v51 = vld [vmem:[%s3554_s12 + $0x290] sm:$0xff] }
 0x208   : > { %5786 = vst [vmem:[#allocation123_spill] sm:$0xff] %v4020_v43  ;;  %v4179_v43 = vld [vmem:[%s3548_s27 + $0x290] sm:$0xff] }
 0x209   : > { %5787 = vst [vmem:[#allocation124_spill] sm:$0xff] %v4023_v50  ;;  %v4173_v50 = vld [vmem:[%s3548_s27 + $0x280] sm:$0xff] }
 0x20a   : > { %5788 = vst [vmem:[#allocation125_spill] sm:$0xff] %v4026_v52  ;;  %v4208_v52 = vld [vmem:[%s3554_s12 + $0x268] sm:$0xff] }
 0x20b   : > { %5789 = vst [vmem:[#allocation126_spill] sm:$0xff] %v4043_v54  ;;  %v4228_v54 = vld [vmem:[%s3548_s27 + $0x2b8] sm:$0xff] }
 0x20c   : > { %5790 = vst [vmem:[#allocation127_spill] sm:$0xff] %v4046_v59  ;;  %v4266_v59 = vld [vmem:[%s3554_s12 + $0x2a0] sm:$0xff] }
 0x20d   : > { %5791 = vst [vmem:[#allocation128_spill] sm:$0xff] %v4049_v53  ;;  %v4185_v53 = vld [vmem:[%s3554_s12 + $0x258] sm:$0xff] }
 0x20e   : > { %5792 = vst [vmem:[#allocation129_spill] sm:$0xff] %v4052_v58  ;;  %v4205_v58 = vld [vmem:[%s3548_s27 + $0x2a8] sm:$0xff] }
 0x20f   : > { %5793 = vst [vmem:[#allocation130_spill] sm:$0xff] %v4055_v60  ;;  %v4199_v60 = vld [vmem:[%s3548_s27 + $0x298] sm:$0xff] }
 0x210   : > { %5794 = vst [vmem:[#allocation131_spill] sm:$0xff] %v4069_v56  ;;  %v4260_v56 = vld [vmem:[%s3548_s27 + $0x2d8] sm:$0xff] }
 0x211   : > { %5795 = vst [vmem:[#allocation132_spill] sm:$0xff] %v4072_v57  ;;  %v4254_v57 = vld [vmem:[%s3548_s27 + $0x2c8] sm:$0xff] }
 0x212   : > { %5796 = vst [vmem:[#allocation133_spill] sm:$0xff] %v4075_v62  ;;  %v5816_v62 = vsub.f32 %v3585_v34, %v3594_v37  ;;  %v4303_v34 = vld [vmem:[%s3554_s12 + $0x2c8] sm:$0xff]  ;;  %v4323_v37 = vld [vmem:[%s3548_s27 + $0x2e0] sm:$0xff] }
 0x213   : > { %5797 = vst [vmem:[#allocation134_spill] sm:$0xff] %v4078_v3  ;;  %v4234_v3 = vld [vmem:[%s3554_s12 + $0x280] sm:$0xff] }
 0x214   : > { %5798 = vst [vmem:[#allocation135_spill] sm:$0xff] %v4081_v61  ;;  %v4211_v61 = vld [vmem:[%s3554_s12 + $0x270] sm:$0xff] }
 0x215   : > { %5799 = vst [vmem:[#allocation136_spill] sm:$0xff] %v4084_v4  ;;  %v4231_v4 = vld [vmem:[%s3548_s27 + $0x2c0] sm:$0xff] }
 0x216   : > { %5800 = vst [vmem:[#allocation137_spill] sm:$0xff] %v4098_v13  ;;  %v4289_v13 = vld [vmem:[%s3554_s12 + $0x2c0] sm:$0xff] }
 0x217   : > { %5801 = vst [vmem:[#allocation138_spill] sm:$0xff] %v4101_v0  ;;  %v4286_v0 = vld [vmem:[%s3554_s12 + $0x2b8] sm:$0xff] }
 0x218   : > { %5802 = vst [vmem:[#allocation139_spill] sm:$0xff] %v4104_v6  ;;  %v4225_v6 = vld [vmem:[%s3548_s27 + $0x2b0] sm:$0xff] }
 0x219   : > { %5803 = vst [vmem:[#allocation140_spill] sm:$0xff] %v4107_v15  ;;  %v4263_v15 = vld [vmem:[%s3554_s12 + $0x298] sm:$0xff] }
 0x21a   : > { %5804 = vst [vmem:[#allocation141_spill] sm:$0xff] %v4110_v14  ;;  %v4237_v14 = vld [vmem:[%s3554_s12 + $0x288] sm:$0xff] }
 0x21b   : > { %5805 = vst [vmem:[#allocation142_spill] sm:$0xff] %v4130_v12  ;;  %v4257_v12 = vld [vmem:[%s3548_s27 + $0x2d0] sm:$0xff] }
 0x21c   : > { %5806 = vst [vmem:[#allocation143_spill] sm:$0xff] %v4133_v29  ;;  %v4251_v29 = vand.u32 2147483647, %v5816_v62  ;;  %v4329_v62 = vld [vmem:[%s3554_s12 + $0x2e0] sm:$0xff] }
 0x21d   : > { %5807 = vst [vmem:[#allocation144_spill] sm:$0xff] %v4136_v2  ;;  %v5823_v2 = vsub.f32 %v3588_v35, %v3597_v38  ;;  %v5827_v38 = vsub.f32 %v3591_v36, %v3600_v39  ;;  %v5832_v39 = vsub.f32 %v3603_v40, %v3615_v44  ;;  %v5837_v44 = vsub.f32 %v3606_v41, %v3618_v45  ;;  %v5842_v41 = vld [vmem:[#allocation27_spill] sm:$0xff]  ;;  %v5843_v45 = vld [vmem:[#allocation29_spill] sm:$0xff] }
 0x21e   : > { %5808 = vst [vmem:[#allocation145_spill] sm:$0xff] %v4159_v27  ;;  %v4269_v27 = vld [vmem:[%s3554_s12 + $0x2a8] sm:$0xff]  ;;  %v4372_v35 = vld [vmem:[%s3554_s12 + $0x300] sm:$0xff]  ;;  %v4412_v36 = vld [vmem:[%s3554_s12 + $0x310] sm:$0xff] }
 0x21f   : > { %5809 = vst [vmem:[#allocation146_spill] sm:$0xff] %v4162_v23  ;;  %v4283_v23 = vld [vmem:[%s3554_s12 + $0x2b0] sm:$0xff] }
 0x220   : > { %5810 = vst [vmem:[#allocation147_spill] sm:$0xff] %v4179_v43  ;;  %v4349_v43 = vld [vmem:[%s3554_s12 + $0x2e8] sm:$0xff] }
 0x221   : > { %5811 = vst [vmem:[#allocation148_spill] sm:$0xff] %v4188_v28  ;;  %v4309_v28 = vld [vmem:[%s3554_s12 + $0x2d8] sm:$0xff] }
 0x222   : > { %5812 = vst [vmem:[#allocation149_spill] sm:$0xff] %v4205_v58  ;;  %v4366_v58 = vld [vmem:[%s3554_s12 + $0x2f0] sm:$0xff] }
 0x223   : > { %5813 = vst [vmem:[#allocation150_spill] sm:$0xff] %v4228_v54 }
 0x224   : > { %5814 = vst [vmem:[#allocation151_spill] sm:$0xff] %v4231_v4  ;;  %v4386_v4 = vld [vmem:[%s3548_s27 + $0x308] sm:$0xff] }
 0x225   : > { %5815 = vst [vmem:[#allocation152_spill] sm:$0xff] %v4240_v51  ;;  %v4346_v51 = vld [vmem:[%s3548_s27 + $0x2f8] sm:$0xff] }
 0x226   : > { %5817 = vst [vmem:[#allocation153_spill] sm:$0xff] %v4251_v29  ;;  %v4280_v29 = vand.u32 2147483647, %v5823_v2  ;;  %v4300_v2 = vand.u32 2147483647, %v5827_v38 }
 0x227   : > { %5818 = vst [vmem:[#allocation154_spill] sm:$0xff] %v4254_v57  ;;  %v4320_v38 = vand.u32 2147483647, %v5832_v39  ;;  %v4340_v39 = vand.u32 2147483647, %v5837_v44  ;;  %v5844_v44 = vsub.f32 %v5842_v41, %v5843_v45  ;;  %v5849_v45 = vld [vmem:[#allocation28_spill] sm:$0xff] }
 0x228   : > { %5819 = vst [vmem:[#allocation155_spill] sm:$0xff] %v4257_v12  ;;  %v5855_v57 = vld [vmem:[#allocation35_spill] sm:$0xff]  ;;  %v5859_v41 = vld [vmem:[#allocation36_spill] sm:$0xff] }
 0x229   : > { %5820 = vst [vmem:[#allocation156_spill] sm:$0xff] %v4260_v56  ;;  %v4409_v12 = vld [vmem:[%s3548_s27 + $0x310] sm:$0xff] }
 0x22a   : > { %5821 = vst [vmem:[#allocation157_spill] sm:$0xff] %v4266_v59  ;;  %v4369_v59 = vld [vmem:[%s3554_s12 + $0x2f8] sm:$0xff] }
 0x22b   : > { %5822 = vst [vmem:[#allocation158_spill] sm:$0xff] %v4269_v27  ;;  %v4363_v27 = vld [vmem:[%s3548_s27 + $0x300] sm:$0xff] }
 0x22c   : > { %5824 = vst [vmem:[#allocation159_spill] sm:$0xff] %v4280_v29  ;;  %v4306_v29 = vld [vmem:[%s3554_s12 + $0x2d0] sm:$0xff] }
 0x22d   : > { %5825 = vst [vmem:[#allocation160_spill] sm:$0xff] %v4286_v0  ;;  %v4389_v0 = vld [vmem:[%s3554_s12 + $0x308] sm:$0xff] }
 0x22e   : > { %5826 = vst [vmem:[#allocation161_spill] sm:$0xff] %v4289_v13 }
 0x22f   : > { %5828 = vst [vmem:[#allocation162_spill] sm:$0xff] %v4300_v2  ;;  %v4326_v2 = vld [vmem:[%s3548_s27 + $0x2e8] sm:$0xff] }
 0x230   : > { %5829 = vst [vmem:[#allocation163_spill] sm:$0xff] %v4303_v34  ;;  %v5854_v34 = vld [vmem:[#allocation31_spill] sm:$0xff] }
 0x231   : > { %5830 = vst [vmem:[#allocation164_spill] sm:$0xff] %v4306_v29  ;;  %v5856_v54 = vsub.f32 %v5854_v34, %v5855_v57  ;;  %v5858_v29 = vld [vmem:[#allocation32_spill] sm:$0xff]  ;;  %v5869_v34 = vld [vmem:[#allocation38_spill] sm:$0xff] }
 0x232   : > { %5831 = vst [vmem:[#allocation165_spill] sm:$0xff] %v4309_v28  ;;  %v5860_v28 = vsub.f32 %v5858_v29, %v5859_v41  ;;  %v5873_v41 = vld [vmem:[#allocation43_spill] sm:$0xff] }
 0x233   : > { %5833 = vst [vmem:[#allocation166_spill] sm:$0xff] %v4320_v38  ;;  %v4343_v38 = vld [vmem:[%s3548_s27 + $0x2f0] sm:$0xff]  ;;  %v4396_v40 = vand.u32 2147483647, %v5856_v54  ;;  %v5868_v54 = vld [vmem:[#allocation34_spill] sm:$0xff]  ;;  %v4435_v57 = vld [vmem:[%s3554_s12 + $0x318] sm:$0xff] }
 0x234   : > { %5834 = vst [vmem:[#allocation167_spill] sm:$0xff] %v4323_v37  ;;  %v4432_v37 = vld [vmem:[%s3548_s27 + $0x318] sm:$0xff] }
 0x235   : > { %5835 = vst [vmem:[#allocation168_spill] sm:$0xff] %v4326_v2  ;;  %v4455_v2 = vld [vmem:[%s3548_s27 + $0x320] sm:$0xff] }
 0x236   : > { %5836 = vst [vmem:[#allocation169_spill] sm:$0xff] %v4329_v62 }
 0x237   : > { %5838 = vst [vmem:[#allocation170_spill] sm:$0xff] %v4340_v39  ;;  %v4360_v39 = vand.u32 2147483647, %v5844_v44  ;;  %v5850_v44 = vld [vmem:[#allocation30_spill] sm:$0xff] }
 0x238   : > { %5839 = vst [vmem:[#allocation171_spill] sm:$0xff] %v4343_v38  ;;  %v4478_v38 = vld [vmem:[%s3548_s27 + $0x328] sm:$0xff] }
 0x239   : > { %5840 = vst [vmem:[#allocation172_spill] sm:$0xff] %v4346_v51  ;;  %v4501_v51 = vld [vmem:[%s3548_s27 + $0x330] sm:$0xff] }
 0x23a   : > { %5841 = vst [vmem:[#allocation173_spill] sm:$0xff] %v4349_v43 }
 0x23b   : > { %5845 = vst [vmem:[#allocation27_spill] sm:$0xff] %v4360_v39  ;;  %v5851_v39 = vsub.f32 %v5849_v45, %v5850_v44  ;;  %v4401_v45 = vand.u32 2147483647, %v5860_v28  ;;  %v5863_v44 = vld [vmem:[#allocation37_spill] sm:$0xff]  ;;  %v5872_v28 = vld [vmem:[#allocation39_spill] sm:$0xff] }
 0x23c   : > { %5846 = vst [vmem:[#allocation29_spill] sm:$0xff] %v4366_v58 }
 0x23d   : > { %5847 = vst [vmem:[#allocation174_spill] sm:$0xff] %v4369_v59  ;;  %v4383_v13 = vand.u32 2147483647, %v5851_v39  ;;  %v5862_v39 = vld [vmem:[#allocation33_spill] sm:$0xff] }
 0x23e   : > { %5848 = vst [vmem:[#allocation175_spill] sm:$0xff] %v4372_v35  ;;  %v4524_v35 = vld [vmem:[%s3548_s27 + $0x338] sm:$0xff] }
 0x23f   : > { %5852 = vst [vmem:[#allocation28_spill] sm:$0xff] %v4383_v13  ;;  %v5864_v13 = vsub.f32 %v5862_v39, %v5863_v44  ;;  %v5877_v44 = vld [vmem:[#allocation44_spill] sm:$0xff] }
 0x240   : > { %5853 = vst [vmem:[#allocation30_spill] sm:$0xff] %v4389_v0  ;;  %v4547_v0 = vld [vmem:[%s3548_s27 + $0x340] sm:$0xff] }
 0x241   : > { %5857 = vst [vmem:[#allocation31_spill] sm:$0xff] %v4396_v40  ;;  %v4406_v56 = vand.u32 2147483647, %v5864_v13  ;;  %v5870_v40 = vsub.f32 %v5868_v54, %v5869_v34  ;;  %v5876_v13 = vld [vmem:[#allocation40_spill] sm:$0xff]  ;;  %v5882_v34 = vld [vmem:[#allocation45_spill] sm:$0xff] }
 0x242   : > { %5861 = vst [vmem:[#allocation35_spill] sm:$0xff] %v4401_v45  ;;  %v5874_v45 = vsub.f32 %v5872_v28, %v5873_v41  ;;  %v5886_v41 = vld [vmem:[#allocation46_spill] sm:$0xff]  ;;  %v4458_v54 = vld [vmem:[%s3554_s12 + $0x320] sm:$0xff] }
 0x243   : > { %5865 = vst [vmem:[#allocation32_spill] sm:$0xff] %v4406_v56  ;;  %v4419_v29 = vand.u32 2147483647, %v5870_v40  ;;  %v5878_v56 = vsub.f32 %v5876_v13, %v5877_v44  ;;  %v5881_v40 = vld [vmem:[#allocation41_spill] sm:$0xff]  ;;  %v5890_v44 = vld [vmem:[#allocation51_spill] sm:$0xff] }
 0x244   : > { %5866 = vst [vmem:[#allocation36_spill] sm:$0xff] %v4409_v12  ;;  %v4424_v39 = vand.u32 2147483647, %v5874_v45  ;;  %v5885_v45 = vld [vmem:[#allocation42_spill] sm:$0xff]  ;;  %v4570_v12 = vld [vmem:[%s3548_s27 + $0x348] sm:$0xff] }
 0x245   : > { %5867 = vst [vmem:[#allocation33_spill] sm:$0xff] %v4412_v36  ;;  %v4429_v62 = vand.u32 2147483647, %v5878_v56  ;;  %v5889_v56 = vld [vmem:[#allocation47_spill] sm:$0xff] }
 0x246   : > { %5871 = vst [vmem:[#allocation37_spill] sm:$0xff] %v4419_v29  ;;  %v5883_v29 = vsub.f32 %v5881_v40, %v5882_v34  ;;  %v5895_v34 = vld [vmem:[#allocation52_spill] sm:$0xff]  ;;  %v4481_v40 = vld [vmem:[%s3554_s12 + $0x328] sm:$0xff] }
 0x247   : > { %5875 = vst [vmem:[#allocation34_spill] sm:$0xff] %v4424_v39  ;;  %v5887_v39 = vsub.f32 %v5885_v45, %v5886_v41  ;;  %v5899_v41 = vld [vmem:[#allocation53_spill] sm:$0xff] }
 0x248   : > { %5879 = vst [vmem:[#allocation38_spill] sm:$0xff] %v4429_v62  ;;  %v4442_v28 = vand.u32 2147483647, %v5883_v29  ;;  %v5891_v62 = vsub.f32 %v5889_v56, %v5890_v44  ;;  %v5894_v29 = vld [vmem:[#allocation48_spill] sm:$0xff]  ;;  %v5903_v44 = vld [vmem:[#allocation54_spill] sm:$0xff] }
 0x249   : > { %5880 = vst [vmem:[#allocation39_spill] sm:$0xff] %v4435_v57  ;;  %v4447_v13 = vand.u32 2147483647, %v5887_v39  ;;  %v5898_v39 = vld [vmem:[#allocation49_spill] sm:$0xff] }
 0x24a   : > { %5884 = vst [vmem:[#allocation43_spill] sm:$0xff] %v4442_v28  ;;  %v4452_v43 = vand.u32 2147483647, %v5891_v62  ;;  %v5896_v28 = vsub.f32 %v5894_v29, %v5895_v34  ;;  %v5902_v62 = vld [vmem:[#allocation50_spill] sm:$0xff]  ;;  %v5909_v34 = vld [vmem:[#allocation59_spill] sm:$0xff]  ;;  %v4593_v57 = vld [vmem:[%s3548_s27 + $0x350] sm:$0xff] }
 0x24b   : > { %5888 = vst [vmem:[#allocation40_spill] sm:$0xff] %v4447_v13  ;;  %v5900_v13 = vsub.f32 %v5898_v39, %v5899_v41  ;;  %v5913_v41 = vld [vmem:[#allocation60_spill] sm:$0xff]  ;;  %v4504_v29 = vld [vmem:[%s3554_s12 + $0x330] sm:$0xff] }
 0x24c   : > { %5892 = vst [vmem:[#allocation44_spill] sm:$0xff] %v4452_v43  ;;  %v4465_v45 = vand.u32 2147483647, %v5896_v28  ;;  %v5904_v43 = vsub.f32 %v5902_v62, %v5903_v44  ;;  %v5908_v28 = vld [vmem:[#allocation55_spill] sm:$0xff]  ;;  %v5917_v44 = vld [vmem:[#allocation61_spill] sm:$0xff] }
 0x24d   : > { %5893 = vst [vmem:[#allocation41_spill] sm:$0xff] %v4458_v54  ;;  %v4470_v56 = vand.u32 2147483647, %v5900_v13  ;;  %v5912_v13 = vld [vmem:[#allocation56_spill] sm:$0xff]  ;;  %v4616_v54 = vld [vmem:[%s3548_s27 + $0x358] sm:$0xff] }
 0x24e   : > { %5897 = vst [vmem:[#allocation45_spill] sm:$0xff] %v4465_v45  ;;  %v4475_v58 = vand.u32 2147483647, %v5904_v43  ;;  %v5910_v45 = vsub.f32 %v5908_v28, %v5909_v34  ;;  %v5916_v43 = vld [vmem:[#allocation57_spill] sm:$0xff]  ;;  %v5923_v34 = vld [vmem:[#allocation62_spill] sm:$0xff]  ;;  %v4527_v28 = vld [vmem:[%s3554_s12 + $0x338] sm:$0xff] }
 0x24f   : > { %5901 = vst [vmem:[#allocation42_spill] sm:$0xff] %v4470_v56  ;;  %v5914_v56 = vsub.f32 %v5912_v13, %v5913_v41 }
 0x250   : > { %5905 = vst [vmem:[#allocation46_spill] sm:$0xff] %v4475_v58  ;;  %v4488_v39 = vand.u32 2147483647, %v5910_v45  ;;  %v5918_v58 = vsub.f32 %v5916_v43, %v5917_v44  ;;  %v5922_v45 = vld [vmem:[#allocation58_spill] sm:$0xff]  ;;  %v5930_v44 = vld [vmem:[#allocation67_spill] sm:$0xff] }
 0x251   : > { %5906 = vst [vmem:[#allocation47_spill] sm:$0xff] %v4478_v38  ;;  %v4493_v62 = vand.u32 2147483647, %v5914_v56  ;;  %v5926_v56 = vld [vmem:[#allocation66_spill] sm:$0xff] }
 0x252   : > { %5907 = vst [vmem:[#allocation51_spill] sm:$0xff] %v4481_v40  ;;  %v4498_v59 = vand.u32 2147483647, %v5918_v58  ;;  %v5927_v41 = vsub.f32 %v3729_v19, %v5926_v56  ;;  %v5929_v58 = vld [vmem:[#allocation63_spill] sm:$0xff]  ;;  %v5938_v56 = vld [vmem:[#allocation65_spill] sm:$0xff] }
 0x253   : > { %5911 = vst [vmem:[#allocation48_spill] sm:$0xff] %v4488_v39  ;;  %v5924_v39 = vsub.f32 %v5922_v45, %v5923_v34  ;;  %v5935_v34 = vld [vmem:[#allocation68_spill] sm:$0xff]  ;;  %v4639_v38 = vld [vmem:[%s3548_s27 + $0x360] sm:$0xff] }
 0x254   : > { %5915 = vst [vmem:[#allocation52_spill] sm:$0xff] %v4493_v62  ;;  %v4516_v43 = vand.u32 2147483647, %v5927_v41  ;;  %v5939_v41 = vld [vmem:[#allocation69_spill] sm:$0xff] }
 0x255   : > { %5919 = vst [vmem:[#allocation49_spill] sm:$0xff] %v4498_v59  ;;  %v4511_v13 = vand.u32 2147483647, %v5924_v39  ;;  %v5931_v59 = vsub.f32 %v5929_v58, %v5930_v44  ;;  %v5934_v39 = vld [vmem:[#allocation64_spill] sm:$0xff] }
 0x256   : > { %5920 = vst [vmem:[#allocation53_spill] sm:$0xff] %v4501_v51  ;;  %v4550_v45 = vld [vmem:[%s3554_s12 + $0x340] sm:$0xff]  ;;  %v4662_v51 = vld [vmem:[%s3548_s27 + $0x368] sm:$0xff] }
 0x257   : > { %5921 = vst [vmem:[#allocation50_spill] sm:$0xff] %v4504_v29  ;;  %v4521_v62 = vand.u32 2147483647, %v5931_v59  ;;  %v5942_v59 = vld [vmem:[#allocation73_spill] sm:$0xff] }
 0x258   : > { %5925 = vst [vmem:[#allocation54_spill] sm:$0xff] %v4511_v13  ;;  %v5936_v13 = vsub.f32 %v5934_v39, %v5935_v34  ;;  %v5943_v44 = vsub.f32 %v3761_v31, %v5942_v59  ;;  %v5946_v34 = vld [vmem:[#allocation74_spill] sm:$0xff]  ;;  %v5953_v59 = vld [vmem:[#allocation72_spill] sm:$0xff] }
 0x259   : > { %5928 = vst [vmem:[#allocation55_spill] sm:$0xff] %v4516_v43  ;;  %v5940_v43 = vsub.f32 %v5938_v56, %v5939_v41  ;;  %v5950_v41 = vld [vmem:[#allocation75_spill] sm:$0xff]  ;;  %v4573_v39 = vld [vmem:[%s3554_s12 + $0x348] sm:$0xff] }
 0x25a   : > { %5932 = vst [vmem:[#allocation59_spill] sm:$0xff] %v4521_v62  ;;  %v4534_v19 = vand.u32 2147483647, %v5936_v13  ;;  %v4544_v62 = vand.u32 2147483647, %v5943_v44  ;;  %v5945_v13 = vld [vmem:[#allocation70_spill] sm:$0xff] }
 0x25b   : > { %5933 = vst [vmem:[#allocation56_spill] sm:$0xff] %v4527_v28  ;;  %v4539_v58 = vand.u32 2147483647, %v5940_v43  ;;  %v5949_v43 = vld [vmem:[#allocation71_spill] sm:$0xff]  ;;  %v5954_v44 = vld [vmem:[#allocation76_spill] sm:$0xff] }
 0x25c   : > { %5937 = vst [vmem:[#allocation60_spill] sm:$0xff] %v4534_v19  ;;  %v5947_v19 = vsub.f32 %v5945_v13, %v5946_v34  ;;  %v4596_v13 = vld [vmem:[%s3554_s12 + $0x350] sm:$0xff]  ;;  %v4685_v28 = vld [vmem:[%s3548_s27 + $0x370] sm:$0xff] }
 0x25d   : > { %5941 = vst [vmem:[#allocation57_spill] sm:$0xff] %v4539_v58  ;;  %v5951_v58 = vsub.f32 %v5949_v43, %v5950_v41  ;;  %v5962_v41 = vld [vmem:[#allocation81_spill] sm:$0xff] }
 0x25e   : > { %5944 = vst [vmem:[#allocation61_spill] sm:$0xff] %v4544_v62  ;;  %v4557_v56 = vand.u32 2147483647, %v5947_v19  ;;  %v5955_v62 = vsub.f32 %v5953_v59, %v5954_v44  ;;  %v5958_v19 = vld [vmem:[#allocation80_spill] sm:$0xff]  ;;  %v5966_v44 = vld [vmem:[#allocation82_spill] sm:$0xff] }
 0x25f   : > { %v4562_v31 = vand.u32 2147483647, %v5951_v58  ;;  %5957 = vst [vmem:[#allocation63_spill] sm:$0xff] %v4573_v39  ;;  %v5959_v34 = vsub.f32 %v3793_v46, %v5958_v19  ;;  %v5961_v58 = vld [vmem:[#allocation77_spill] sm:$0xff]  ;;  %v5970_v19 = vld [vmem:[#allocation79_spill] sm:$0xff] }
 0x260   : > { %5948 = vst [vmem:[#allocation58_spill] sm:$0xff] %v4557_v56  ;;  %v4567_v36 = vand.u32 2147483647, %v5955_v62  ;;  %v5965_v62 = vld [vmem:[#allocation78_spill] sm:$0xff]  ;;  %v4619_v46 = vld [vmem:[%s3554_s12 + $0x358] sm:$0xff] }
 0x261   : > { %5952 = vst [vmem:[#allocation62_spill] sm:$0xff] %v4562_v31  ;;  %v4580_v43 = vand.u32 2147483647, %v5959_v34  ;;  %v5963_v31 = vsub.f32 %v5961_v58, %v5962_v41  ;;  %v5971_v34 = vld [vmem:[#allocation83_spill] sm:$0xff] }
 0x262   : > { %5956 = vst [vmem:[#allocation66_spill] sm:$0xff] %v4567_v36  ;;  %v5967_v36 = vsub.f32 %v5965_v62, %v5966_v44  ;;  %v5978_v44 = vld [vmem:[#allocation88_spill] sm:$0xff]  ;;  %v4731_v39 = vld [vmem:[%s3548_s27 + $0x380] sm:$0xff] }
 0x263   : > { %5960 = vst [vmem:[#allocation67_spill] sm:$0xff] %v4580_v43  ;;  %v4585_v59 = vand.u32 2147483647, %v5963_v31  ;;  %v5972_v43 = vsub.f32 %v5970_v19, %v5971_v34  ;;  %v5974_v31 = vld [vmem:[#allocation87_spill] sm:$0xff]  ;;  %v5982_v34 = vld [vmem:[#allocation89_spill] sm:$0xff] }
 0x264   : > { %v4590_v56 = vand.u32 2147483647, %v5967_v36  ;;  %5969 = vst [vmem:[#allocation65_spill] sm:$0xff] %v4596_v13  ;;  %v5975_v41 = vsub.f32 %v3825_v49, %v5974_v31  ;;  %v5977_v36 = vld [vmem:[#allocation84_spill] sm:$0xff]  ;;  %v5985_v31 = vld [vmem:[#allocation86_spill] sm:$0xff] }
 0x265   : > { %5964 = vst [vmem:[#allocation64_spill] sm:$0xff] %v4585_v59  ;;  %v4603_v58 = vand.u32 2147483647, %v5972_v43  ;;  %v5981_v43 = vld [vmem:[#allocation85_spill] sm:$0xff]  ;;  %v4754_v13 = vld [vmem:[%s3548_s27 + $0x388] sm:$0xff] }
 0x266   : > { %5968 = vst [vmem:[#allocation68_spill] sm:$0xff] %v4590_v56  ;;  %v4608_v62 = vand.u32 2147483647, %v5975_v41  ;;  %v5979_v56 = vsub.f32 %v5977_v36, %v5978_v44  ;;  %v5986_v41 = vld [vmem:[#allocation90_spill] sm:$0xff]  ;;  %v5990_v44 = vld [vmem:[#allocation95_spill] sm:$0xff]  ;;  %v4642_v19 = vld [vmem:[%s3554_s12 + $0x360] sm:$0xff] }
 0x267   : > { %5973 = vst [vmem:[#allocation69_spill] sm:$0xff] %v4603_v58  ;;  %v5983_v58 = vsub.f32 %v5981_v43, %v5982_v34  ;;  %v5994_v34 = vld [vmem:[#allocation96_spill] sm:$0xff]  ;;  %v4665_v43 = vld [vmem:[%s3554_s12 + $0x368] sm:$0xff] }
 0x268   : > { %5976 = vst [vmem:[#allocation73_spill] sm:$0xff] %v4608_v62  ;;  %v4613_v59 = vand.u32 2147483647, %v5979_v56  ;;  %v5987_v62 = vsub.f32 %v5985_v31, %v5986_v41  ;;  %v5989_v56 = vld [vmem:[#allocation91_spill] sm:$0xff]  ;;  %v5998_v41 = vld [vmem:[#allocation97_spill] sm:$0xff] }
 0x269   : > { %v4626_v49 = vand.u32 2147483647, %v5983_v58  ;;  %v5993_v58 = vld [vmem:[#allocation92_spill] sm:$0xff]  ;;  %6005 = vst [vmem:[#allocation77_spill] sm:$0xff] %v4665_v43  ;;  %v4823_v43 = vld [vmem:[%s3548_s27 + $0x3a0] sm:$0xff] }
 0x26a   : > { %5980 = vst [vmem:[#allocation70_spill] sm:$0xff] %v4613_v59  ;;  %v4631_v36 = vand.u32 2147483647, %v5987_v62  ;;  %v5991_v59 = vsub.f32 %v5989_v56, %v5990_v44  ;;  %v5997_v62 = vld [vmem:[#allocation93_spill] sm:$0xff]  ;;  %v6002_v44 = vld [vmem:[#allocation98_spill] sm:$0xff] }
 0x26b   : > { %5984 = vst [vmem:[#allocation74_spill] sm:$0xff] %v4626_v49  ;;  %v5995_v49 = vsub.f32 %v5993_v58, %v5994_v34  ;;  %v4688_v58 = vld [vmem:[%s3554_s12 + $0x370] sm:$0xff] }
 0x26c   : > { %5988 = vst [vmem:[#allocation71_spill] sm:$0xff] %v4631_v36  ;;  %v4636_v40 = vand.u32 2147483647, %v5991_v59  ;;  %v5999_v36 = vsub.f32 %v5997_v62, %v5998_v41  ;;  %v6001_v59 = vld [vmem:[#allocation94_spill] sm:$0xff]  ;;  %v6010_v41 = vld [vmem:[#allocation103_spill] sm:$0xff] }
 0x26d   : > { %v4649_v31 = vand.u32 2147483647, %v5995_v49  ;;  %v6006_v49 = vld [vmem:[#allocation102_spill] sm:$0xff]  ;;  %6017 = vst [vmem:[#allocation79_spill] sm:$0xff] %v4688_v58  ;;  %v4846_v58 = vld [vmem:[%s3548_s27 + $0x3a8] sm:$0xff] }
 0x26e   : > { %5992 = vst [vmem:[#allocation75_spill] sm:$0xff] %v4636_v40  ;;  %v4654_v56 = vand.u32 2147483647, %v5999_v36  ;;  %v6003_v40 = vsub.f32 %v6001_v59, %v6002_v44  ;;  %v6007_v34 = vsub.f32 %v3889_v1, %v6006_v49  ;;  %v6009_v36 = vld [vmem:[#allocation99_spill] sm:$0xff]  ;;  %v6014_v44 = vld [vmem:[#allocation104_spill] sm:$0xff]  ;;  %v6018_v49 = vld [vmem:[#allocation101_spill] sm:$0xff] }
 0x26f   : > { %5996 = vst [vmem:[#allocation72_spill] sm:$0xff] %v4649_v31  ;;  %v4711_v1 = vld [vmem:[%s3554_s12 + $0x378] sm:$0xff] }
 0x270   : > { %6000 = vst [vmem:[#allocation76_spill] sm:$0xff] %v4654_v56  ;;  %v4659_v29 = vand.u32 2147483647, %v6003_v40  ;;  %v4672_v62 = vand.u32 2147483647, %v6007_v34  ;;  %v6011_v56 = vsub.f32 %v6009_v36, %v6010_v41  ;;  %v6013_v40 = vld [vmem:[#allocation100_spill] sm:$0xff] }
 0x271   : > { %v6019_v34 = vld [vmem:[#allocation105_spill] sm:$0xff]  ;;  %6028 = vst [vmem:[#allocation88_spill] sm:$0xff] %v4711_v1 }
 0x272   : > { %6004 = vst [vmem:[#allocation80_spill] sm:$0xff] %v4659_v29  ;;  %v4677_v59 = vand.u32 2147483647, %v6011_v56  ;;  %v6015_v29 = vsub.f32 %v6013_v40, %v6014_v44  ;;  %v6022_v56 = vld [vmem:[#allocation108_spill] sm:$0xff] }
 0x273   : > { %6008 = vst [vmem:[#allocation81_spill] sm:$0xff] %v4672_v62  ;;  %v6020_v62 = vsub.f32 %v6018_v49, %v6019_v34  ;;  %v6023_v41 = vsub.f32 %v3921_v9, %v6022_v56  ;;  %v6030_v34 = vld [vmem:[#allocation110_spill] sm:$0xff]  ;;  %v6033_v56 = vld [vmem:[#allocation107_spill] sm:$0xff]  ;;  %v4734_v49 = vld [vmem:[%s3554_s12 + $0x380] sm:$0xff] }
 0x274   : > { %6012 = vst [vmem:[#allocation78_spill] sm:$0xff] %v4677_v59  ;;  %v4682_v31 = vand.u32 2147483647, %v6015_v29  ;;  %v6025_v29 = vld [vmem:[#allocation109_spill] sm:$0xff] }
 0x275   : > { %v4695_v36 = vand.u32 2147483647, %v6020_v62  ;;  %v4700_v40 = vand.u32 2147483647, %v6023_v41  ;;  %v6026_v44 = vsub.f32 %v3924_v8, %v6025_v29  ;;  %v4708_v59 = vld [vmem:[%s3548_s27 + $0x378] sm:$0xff]  ;;  %v4869_v1 = vld [vmem:[%s3548_s27 + $0x3b0] sm:$0xff] }
 0x276   : > { %6016 = vst [vmem:[#allocation82_spill] sm:$0xff] %v4682_v31  ;;  %v6029_v62 = vld [vmem:[#allocation106_spill] sm:$0xff]  ;;  %v6034_v41 = vld [vmem:[#allocation113_spill] sm:$0xff] }
 0x277   : > { %6021 = vst [vmem:[#allocation83_spill] sm:$0xff] %v4695_v36  ;;  %v4705_v31 = vand.u32 2147483647, %v6026_v44  ;;  %v6031_v36 = vsub.f32 %v6029_v62, %v6030_v34  ;;  %v6037_v29 = vld [vmem:[#allocation114_spill] sm:$0xff] }
 0x278   : > { %6024 = vst [vmem:[#allocation87_spill] sm:$0xff] %v4700_v40  ;;  %v6035_v40 = vsub.f32 %v6033_v56, %v6034_v41  ;;  %v6038_v44 = vsub.f32 %v3950_v21, %v6037_v29  ;;  %v6044_v41 = vld [vmem:[#allocation118_spill] sm:$0xff]  ;;  %v6047_v29 = vld [vmem:[#allocation112_spill] sm:$0xff] }
 0x279   : > { %6027 = vst [vmem:[#allocation84_spill] sm:$0xff] %v4705_v31  ;;  %v4718_v9 = vand.u32 2147483647, %v6031_v36  ;;  %v6040_v36 = vld [vmem:[#allocation115_spill] sm:$0xff]  ;;  %v4757_v62 = vld [vmem:[%s3554_s12 + $0x388] sm:$0xff] }
 0x27a   : > { %v4723_v8 = vand.u32 2147483647, %v6035_v40  ;;  %v4728_v31 = vand.u32 2147483647, %v6038_v44  ;;  %v6041_v34 = vsub.f32 %v3953_v20, %v6040_v36  ;;  %v6043_v40 = vld [vmem:[#allocation111_spill] sm:$0xff]  ;;  %v6051_v36 = vld [vmem:[#allocation120_spill] sm:$0xff] }
 0x27b   : > { %6032 = vst [vmem:[#allocation85_spill] sm:$0xff] %v4718_v9  ;;  %v6048_v44 = vld [vmem:[#allocation119_spill] sm:$0xff] }
 0x27c   : > { %6036 = vst [vmem:[#allocation89_spill] sm:$0xff] %v4723_v8  ;;  %v4741_v56 = vand.u32 2147483647, %v6041_v34  ;;  %v6045_v8 = vsub.f32 %v6043_v40, %v6044_v41  ;;  %v6052_v34 = vsub.f32 %v3979_v33, %v6051_v36  ;;  %v4780_v20 = vld [vmem:[%s3554_s12 + $0x390] sm:$0xff]  ;;  %v6061_v36 = vld [vmem:[#allocation117_spill] sm:$0xff]  ;;  %v4803_v33 = vld [vmem:[%s3554_s12 + $0x398] sm:$0xff] }
 0x27d   : > { %6039 = vst [vmem:[#allocation86_spill] sm:$0xff] %v4728_v31  ;;  %v6049_v31 = vsub.f32 %v6047_v29, %v6048_v44  ;;  %v6058_v44 = vld [vmem:[#allocation124_spill] sm:$0xff] }
 0x27e   : > { %6042 = vst [vmem:[#allocation90_spill] sm:$0xff] %v4741_v56  ;;  %v4746_v21 = vand.u32 2147483647, %v6045_v8  ;;  %v4764_v40 = vand.u32 2147483647, %v6052_v34  ;;  %v6054_v8 = vld [vmem:[#allocation123_spill] sm:$0xff] }
 0x27f   : > { %v4751_v9 = vand.u32 2147483647, %v6049_v31  ;;  %v6055_v41 = vsub.f32 %v3982_v32, %v6054_v8  ;;  %v6057_v31 = vld [vmem:[#allocation116_spill] sm:$0xff]  ;;  %v6062_v34 = vld [vmem:[#allocation125_spill] sm:$0xff] }
 0x280   : > { %6046 = vst [vmem:[#allocation91_spill] sm:$0xff] %v4746_v21  ;;  %v4777_v56 = vld [vmem:[%s3548_s27 + $0x390] sm:$0xff] }
 0x281   : > { %6050 = vst [vmem:[#allocation95_spill] sm:$0xff] %v4751_v9  ;;  %v4769_v29 = vand.u32 2147483647, %v6055_v41  ;;  %v6059_v9 = vsub.f32 %v6057_v31, %v6058_v44  ;;  %v6065_v8 = vld [vmem:[#allocation128_spill] sm:$0xff] }
 0x282   : > { %6053 = vst [vmem:[#allocation92_spill] sm:$0xff] %v4764_v40  ;;  %v6063_v40 = vsub.f32 %v6061_v36, %v6062_v34  ;;  %v6066_v41 = vsub.f32 %v4008_v17, %v6065_v8  ;;  %v6072_v34 = vld [vmem:[#allocation130_spill] sm:$0xff]  ;;  %v4826_v36 = vld [vmem:[%s3554_s12 + $0x3a0] sm:$0xff] }
 0x283   : > { %6056 = vst [vmem:[#allocation96_spill] sm:$0xff] %v4769_v29  ;;  %v4774_v21 = vand.u32 2147483647, %v6059_v9  ;;  %v6068_v9 = vld [vmem:[#allocation129_spill] sm:$0xff]  ;;  %v6075_v8 = vld [vmem:[#allocation122_spill] sm:$0xff] }
 0x284   : > { %v4787_v32 = vand.u32 2147483647, %v6063_v40  ;;  %v4792_v31 = vand.u32 2147483647, %v6066_v41  ;;  %v6069_v44 = vsub.f32 %v4011_v42, %v6068_v9  ;;  %v4800_v29 = vld [vmem:[%s3548_s27 + $0x398] sm:$0xff]  ;;  %v6079_v9 = vld [vmem:[#allocation135_spill] sm:$0xff] }
 0x285   : > { %6060 = vst [vmem:[#allocation93_spill] sm:$0xff] %v4774_v21  ;;  %v6071_v40 = vld [vmem:[#allocation121_spill] sm:$0xff]  ;;  %v6076_v41 = vld [vmem:[#allocation134_spill] sm:$0xff] }
 0x286   : > { %6064 = vst [vmem:[#allocation97_spill] sm:$0xff] %v4787_v32  ;;  %v4797_v21 = vand.u32 2147483647, %v6069_v44  ;;  %v6073_v32 = vsub.f32 %v6071_v40, %v6072_v34  ;;  %v6080_v44 = vsub.f32 %v4037_v55, %v6079_v9  ;;  %v6089_v9 = vld [vmem:[#allocation127_spill] sm:$0xff]  ;;  %v4849_v40 = vld [vmem:[%s3554_s12 + $0x3a8] sm:$0xff] }
 0x287   : > { %6067 = vst [vmem:[#allocation94_spill] sm:$0xff] %v4792_v31  ;;  %v6077_v31 = vsub.f32 %v6075_v8, %v6076_v41  ;;  %v6086_v41 = vld [vmem:[#allocation139_spill] sm:$0xff] }
 0x288   : > { %6070 = vst [vmem:[#allocation98_spill] sm:$0xff] %v4797_v21  ;;  %v4810_v17 = vand.u32 2147483647, %v6073_v32  ;;  %v4820_v21 = vand.u32 2147483647, %v6080_v44  ;;  %v6082_v32 = vld [vmem:[#allocation136_spill] sm:$0xff] }
 0x289   : > { %v4815_v42 = vand.u32 2147483647, %v6077_v31  ;;  %v6083_v34 = vsub.f32 %v4040_v48, %v6082_v32  ;;  %v6085_v31 = vld [vmem:[#allocation126_spill] sm:$0xff]  ;;  %v6090_v44 = vld [vmem:[#allocation140_spill] sm:$0xff]  ;;  %v6093_v32 = vld [vmem:[#allocation141_spill] sm:$0xff] }
 0x28a   : > { %6074 = vst [vmem:[#allocation102_spill] sm:$0xff] %v4810_v17  ;;  %v4872_v48 = vld [vmem:[%s3554_s12 + $0x3b0] sm:$0xff] }
 0x28b   : > { %6078 = vst [vmem:[#allocation99_spill] sm:$0xff] %v4815_v42  ;;  %v4833_v8 = vand.u32 2147483647, %v6083_v34  ;;  %v6087_v42 = vsub.f32 %v6085_v31, %v6086_v41  ;;  %v6094_v34 = vsub.f32 %v4066_v63, %v6093_v32  ;;  %v6097_v41 = vld [vmem:[#allocation142_spill] sm:$0xff]  ;;  %v6104_v32 = vld [vmem:[#allocation133_spill] sm:$0xff]  ;;  %v4895_v63 = vld [vmem:[%s3554_s12 + $0x3b8] sm:$0xff] }
 0x28c   : > { %6081 = vst [vmem:[#allocation103_spill] sm:$0xff] %v4820_v21  ;;  %v6091_v21 = vsub.f32 %v6089_v9, %v6090_v44  ;;  %v6101_v44 = vld [vmem:[#allocation143_spill] sm:$0xff] }
 0x28d   : > { %6084 = vst [vmem:[#allocation100_spill] sm:$0xff] %v4833_v8  ;;  %v4838_v55 = vand.u32 2147483647, %v6087_v42  ;;  %v4856_v31 = vand.u32 2147483647, %v6094_v34  ;;  %v6096_v42 = vld [vmem:[#allocation131_spill] sm:$0xff] }
 0x28e   : > { %v4843_v17 = vand.u32 2147483647, %v6091_v21  ;;  %v6100_v21 = vld [vmem:[#allocation132_spill] sm:$0xff] }
 0x28f   : > { %6088 = vst [vmem:[#allocation104_spill] sm:$0xff] %v4838_v55  ;;  %v6098_v55 = vsub.f32 %v6096_v42, %v6097_v41  ;;  %v6105_v34 = vld [vmem:[#allocation144_spill] sm:$0xff] }
 0x290   : > { %6092 = vst [vmem:[#allocation101_spill] sm:$0xff] %v4843_v17  ;;  %v6102_v17 = vsub.f32 %v6100_v21, %v6101_v44  ;;  %v6110_v21 = vld [vmem:[#allocation145_spill] sm:$0xff] }
 0x291   : > { %6095 = vst [vmem:[#allocation105_spill] sm:$0xff] %v4856_v31  ;;  %v4861_v9 = vand.u32 2147483647, %v6098_v55  ;;  %v6106_v31 = vsub.f32 %v6104_v32, %v6105_v34  ;;  %v6108_v55 = vsub.f32 %v4095_v7, %v4156_v26  ;;  %v6113_v34 = vld [vmem:[#allocation146_spill] sm:$0xff]  ;;  %v6115_v26 = vsub.f32 %v4121_v11, %v4182_v47  ;;  %v4918_v32 = vld [vmem:[%s3554_s12 + $0x3c0] sm:$0xff] }
 0x292   : > { %v4866_v8 = vand.u32 2147483647, %v6102_v17  ;;  %v6109_v17 = vld [vmem:[#allocation137_spill] sm:$0xff]  ;;  %v6119_v11 = vsub.f32 %v4147_v30, %v4208_v52  ;;  %v6124_v30 = vsub.f32 %v4173_v50, %v4234_v3  ;;  %v6132_v3 = vsub.f32 %v4199_v60, %v4263_v15 }
 0x293   : > { %6099 = vst [vmem:[#allocation108_spill] sm:$0xff] %v4861_v9  ;;  %v4879_v42 = vand.u32 2147483647, %v6106_v31  ;;  %v4884_v41 = vand.u32 2147483647, %v6108_v55  ;;  %v6111_v44 = vsub.f32 %v6109_v17, %v6110_v21  ;;  %v4892_v9 = vld [vmem:[%s3548_s27 + $0x3b8] sm:$0xff]  ;;  %v6116_v17 = vsub.f32 %v4124_v5, %v4185_v53 }
 0x294   : > { %6103 = vst [vmem:[#allocation109_spill] sm:$0xff] %v4866_v8  ;;  %v6112_v31 = vld [vmem:[#allocation138_spill] sm:$0xff]  ;;  %v4907_v55 = vand.u32 2147483647, %v6115_v26  ;;  %v4930_v53 = vand.u32 2147483647, %v6119_v11  ;;  %v6120_v5 = vsub.f32 %v4150_v10, %v4211_v61  ;;  %v6126_v10 = vsub.f32 %v4176_v25, %v4237_v14 }
 0x295   : > { %6107 = vst [vmem:[#allocation106_spill] sm:$0xff] %v4879_v42  ;;  %v4889_v8 = vand.u32 2147483647, %v6111_v44  ;;  %v6114_v42 = vsub.f32 %v6112_v31, %v6113_v34  ;;  %v4912_v21 = vand.u32 2147483647, %v6116_v17  ;;  %v4915_v44 = vld [vmem:[%s3548_s27 + $0x3c0] sm:$0xff]  ;;  %v6141_v60 = vsub.f32 %v4225_v6, %v4283_v23 }
 0x296   : > { %v4935_v26 = vand.u32 2147483647, %v6120_v5  ;;  %v4938_v17 = vld [vmem:[%s3548_s27 + $0x3c8] sm:$0xff]  ;;  %v4941_v31 = vld [vmem:[%s3554_s12 + $0x3c8] sm:$0xff]  ;;  %v4953_v61 = vand.u32 2147483647, %v6124_v30 }
 0x297   : > { %v4902_v7 = vand.u32 2147483647, %v6114_v42  ;;  %v6117_v42 = vld [vmem:[#allocation148_spill] sm:$0xff]  ;;  %v4964_v5 = vld [vmem:[%s3554_s12 + $0x3d0] sm:$0xff]  ;;  %v4976_v14 = vand.u32 2147483647, %v6132_v3 }
 0x298   : > { %v6118_v34 = vsub.f32 %v4127_v24, %v6117_v42  ;;  %6121 = vst [vmem:[#allocation110_spill] sm:$0xff] %v4935_v26  ;;  %v6122_v42 = vsub.f32 %v4153_v22, %v4214_v16  ;;  %v4961_v11 = vld [vmem:[%s3548_s27 + $0x3d0] sm:$0xff]  ;;  %v1307_v16 = vsub.f32 %v4846_v58, %v4849_v40  ;;  %v6128_v22 = vld [vmem:[#allocation147_spill] sm:$0xff]  ;;  %v1308_v58 = vsub.f32 %v4869_v1, %v4872_v48  ;;  %v6151_v6 = vld [vmem:[#allocation154_spill] sm:$0xff] }
 0x299   : > { %6125 = vst [vmem:[#allocation113_spill] sm:$0xff] %v4953_v61  ;;  %v6134_v25 = vld [vmem:[#allocation157_spill] sm:$0xff]  ;;  %v1184_v61 = vld [vmem:[%s3554_s12 + $0x3d8] sm:$0xff]  ;;  %v4995_v15 = vand.u32 2147483647, %v6141_v60  ;;  %v1309_v1 = vsub.f32 %v4892_v9, %v4895_v63  ;;  %v1310_v9 = vsub.f32 %v4915_v44, %v4918_v32  ;;  %v1311_v32 = vsub.f32 %v4938_v17, %v4941_v31  ;;  %v6182_v17 = vld [vmem:[#allocation30_spill] sm:$0xff] }
 0x29a   : > { %v4925_v47 = vand.u32 2147483647, %v6118_v34  ;;  %v4948_v52 = vand.u32 2147483647, %v6122_v42  ;;  %v4958_v34 = vand.u32 2147483647, %v6126_v10  ;;  %v6135_v30 = vsub.f32 %v4202_v18, %v6134_v25 }
 0x29b   : > { %v6129_v42 = vld [vmem:[#allocation152_spill] sm:$0xff]  ;;  %6133 = vst [vmem:[#allocation111_spill] sm:$0xff] %v4976_v14  ;;  %v6137_v40 = vld [vmem:[#allocation149_spill] sm:$0xff]  ;;  %v6143_v18 = vld [vmem:[#allocation150_spill] sm:$0xff]  ;;  %v1312_v31 = vsub.f32 %v4961_v11, %v4964_v5 }
 0x29c   : > { %6123 = vst [vmem:[#allocation107_spill] sm:$0xff] %v4948_v52  ;;  %v6130_v24 = vsub.f32 %v6128_v22, %v6129_v42  ;;  %v4981_v10 = vand.u32 2147483647, %v6135_v30  ;;  %v6138_v22 = vld [vmem:[#allocation158_spill] sm:$0xff]  ;;  %v6144_v3 = vld [vmem:[#allocation160_spill] sm:$0xff]  ;;  %v6147_v48 = vld [vmem:[#allocation151_spill] sm:$0xff] }
 0x29d   : > { %6127 = vst [vmem:[#allocation114_spill] sm:$0xff] %v4958_v34  ;;  %v1055_v34 = vld [vmem:[%s3548_s27 + $0x3d8] sm:$0xff]  ;;  %v6145_v25 = vsub.f32 %v6143_v18, %v6144_v3  ;;  %v1185_v14 = vld [vmem:[%s3554_s12 + $0x3e0] sm:$0xff]  ;;  %v6152_v23 = vld [vmem:[#allocation163_spill] sm:$0xff] }
 0x29e   : > { %v4971_v50 = vand.u32 2147483647, %v6130_v24  ;;  %6136 = vst [vmem:[#allocation118_spill] sm:$0xff] %v4981_v10  ;;  %v6139_v24 = vsub.f32 %v6137_v40, %v6138_v22  ;;  %v1056_v10 = vld [vmem:[%s3548_s27 + $0x3e0] sm:$0xff]  ;;  %v6148_v40 = vld [vmem:[#allocation161_spill] sm:$0xff]  ;;  %v6153_v60 = vsub.f32 %v6151_v6, %v6152_v23  ;;  %v6156_v3 = vld [vmem:[#allocation164_spill] sm:$0xff] }
 0x29f   : > { %6142 = vst [vmem:[#allocation119_spill] sm:$0xff] %v4995_v15  ;;  %v5000_v30 = vand.u32 2147483647, %v6145_v25  ;;  %v6149_v22 = vsub.f32 %v6147_v48, %v6148_v40  ;;  %v6155_v18 = vld [vmem:[#allocation155_spill] sm:$0xff]  ;;  %v6159_v63 = vld [vmem:[#allocation156_spill] sm:$0xff]  ;;  %v6160_v48 = vld [vmem:[#allocation165_spill] sm:$0xff] }
 0x2a0   : > { %6131 = vst [vmem:[#allocation115_spill] sm:$0xff] %v4971_v50  ;;  %v4990_v42 = vand.u32 2147483647, %v6139_v24  ;;  %v5014_v15 = vand.u32 2147483647, %v6153_v60  ;;  %v6157_v25 = vsub.f32 %v6155_v18, %v6156_v3  ;;  %v1186_v50 = vld [vmem:[%s3554_s12 + $0x3e8] sm:$0xff]  ;;  %v6161_v40 = vsub.f32 %v6159_v63, %v6160_v48 }
 0x2a1   : > { %6146 = vst [vmem:[#allocation120_spill] sm:$0xff] %v5000_v30  ;;  %v5009_v24 = vand.u32 2147483647, %v6149_v22  ;;  %v6163_v6 = vld [vmem:[#allocation167_spill] sm:$0xff]  ;;  %v6164_v23 = vld [vmem:[#allocation169_spill] sm:$0xff]  ;;  %v6167_v18 = vld [vmem:[#allocation168_spill] sm:$0xff] }
 0x2a2   : > { %6140 = vst [vmem:[#allocation112_spill] sm:$0xff] %v4990_v42  ;;  %v5019_v30 = vand.u32 2147483647, %v6157_v25  ;;  %v1057_v42 = vld [vmem:[%s3548_s27 + $0x3e8] sm:$0xff]  ;;  %v5028_v22 = vand.u32 2147483647, %v6161_v40  ;;  %v6165_v60 = vsub.f32 %v6163_v6, %v6164_v23 }
 0x2a3   : > { %6150 = vst [vmem:[#allocation123_spill] sm:$0xff] %v5009_v24  ;;  %v6168_v3 = vld [vmem:[#allocation173_spill] sm:$0xff]  ;;  %v1187_v52 = vld [vmem:[%s3554_s12 + $0x3f0] sm:$0xff] }
 0x2a4   : > { %6154 = vst [vmem:[#allocation116_spill] sm:$0xff] %v5014_v15  ;;  %v5033_v15 = vand.u32 2147483647, %v6165_v60  ;;  %v6169_v25 = vsub.f32 %v6167_v18, %v6168_v3  ;;  %v1058_v24 = vld [vmem:[%s3548_s27 + $0x3f0] sm:$0xff]  ;;  %v6171_v44 = vld [vmem:[#allocation171_spill] sm:$0xff]  ;;  %v6176_v6 = vld [vmem:[#allocation174_spill] sm:$0xff] }
 0x2a5   : > { %6158 = vst [vmem:[#allocation124_spill] sm:$0xff] %v5019_v30  ;;  %v6172_v63 = vld [vmem:[#allocation29_spill] sm:$0xff] }
 0x2a6   : > { %6162 = vst [vmem:[#allocation117_spill] sm:$0xff] %v5028_v22  ;;  %v5038_v30 = vand.u32 2147483647, %v6169_v25  ;;  %v6173_v48 = vsub.f32 %v6171_v44, %v6172_v63  ;;  %v6175_v22 = vld [vmem:[#allocation172_spill] sm:$0xff]  ;;  %v1059_v25 = vld [vmem:[%s3548_s27 + $0x3f8] sm:$0xff]  ;;  %v6183_v44 = vsub.f32 %v4386_v4, %v6182_v17  ;;  %v6193_v4 = vld [vmem:[#allocation47_spill] sm:$0xff] }
 0x2a7   : > { %6166 = vst [vmem:[#allocation125_spill] sm:$0xff] %v5033_v15  ;;  %v6177_v23 = vsub.f32 %v6175_v22, %v6176_v6  ;;  %v6179_v15 = vld [vmem:[#allocation175_spill] sm:$0xff]  ;;  %v6191_v11 = vld [vmem:[#allocation41_spill] sm:$0xff] }
 0x2a8   : > { %6170 = vst [vmem:[#allocation128_spill] sm:$0xff] %v5038_v30  ;;  %v5047_v40 = vand.u32 2147483647, %v6173_v48  ;;  %v6180_v18 = vsub.f32 %v4363_v27, %v6179_v15  ;;  %v1188_v30 = vld [vmem:[%s3554_s12 + $0x3f8] sm:$0xff]  ;;  %v5066_v63 = vand.u32 2147483647, %v6183_v44  ;;  %v6192_v5 = vsub.f32 %v4455_v2, %v6191_v11 }
 0x2a9   : > { %v5052_v60 = vand.u32 2147483647, %v6177_v23  ;;  %v6185_v48 = vld [vmem:[#allocation36_spill] sm:$0xff]  ;;  %v6189_v23 = vld [vmem:[#allocation39_spill] sm:$0xff]  ;;  %v6201_v2 = vsub.f32 %v4547_v0, %v4550_v45  ;;  %v6207_v0 = vsub.f32 %v4639_v38, %v4642_v19  ;;  %v6214_v38 = vsub.f32 %v4731_v39, %v4734_v49 }
 0x2aa   : > { %6174 = vst [vmem:[#allocation129_spill] sm:$0xff] %v5047_v40  ;;  %v5057_v3 = vand.u32 2147483647, %v6180_v18  ;;  %v6186_v40 = vld [vmem:[#allocation33_spill] sm:$0xff]  ;;  %v6190_v27 = vsub.f32 %v4432_v37, %v6189_v23  ;;  %v1060_v18 = vld [vmem:[%s3548_s27 + $0x400] sm:$0xff]  ;;  %v1314_v37 = vsub.f32 %v1056_v10, %v1185_v14  ;;  %v6199_v23 = vld [vmem:[#allocation56_spill] sm:$0xff]  ;;  %v6218_v39 = vsub.f32 %v4823_v43, %v4826_v36 }
 0x2ab   : > { %6178 = vst [vmem:[#allocation121_spill] sm:$0xff] %v5052_v60  ;;  %v6187_v22 = vsub.f32 %v6185_v48, %v6186_v40  ;;  %v1313_v60 = vsub.f32 %v1055_v34, %v1184_v61  ;;  %v5083_v26 = vand.u32 2147483647, %v6192_v5  ;;  %v6194_v17 = vld [vmem:[#allocation51_spill] sm:$0xff]  ;;  %v6196_v40 = vld [vmem:[#allocation53_spill] sm:$0xff]  ;;  %v6197_v48 = vld [vmem:[#allocation50_spill] sm:$0xff] }
 0x2ac   : > { %6181 = vst [vmem:[#allocation130_spill] sm:$0xff] %v5057_v3  ;;  %v5076_v15 = vand.u32 2147483647, %v6190_v27  ;;  %v1189_v3 = vld [vmem:[%s3554_s12 + $0x400] sm:$0xff]  ;;  %v6195_v44 = vsub.f32 %v6193_v4, %v6194_v17  ;;  %v6200_v27 = vsub.f32 %v4524_v35, %v6199_v23  ;;  %v5103_v34 = vand.u32 2147483647, %v6201_v2 }
 0x2ad   : > { %6184 = vst [vmem:[#allocation122_spill] sm:$0xff] %v5066_v63  ;;  %v5071_v6 = vand.u32 2147483647, %v6187_v22  ;;  %v6198_v22 = vsub.f32 %v6196_v40, %v6197_v48  ;;  %v6202_v11 = vld [vmem:[#allocation63_spill] sm:$0xff]  ;;  %v1315_v17 = vsub.f32 %v1057_v42, %v1186_v50  ;;  %v6206_v35 = vsub.f32 %v4616_v54, %v4619_v46  ;;  %v6212_v54 = vld [vmem:[#allocation88_spill] sm:$0xff] }
 0x2ae   : > { %v5088_v63 = vand.u32 2147483647, %v6195_v44  ;;  %v5098_v61 = vand.u32 2147483647, %v6200_v27  ;;  %v6203_v5 = vsub.f32 %v4570_v12, %v6202_v11  ;;  %v6204_v44 = vld [vmem:[#allocation65_spill] sm:$0xff]  ;;  %v1316_v48 = vsub.f32 %v1058_v24, %v1187_v52 }
 0x2af   : > { %6188 = vst [vmem:[#allocation134_spill] sm:$0xff] %v5071_v6  ;;  %v5093_v6 = vand.u32 2147483647, %v6198_v22  ;;  %v6205_v40 = vsub.f32 %v4593_v57, %v6204_v44  ;;  %v5118_v10 = vand.u32 2147483647, %v6206_v35  ;;  %v6208_v12 = vld [vmem:[#allocation77_spill] sm:$0xff]  ;;  %v6213_v46 = vsub.f32 %v4708_v59, %v6212_v54 }
 0x2b0   : > { %v5108_v4 = vand.u32 2147483647, %v6203_v5  ;;  %v5123_v45 = vand.u32 2147483647, %v6207_v0  ;;  %v6209_v22 = vsub.f32 %v4662_v51, %v6208_v12  ;;  %v6210_v57 = vld [vmem:[#allocation79_spill] sm:$0xff]  ;;  %v1317_v2 = vsub.f32 %v1059_v25, %v1188_v30 }
 0x2b1   : > { %v5113_v14 = vand.u32 2147483647, %v6205_v40  ;;  %v6211_v42 = vsub.f32 %v4685_v28, %v6210_v57  ;;  %v5138_v27 = vand.u32 2147483647, %v6213_v46  ;;  %v5143_v19 = vand.u32 2147483647, %v6214_v38 }
 0x2b2   : > { %v5128_v50 = vand.u32 2147483647, %v6209_v22  ;;  %v6215_v51 = vsub.f32 %v4754_v13, %v4757_v62  ;;  %v6216_v28 = vsub.f32 %v4777_v56, %v4780_v20  ;;  %v1318_v11 = vsub.f32 %v1060_v18, %v1189_v3 }
 0x2b3   : > { %v5133_v23 = vand.u32 2147483647, %v6211_v42  ;;  %v6217_v59 = vsub.f32 %v4800_v29, %v4803_v33  ;;  %v5163_v49 = vand.u32 2147483647, %v6218_v39  ;;  %v5165_v25 = vand.u32 2147483647, %v1307_v16 }
 0x2b4   : > { %v5148_v52 = vand.u32 2147483647, %v6215_v51  ;;  %v5153_v24 = vand.u32 2147483647, %v6216_v28  ;;  %v5167_v13 = vand.u32 2147483647, %v1308_v58 }
 0x2b5   : > { %v5158_v30 = vand.u32 2147483647, %v6217_v59  ;;  %v5169_v62 = vand.u32 2147483647, %v1309_v1  ;;  %v5171_v56 = vand.u32 2147483647, %v1310_v9 }
 0x2b6   : > { %v5173_v20 = vand.u32 2147483647, %v1311_v32  ;;  %v5175_v3 = vand.u32 2147483647, %v1312_v31  ;;  %v5177_v29 = vand.u32 2147483647, %v1313_v60 }
 0x2b7   : > { %v5179_v33 = vand.u32 2147483647, %v1314_v37  ;;  %v5181_v18 = vand.u32 2147483647, %v1315_v17  ;;  %v5183_v43 = vand.u32 2147483647, %v1316_v48 }
 0x2b8   : > { %v5185_v36 = vand.u32 2147483647, %v1317_v2  ;;  %v5187_v16 = vand.u32 2147483647, %v1318_v11  ;;  %1452 = sbr.rel (%p2794_p0) target bundleno = 750 (0x2ee), region = 120 }
 0x2ba   : > { %6219 = vst [vmem:[#allocation135_spill] sm:$0xff] %v5185_v36 }
 0x2bb   : > { %6220 = vst [vmem:[#allocation136_spill] sm:$0xff] %v5187_v16 }
 0x2bd   : > { %v6221_v58 = vld [vmem:[#allocation153_spill] sm:$0xff]  ;;  %v6222_v1 = vld [vmem:[#allocation35_spill] sm:$0xff]  ;;  %v6224_v31 = vld [vmem:[#allocation32_spill] sm:$0xff] }
 0x2be   : > { %v1461_v9 = vadd.f32 %v6222_v1, %v6221_v58  ;;  %v6223_v32 = vld [vmem:[#allocation159_spill] sm:$0xff]  ;;  %v6225_v5 = vld [vmem:[#allocation162_spill] sm:$0xff]  ;;  %v6226_v37 = vld [vmem:[#allocation37_spill] sm:$0xff] }
 0x2bf   : > { %v1476_v60 = vadd.f32 %v6224_v31, %v6223_v32  ;;  %v1491_v44 = vadd.f32 %v6226_v37, %v6225_v5  ;;  %v6227_v17 = vld [vmem:[#allocation166_spill] sm:$0xff]  ;;  %v6231_v22 = vld [vmem:[#allocation27_spill] sm:$0xff]  ;;  %v6233_v54 = vld [vmem:[#allocation28_spill] sm:$0xff] }
 0x2c0   : > { %v6228_v40 = vld [vmem:[#allocation34_spill] sm:$0xff]  ;;  %v6232_v57 = vld [vmem:[#allocation43_spill] sm:$0xff]  ;;  %v6234_v46 = vld [vmem:[#allocation40_spill] sm:$0xff] }
 0x2c1   : > { %v1506_v35 = vadd.f32 %v6228_v40, %v6227_v17  ;;  %v6229_v0 = vld [vmem:[#allocation170_spill] sm:$0xff]  ;;  %v1536_v42 = vadd.f32 %v6232_v57, %v6231_v22  ;;  %v1551_v2 = vadd.f32 %v6234_v46, %v6233_v54  ;;  %v6235_v38 = vld [vmem:[#allocation31_spill] sm:$0xff]  ;;  %v6236_v51 = vld [vmem:[#allocation44_spill] sm:$0xff] }
 0x2c2   : > { %v6230_v48 = vld [vmem:[#allocation38_spill] sm:$0xff]  ;;  %v1566_v28 = vadd.f32 %v6236_v51, %v6235_v38  ;;  %v6237_v11 = vld [vmem:[#allocation45_spill] sm:$0xff]  ;;  %v6240_v31 = vld [vmem:[#allocation48_spill] sm:$0xff] }
 0x2c3   : > { %v1521_v12 = vadd.f32 %v6230_v48, %v6229_v0  ;;  %v1462_v59 = vadd.f32 %v1461_v9, %v6237_v11  ;;  %v6238_v39 = vld [vmem:[#allocation42_spill] sm:$0xff]  ;;  %v1507_v5 = vadd.f32 %v1506_v35, %v6240_v31  ;;  %v6241_v37 = vld [vmem:[#allocation52_spill] sm:$0xff]  ;;  %v6242_v40 = vld [vmem:[#allocation49_spill] sm:$0xff] }
 0x2c4   : > { %v1477_v58 = vadd.f32 %v1476_v60, %v6238_v39  ;;  %v6239_v1 = vld [vmem:[#allocation46_spill] sm:$0xff]  ;;  %v1537_v0 = vadd.f32 %v1536_v42, %v6242_v40  ;;  %v6244_v57 = vld [vmem:[#allocation55_spill] sm:$0xff]  ;;  %v6246_v36 = vld [vmem:[#allocation60_spill] sm:$0xff] }
 0x2c5   : > { %v1492_v32 = vadd.f32 %v1491_v44, %v6239_v1  ;;  %v1522_v17 = vadd.f32 %v1521_v12, %v6241_v37  ;;  %v6243_v48 = vld [vmem:[#allocation54_spill] sm:$0xff]  ;;  %v1567_v16 = vadd.f32 %v1566_v28, %v6244_v57  ;;  %v6245_v54 = vld [vmem:[#allocation59_spill] sm:$0xff]  ;;  %v6247_v51 = vld [vmem:[#allocation57_spill] sm:$0xff] }
 0x2c6   : > { %v1552_v22 = vadd.f32 %v1551_v2, %v6243_v48  ;;  %v1463_v46 = vadd.f32 %v1462_v59, %v6245_v54  ;;  %v1478_v38 = vadd.f32 %v1477_v58, %v6246_v36  ;;  %v6248_v11 = vld [vmem:[#allocation61_spill] sm:$0xff]  ;;  %v6249_v39 = vld [vmem:[#allocation58_spill] sm:$0xff]  ;;  %v6252_v37 = vld [vmem:[#allocation67_spill] sm:$0xff] }
 0x2c7   : > { %v1493_v9 = vadd.f32 %v1492_v32, %v6247_v51  ;;  %v1508_v60 = vadd.f32 %v1507_v5, %v6248_v11  ;;  %v1523_v44 = vadd.f32 %v1522_v17, %v6249_v39  ;;  %v6250_v1 = vld [vmem:[#allocation62_spill] sm:$0xff]  ;;  %v1568_v42 = vadd.f32 %v1567_v16, %v6252_v37  ;;  %v6253_v40 = vld [vmem:[#allocation64_spill] sm:$0xff]  ;;  %v6255_v57 = vld [vmem:[#allocation69_spill] sm:$0xff] }
 0x2c8   : > { %v1538_v35 = vadd.f32 %v1537_v0, %v6250_v1  ;;  %v6251_v31 = vld [vmem:[#allocation66_spill] sm:$0xff]  ;;  %v1464_v2 = vadd.f32 %v1463_v46, %v6253_v40  ;;  %v6254_v48 = vld [vmem:[#allocation68_spill] sm:$0xff]  ;;  %v6256_v54 = vld [vmem:[#allocation73_spill] sm:$0xff] }
 0x2c9   : > { %v1553_v12 = vadd.f32 %v1552_v22, %v6251_v31  ;;  %v1479_v28 = vadd.f32 %v1478_v38, %v6254_v48  ;;  %v1494_v59 = vadd.f32 %v1493_v9, %v6255_v57  ;;  %v1509_v36 = vadd.f32 %v1508_v60, %v6256_v54  ;;  %v6257_v58 = vld [vmem:[#allocation70_spill] sm:$0xff]  ;;  %v6259_v11 = vld [vmem:[#allocation71_spill] sm:$0xff]  ;;  %v6261_v1 = vld [vmem:[#allocation72_spill] sm:$0xff] }
 0x2ca   : > { %v1524_v32 = vadd.f32 %v1523_v44, %v6257_v58  ;;  %v6258_v51 = vld [vmem:[#allocation74_spill] sm:$0xff]  ;;  %v6260_v39 = vld [vmem:[#allocation75_spill] sm:$0xff]  ;;  %v1465_v22 = vadd.f32 %v1464_v2, %v6261_v1  ;;  %v6262_v31 = vld [vmem:[#allocation76_spill] sm:$0xff] }
 0x2cb   : > { %v1539_v5 = vadd.f32 %v1538_v35, %v6258_v51  ;;  %v1554_v17 = vadd.f32 %v1553_v12, %v6259_v11  ;;  %v1569_v0 = vadd.f32 %v1568_v42, %v6260_v39  ;;  %v1480_v16 = vadd.f32 %v1479_v28, %v6262_v31  ;;  %v6263_v37 = vld [vmem:[#allocation80_spill] sm:$0xff]  ;;  %v6264_v40 = vld [vmem:[#allocation81_spill] sm:$0xff]  ;;  %v6265_v48 = vld [vmem:[#allocation78_spill] sm:$0xff] }
 0x2cc   : > { %v1495_v46 = vadd.f32 %v1494_v59, %v6263_v37  ;;  %v1510_v38 = vadd.f32 %v1509_v36, %v6264_v40  ;;  %v1525_v9 = vadd.f32 %v1524_v32, %v6265_v48  ;;  %v6266_v57 = vld [vmem:[#allocation82_spill] sm:$0xff]  ;;  %v6267_v54 = vld [vmem:[#allocation83_spill] sm:$0xff]  ;;  %v6269_v51 = vld [vmem:[#allocation84_spill] sm:$0xff] }
 0x2cd   : > { %v1540_v60 = vadd.f32 %v1539_v5, %v6266_v57  ;;  %v1555_v44 = vadd.f32 %v1554_v17, %v6267_v54  ;;  %v6268_v58 = vld [vmem:[#allocation87_spill] sm:$0xff]  ;;  %v1466_v12 = vadd.f32 %v1465_v22, %v6269_v51  ;;  %v6270_v11 = vld [vmem:[#allocation85_spill] sm:$0xff]  ;;  %v6272_v1 = vld [vmem:[#allocation86_spill] sm:$0xff] }
 0x2ce   : > { %v1570_v35 = vadd.f32 %v1569_v0, %v6268_v58  ;;  %v1481_v42 = vadd.f32 %v1480_v16, %v6270_v11  ;;  %v6271_v39 = vld [vmem:[#allocation89_spill] sm:$0xff]  ;;  %v1511_v28 = vadd.f32 %v1510_v38, %v6272_v1  ;;  %v6273_v31 = vld [vmem:[#allocation90_spill] sm:$0xff]  ;;  %v6274_v37 = vld [vmem:[#allocation91_spill] sm:$0xff] }
 0x2cf   : > { %v1496_v2 = vadd.f32 %v1495_v46, %v6271_v39  ;;  %v1526_v59 = vadd.f32 %v1525_v9, %v6273_v31  ;;  %v1541_v36 = vadd.f32 %v1540_v60, %v6274_v37  ;;  %v6275_v40 = vld [vmem:[#allocation95_spill] sm:$0xff]  ;;  %v6276_v48 = vld [vmem:[#allocation92_spill] sm:$0xff]  ;;  %v6278_v54 = vld [vmem:[#allocation93_spill] sm:$0xff] }
 0x2d0   : > { %v1556_v32 = vadd.f32 %v1555_v44, %v6275_v40  ;;  %v1571_v5 = vadd.f32 %v1570_v35, %v6276_v48  ;;  %v6277_v57 = vld [vmem:[#allocation96_spill] sm:$0xff]  ;;  %v1482_v0 = vadd.f32 %v1481_v42, %v6278_v54  ;;  %v6279_v58 = vld [vmem:[#allocation97_spill] sm:$0xff]  ;;  %v6280_v51 = vld [vmem:[#allocation94_spill] sm:$0xff] }
 0x2d1   : > { %v1467_v17 = vadd.f32 %v1466_v12, %v6277_v57  ;;  %v1497_v22 = vadd.f32 %v1496_v2, %v6279_v58  ;;  %v1512_v16 = vadd.f32 %v1511_v28, %v6280_v51  ;;  %v6281_v11 = vld [vmem:[#allocation98_spill] sm:$0xff]  ;;  %v6283_v1 = vld [vmem:[#allocation99_spill] sm:$0xff]  ;;  %v6285_v37 = vld [vmem:[#allocation100_spill] sm:$0xff] }
 0x2d2   : > { %v1527_v46 = vadd.f32 %v1526_v59, %v6281_v11  ;;  %v6282_v39 = vld [vmem:[#allocation102_spill] sm:$0xff]  ;;  %v1557_v9 = vadd.f32 %v1556_v32, %v6283_v1  ;;  %v6284_v31 = vld [vmem:[#allocation103_spill] sm:$0xff]  ;;  %v6286_v40 = vld [vmem:[#allocation104_spill] sm:$0xff] }
 0x2d3   : > { %v1542_v38 = vadd.f32 %v1541_v36, %v6282_v39  ;;  %v1572_v60 = vadd.f32 %v1571_v5, %v6284_v31  ;;  %v1468_v44 = vadd.f32 %v1467_v17, %v6285_v37  ;;  %v1483_v35 = vadd.f32 %v1482_v0, %v6286_v40  ;;  %v6287_v48 = vld [vmem:[#allocation101_spill] sm:$0xff]  ;;  %v6289_v54 = vld [vmem:[#allocation108_spill] sm:$0xff]  ;;  %v6291_v51 = vld [vmem:[#allocation106_spill] sm:$0xff] }
 0x2d4   : > { %v1498_v12 = vadd.f32 %v1497_v22, %v6287_v48  ;;  %v6288_v57 = vld [vmem:[#allocation105_spill] sm:$0xff]  ;;  %v1528_v2 = vadd.f32 %v1527_v46, %v6289_v54  ;;  %v1558_v59 = vadd.f32 %v1557_v9, %v6291_v51  ;;  %v6292_v11 = vld [vmem:[#allocation110_spill] sm:$0xff]  ;;  %v6293_v39 = vld [vmem:[#allocation107_spill] sm:$0xff] }
 0x2d5   : > { %v1513_v42 = vadd.f32 %v1512_v16, %v6288_v57  ;;  %v6290_v58 = vld [vmem:[#allocation109_spill] sm:$0xff]  ;;  %v1573_v36 = vadd.f32 %v1572_v60, %v4884_v41  ;;  %v1469_v32 = vadd.f32 %v1468_v44, %v4889_v8  ;;  %v1484_v5 = vadd.f32 %v1483_v35, %v4902_v7  ;;  %v6295_v31 = vld [vmem:[#allocation114_spill] sm:$0xff]  ;;  %v6296_v37 = vld [vmem:[#allocation115_spill] sm:$0xff] }
 0x2d6   : > { %v1543_v28 = vadd.f32 %v1542_v38, %v6290_v58  ;;  %v1499_v17 = vadd.f32 %v1498_v12, %v4907_v55  ;;  %v1529_v22 = vadd.f32 %v1528_v2, %v4925_v47  ;;  %v1559_v46 = vadd.f32 %v1558_v59, %v6292_v11  ;;  %v6294_v1 = vld [vmem:[#allocation113_spill] sm:$0xff]  ;;  %v6297_v40 = vld [vmem:[#allocation111_spill] sm:$0xff]  ;;  %v6298_v48 = vld [vmem:[#allocation118_spill] sm:$0xff] }
 0x2d7   : > { %v1514_v0 = vadd.f32 %v1513_v42, %v4912_v21  ;;  %v1574_v38 = vadd.f32 %v1573_v36, %v6293_v39  ;;  %v1470_v9 = vadd.f32 %v1469_v32, %v6294_v1  ;;  %v1485_v60 = vadd.f32 %v1484_v5, %v6295_v31  ;;  %v6299_v57 = vld [vmem:[#allocation112_spill] sm:$0xff]  ;;  %v6300_v54 = vld [vmem:[#allocation119_spill] sm:$0xff]  ;;  %v6305_v1 = vld [vmem:[#allocation117_spill] sm:$0xff] }
 0x2d8   : > { %v1544_v16 = vadd.f32 %v1543_v28, %v4930_v53  ;;  %v1500_v44 = vadd.f32 %v1499_v17, %v6296_v37  ;;  %v1530_v12 = vadd.f32 %v1529_v22, %v6298_v48  ;;  %v1560_v2 = vadd.f32 %v1559_v46, %v6300_v54  ;;  %v6301_v58 = vld [vmem:[#allocation120_spill] sm:$0xff]  ;;  %v6302_v51 = vld [vmem:[#allocation123_spill] sm:$0xff]  ;;  %v6306_v31 = vld [vmem:[#allocation125_spill] sm:$0xff] }
 0x2d9   : > { %v1515_v35 = vadd.f32 %v1514_v0, %v6297_v40  ;;  %v1575_v28 = vadd.f32 %v1574_v38, %v6301_v58  ;;  %v1471_v59 = vadd.f32 %v1470_v9, %v6302_v51  ;;  %v6303_v11 = vld [vmem:[#allocation116_spill] sm:$0xff]  ;;  %v6308_v40 = vld [vmem:[#allocation129_spill] sm:$0xff]  ;;  %v6311_v54 = vld [vmem:[#allocation122_spill] sm:$0xff] }
 0x2da   : > { %v1545_v42 = vadd.f32 %v1544_v16, %v6299_v57  ;;  %v1486_v36 = vadd.f32 %v1485_v60, %v6303_v11  ;;  %v6304_v39 = vld [vmem:[#allocation124_spill] sm:$0xff]  ;;  %v1531_v17 = vadd.f32 %v1530_v12, %v6306_v31  ;;  %v1561_v22 = vadd.f32 %v1560_v2, %v6308_v40  ;;  %v6309_v48 = vld [vmem:[#allocation121_spill] sm:$0xff]  ;;  %v6310_v57 = vld [vmem:[#allocation130_spill] sm:$0xff] }
 0x2db   : > { %v1501_v32 = vadd.f32 %v1500_v44, %v6304_v39  ;;  %v1516_v5 = vadd.f32 %v1515_v35, %v6305_v1  ;;  %v6307_v37 = vld [vmem:[#allocation128_spill] sm:$0xff]  ;;  %v1576_v16 = vadd.f32 %v1575_v28, %v6309_v48  ;;  %v1472_v46 = vadd.f32 %v1471_v59, %v6310_v57  ;;  %v6312_v58 = vld [vmem:[#allocation134_spill] sm:$0xff] }
 0x2dc   : > { %v1546_v0 = vadd.f32 %v1545_v42, %v6307_v37  ;;  %v1487_v38 = vadd.f32 %v1486_v36, %v6311_v54  ;;  %v1532_v44 = vadd.f32 %v1531_v17, %v5083_v26  ;;  %v1562_v12 = vadd.f32 %v1561_v22, %v5093_v6  ;;  %v1454_v37 = vld [vmem:[#allocation2] sm:$0xff]  ;;  %v1456_v40 = vld [vmem:[#allocation2 + $0x10] sm:$0xff] }
 0x2dd   : > { %v1502_v9 = vadd.f32 %v1501_v32, %v6312_v58  ;;  %v1517_v60 = vadd.f32 %v1516_v5, %v5076_v15  ;;  %v1577_v42 = vadd.f32 %v1576_v16, %v5098_v61  ;;  %v1473_v2 = vadd.f32 %v1472_v46, %v5103_v34  ;;  %v1453_v46 = vld [vmem:[#allocation2 + $0x30] sm:$0xff] }
 0x2de   : > { %v1547_v35 = vadd.f32 %v1546_v0, %v5088_v63  ;;  %v1488_v28 = vadd.f32 %v1487_v38, %v5108_v4  ;;  %v1533_v11 = vadd.f32 %v1532_v44, %v5123_v45  ;;  %v1563_v39 = vadd.f32 %v1562_v12, %v5133_v23  ;;  %v1455_v0 = vld [vmem:[#allocation2 + $0x18] sm:$0xff] }
 0x2df   : > { %v1503_v51 = vadd.f32 %v1502_v9, %v5113_v14  ;;  %v1518_v59 = vadd.f32 %v1517_v60, %v5118_v10  ;;  %v1578_v32 = vadd.f32 %v1577_v42, %v5138_v27  ;;  %v1474_v1 = vadd.f32 %v1473_v2, %v5143_v19  ;;  %v1457_v60 = vld [vmem:[#allocation2 + $0x8] sm:$0xff] }
 0x2e0   : > { %v1548_v36 = vadd.f32 %v1547_v35, %v5128_v50  ;;  %v1489_v5 = vadd.f32 %v1488_v28, %v5148_v52  ;;  %v1534_v22 = vadd.f32 %v1533_v11, %v5163_v49  ;;  %v1564_v16 = vadd.f32 %v1563_v39, %v5167_v13  ;;  %v1458_v35 = vld [vmem:[#allocation2 + $0x20] sm:$0xff]  ;;  %v6313_v11 = vld [vmem:[#allocation135_spill] sm:$0xff] }
 0x2e1   : > { %v1504_v31 = vadd.f32 %v1503_v51, %v5153_v24  ;;  %v1519_v17 = vadd.f32 %v1518_v59, %v5158_v30  ;;  %v1579_v57 = vadd.f32 %v1578_v32, %v5169_v62  ;;  %v1475_v54 = vadd.f32 %v1474_v1, %v5171_v56  ;;  %v1459_v59 = vld [vmem:[#allocation2 + $0x28] sm:$0xff]  ;;  %v1460_v1 = vld [vmem:[#allocation2 + $0x38] sm:$0xff] }
 0x2e2   : > { %v1549_v48 = vadd.f32 %v1548_v36, %v5165_v25  ;;  %v1490_v38 = vadd.f32 %v1489_v5, %v5173_v20  ;;  %v1535_v44 = vadd.f32 %v1534_v22, %v5179_v33  ;;  %v1565_v42 = vadd.f32 %v1564_v16, %v5183_v43  ;;  %v6314_v22 = vld [vmem:[#allocation136_spill] sm:$0xff] }
 0x2e3   : > { %v1505_v58 = vadd.f32 %v1504_v31, %v5175_v3  ;;  %v1520_v9 = vadd.f32 %v1519_v17, %v5177_v29  ;;  %v1580_v36 = vadd.f32 %v1579_v57, %v6313_v11  ;;  %v1581_v39 = vadd.f32 %v1475_v54, %v1453_v46 }
 0x2e4   : > { %v1550_v12 = vadd.f32 %v1549_v48, %v5181_v18  ;;  %v1582_v2 = vadd.f32 %v1490_v38, %v1454_v37  ;;  %v1585_v32 = vadd.f32 %v1535_v44, %v1457_v60  ;;  %v1587_v31 = vadd.f32 %v1565_v42, %v1459_v59 }
 0x2e5   : > { %v1583_v28 = vadd.f32 %v1505_v58, %v1455_v0  ;;  %v1584_v51 = vadd.f32 %v1520_v9, %v1456_v40  ;;  %v1588_v17 = vadd.f32 %v1580_v36, %v1460_v1  ;;  %v1598_v48 = vadd.f32 %v1581_v39, %v6314_v22 }
 0x2e6   : > { %1590 = vst [vmem:[#allocation2] sm:$0xff] %v1582_v2  ;;  %v1586_v5 = vadd.f32 %v1550_v12, %v1458_v35 }
 0x2e7   : > { %1591 = vst [vmem:[#allocation2 + $0x18] sm:$0xff] %v1583_v28 }
 0x2e8   : > { %1592 = vst [vmem:[#allocation2 + $0x10] sm:$0xff] %v1584_v51 }
 0x2e9   : > { %1593 = vst [vmem:[#allocation2 + $0x8] sm:$0xff] %v1585_v32 }
 0x2ea   : > { %1594 = vst [vmem:[#allocation2 + $0x20] sm:$0xff] %v1586_v5 }
 0x2eb   : > { %1595 = vst [vmem:[#allocation2 + $0x28] sm:$0xff] %v1587_v31 }
 0x2ec   : > { %1596 = vst [vmem:[#allocation2 + $0x38] sm:$0xff] %v1588_v17 }
 0x2ed   : > { %1599 = vst [vmem:[#allocation2 + $0x30] sm:$0xff] %v1598_v48 }
 0x2ee PF: > { %p2795_p10 = scmp.ne.s32.totalorder %s3579_s29, 1 }
 0x2f0   : > { %1602 = sbr.rel (%p2795_p10) target bundleno = 995 (0x3e3), region = 124 }
 0x2f5   : > { %v6315_v37 = vld [vmem:[#allocation153_spill] sm:$0xff]  ;;  %v6316_v0 = vld [vmem:[#allocation35_spill] sm:$0xff]  ;;  %v6318_v57 = vld [vmem:[#allocation32_spill] sm:$0xff] }
 0x2f6   : > { %v1999_v40 = vadd.f32 %v6316_v0, %v6315_v37  ;;  %v6317_v16 = vld [vmem:[#allocation159_spill] sm:$0xff]  ;;  %v6319_v54 = vld [vmem:[#allocation162_spill] sm:$0xff]  ;;  %v6320_v38 = vld [vmem:[#allocation37_spill] sm:$0xff] }
 0x2f7   : > { %v2014_v46 = vadd.f32 %v6318_v57, %v6317_v16  ;;  %v2029_v58 = vadd.f32 %v6320_v38, %v6319_v54  ;;  %v6321_v9 = vld [vmem:[#allocation166_spill] sm:$0xff]  ;;  %v6325_v2 = vld [vmem:[#allocation27_spill] sm:$0xff]  ;;  %v6327_v59 = vld [vmem:[#allocation28_spill] sm:$0xff] }
 0x2f8   : > { %v6322_v60 = vld [vmem:[#allocation34_spill] sm:$0xff]  ;;  %v6326_v28 = vld [vmem:[#allocation43_spill] sm:$0xff]  ;;  %v6328_v11 = vld [vmem:[#allocation40_spill] sm:$0xff] }
 0x2f9   : > { %v2044_v44 = vadd.f32 %v6322_v60, %v6321_v9  ;;  %v6323_v35 = vld [vmem:[#allocation170_spill] sm:$0xff]  ;;  %v2074_v51 = vadd.f32 %v6326_v28, %v6325_v2  ;;  %v2089_v36 = vadd.f32 %v6328_v11, %v6327_v59  ;;  %v6329_v39 = vld [vmem:[#allocation31_spill] sm:$0xff]  ;;  %v6330_v32 = vld [vmem:[#allocation44_spill] sm:$0xff] }
 0x2fa   : > { %v6324_v12 = vld [vmem:[#allocation38_spill] sm:$0xff]  ;;  %v2104_v1 = vadd.f32 %v6330_v32, %v6329_v39  ;;  %v6331_v5 = vld [vmem:[#allocation45_spill] sm:$0xff]  ;;  %v6334_v0 = vld [vmem:[#allocation48_spill] sm:$0xff] }
 0x2fb   : > { %v2059_v42 = vadd.f32 %v6324_v12, %v6323_v35  ;;  %v2000_v31 = vadd.f32 %v1999_v40, %v6331_v5  ;;  %v6332_v17 = vld [vmem:[#allocation42_spill] sm:$0xff]  ;;  %v2045_v16 = vadd.f32 %v2044_v44, %v6334_v0  ;;  %v6335_v57 = vld [vmem:[#allocation52_spill] sm:$0xff]  ;;  %v6336_v38 = vld [vmem:[#allocation49_spill] sm:$0xff] }
 0x2fc   : > { %v2015_v22 = vadd.f32 %v2014_v46, %v6332_v17  ;;  %v6333_v48 = vld [vmem:[#allocation46_spill] sm:$0xff]  ;;  %v2075_v9 = vadd.f32 %v2074_v51, %v6336_v38  ;;  %v6338_v12 = vld [vmem:[#allocation55_spill] sm:$0xff]  ;;  %v6340_v11 = vld [vmem:[#allocation60_spill] sm:$0xff] }
 0x2fd   : > { %v2030_v37 = vadd.f32 %v2029_v58, %v6333_v48  ;;  %v2060_v54 = vadd.f32 %v2059_v42, %v6335_v57  ;;  %v6337_v60 = vld [vmem:[#allocation54_spill] sm:$0xff]  ;;  %v2105_v2 = vadd.f32 %v2104_v1, %v6338_v12  ;;  %v6339_v28 = vld [vmem:[#allocation59_spill] sm:$0xff]  ;;  %v6341_v32 = vld [vmem:[#allocation57_spill] sm:$0xff] }
 0x2fe   : > { %v2090_v35 = vadd.f32 %v2089_v36, %v6337_v60  ;;  %v2001_v59 = vadd.f32 %v2000_v31, %v6339_v28  ;;  %v2016_v39 = vadd.f32 %v2015_v22, %v6340_v11  ;;  %v6342_v5 = vld [vmem:[#allocation61_spill] sm:$0xff]  ;;  %v6343_v17 = vld [vmem:[#allocation58_spill] sm:$0xff]  ;;  %v6346_v57 = vld [vmem:[#allocation67_spill] sm:$0xff] }
 0x2ff   : > { %v2031_v40 = vadd.f32 %v2030_v37, %v6341_v32  ;;  %v2046_v46 = vadd.f32 %v2045_v16, %v6342_v5  ;;  %v2061_v58 = vadd.f32 %v2060_v54, %v6343_v17  ;;  %v6344_v48 = vld [vmem:[#allocation62_spill] sm:$0xff]  ;;  %v2106_v51 = vadd.f32 %v2105_v2, %v6346_v57  ;;  %v6347_v38 = vld [vmem:[#allocation64_spill] sm:$0xff]  ;;  %v6349_v12 = vld [vmem:[#allocation69_spill] sm:$0xff] }
 0x300   : > { %v2076_v44 = vadd.f32 %v2075_v9, %v6344_v48  ;;  %v6345_v0 = vld [vmem:[#allocation66_spill] sm:$0xff]  ;;  %v2002_v36 = vadd.f32 %v2001_v59, %v6347_v38  ;;  %v6348_v60 = vld [vmem:[#allocation68_spill] sm:$0xff]  ;;  %v6350_v28 = vld [vmem:[#allocation73_spill] sm:$0xff] }
 0x301   : > { %v2091_v42 = vadd.f32 %v2090_v35, %v6345_v0  ;;  %v2017_v1 = vadd.f32 %v2016_v39, %v6348_v60  ;;  %v2032_v31 = vadd.f32 %v2031_v40, %v6349_v12  ;;  %v2047_v22 = vadd.f32 %v2046_v46, %v6350_v28  ;;  %v6351_v11 = vld [vmem:[#allocation70_spill] sm:$0xff]  ;;  %v6353_v5 = vld [vmem:[#allocation71_spill] sm:$0xff]  ;;  %v6355_v48 = vld [vmem:[#allocation72_spill] sm:$0xff] }
 0x302   : > { %v2062_v37 = vadd.f32 %v2061_v58, %v6351_v11  ;;  %v6352_v32 = vld [vmem:[#allocation74_spill] sm:$0xff]  ;;  %v6354_v17 = vld [vmem:[#allocation75_spill] sm:$0xff]  ;;  %v2003_v35 = vadd.f32 %v2002_v36, %v6355_v48  ;;  %v6356_v0 = vld [vmem:[#allocation76_spill] sm:$0xff] }
 0x303   : > { %v2077_v16 = vadd.f32 %v2076_v44, %v6352_v32  ;;  %v2092_v54 = vadd.f32 %v2091_v42, %v6353_v5  ;;  %v2107_v9 = vadd.f32 %v2106_v51, %v6354_v17  ;;  %v2018_v2 = vadd.f32 %v2017_v1, %v6356_v0  ;;  %v6357_v57 = vld [vmem:[#allocation80_spill] sm:$0xff]  ;;  %v6358_v38 = vld [vmem:[#allocation81_spill] sm:$0xff]  ;;  %v6359_v60 = vld [vmem:[#allocation78_spill] sm:$0xff] }
 0x304   : > { %v2033_v59 = vadd.f32 %v2032_v31, %v6357_v57  ;;  %v2048_v39 = vadd.f32 %v2047_v22, %v6358_v38  ;;  %v2063_v40 = vadd.f32 %v2062_v37, %v6359_v60  ;;  %v6360_v12 = vld [vmem:[#allocation82_spill] sm:$0xff]  ;;  %v6361_v28 = vld [vmem:[#allocation83_spill] sm:$0xff]  ;;  %v6363_v32 = vld [vmem:[#allocation84_spill] sm:$0xff] }
 0x305   : > { %v2078_v46 = vadd.f32 %v2077_v16, %v6360_v12  ;;  %v2093_v58 = vadd.f32 %v2092_v54, %v6361_v28  ;;  %v6362_v11 = vld [vmem:[#allocation87_spill] sm:$0xff]  ;;  %v2004_v42 = vadd.f32 %v2003_v35, %v6363_v32  ;;  %v6364_v5 = vld [vmem:[#allocation85_spill] sm:$0xff]  ;;  %v6366_v48 = vld [vmem:[#allocation86_spill] sm:$0xff] }
 0x306   : > { %v2108_v44 = vadd.f32 %v2107_v9, %v6362_v11  ;;  %v2019_v51 = vadd.f32 %v2018_v2, %v6364_v5  ;;  %v6365_v17 = vld [vmem:[#allocation89_spill] sm:$0xff]  ;;  %v2049_v1 = vadd.f32 %v2048_v39, %v6366_v48  ;;  %v6367_v0 = vld [vmem:[#allocation90_spill] sm:$0xff]  ;;  %v6368_v57 = vld [vmem:[#allocation91_spill] sm:$0xff] }
 0x307   : > { %v2034_v36 = vadd.f32 %v2033_v59, %v6365_v17  ;;  %v2064_v31 = vadd.f32 %v2063_v40, %v6367_v0  ;;  %v2079_v22 = vadd.f32 %v2078_v46, %v6368_v57  ;;  %v6369_v38 = vld [vmem:[#allocation95_spill] sm:$0xff]  ;;  %v6370_v60 = vld [vmem:[#allocation92_spill] sm:$0xff]  ;;  %v6372_v28 = vld [vmem:[#allocation93_spill] sm:$0xff] }
 0x308   : > { %v2094_v37 = vadd.f32 %v2093_v58, %v6369_v38  ;;  %v2109_v16 = vadd.f32 %v2108_v44, %v6370_v60  ;;  %v6371_v12 = vld [vmem:[#allocation96_spill] sm:$0xff]  ;;  %v2020_v9 = vadd.f32 %v2019_v51, %v6372_v28  ;;  %v6373_v11 = vld [vmem:[#allocation97_spill] sm:$0xff]  ;;  %v6374_v32 = vld [vmem:[#allocation94_spill] sm:$0xff] }
 0x309   : > { %v2005_v54 = vadd.f32 %v2004_v42, %v6371_v12  ;;  %v2035_v35 = vadd.f32 %v2034_v36, %v6373_v11  ;;  %v2050_v2 = vadd.f32 %v2049_v1, %v6374_v32  ;;  %v6375_v5 = vld [vmem:[#allocation98_spill] sm:$0xff]  ;;  %v6377_v48 = vld [vmem:[#allocation99_spill] sm:$0xff]  ;;  %v6379_v57 = vld [vmem:[#allocation100_spill] sm:$0xff] }
 0x30a   : > { %v2065_v59 = vadd.f32 %v2064_v31, %v6375_v5  ;;  %v6376_v17 = vld [vmem:[#allocation102_spill] sm:$0xff]  ;;  %v2095_v40 = vadd.f32 %v2094_v37, %v6377_v48  ;;  %v6378_v0 = vld [vmem:[#allocation103_spill] sm:$0xff]  ;;  %v6380_v38 = vld [vmem:[#allocation104_spill] sm:$0xff] }
 0x30b   : > { %v2080_v39 = vadd.f32 %v2079_v22, %v6376_v17  ;;  %v2110_v46 = vadd.f32 %v2109_v16, %v6378_v0  ;;  %v2006_v58 = vadd.f32 %v2005_v54, %v6379_v57  ;;  %v2021_v44 = vadd.f32 %v2020_v9, %v6380_v38  ;;  %v6381_v60 = vld [vmem:[#allocation101_spill] sm:$0xff]  ;;  %v6383_v28 = vld [vmem:[#allocation108_spill] sm:$0xff]  ;;  %v6385_v32 = vld [vmem:[#allocation106_spill] sm:$0xff] }
 0x30c   : > { %v2036_v42 = vadd.f32 %v2035_v35, %v6381_v60  ;;  %v6382_v12 = vld [vmem:[#allocation105_spill] sm:$0xff]  ;;  %v2066_v36 = vadd.f32 %v2065_v59, %v6383_v28  ;;  %v2096_v31 = vadd.f32 %v2095_v40, %v6385_v32  ;;  %v6386_v5 = vld [vmem:[#allocation110_spill] sm:$0xff]  ;;  %v6387_v17 = vld [vmem:[#allocation107_spill] sm:$0xff] }
 0x30d   : > { %v2051_v51 = vadd.f32 %v2050_v2, %v6382_v12  ;;  %v6384_v11 = vld [vmem:[#allocation109_spill] sm:$0xff]  ;;  %v2111_v22 = vadd.f32 %v2110_v46, %v4884_v41  ;;  %v2007_v37 = vadd.f32 %v2006_v58, %v4889_v8  ;;  %v2022_v16 = vadd.f32 %v2021_v44, %v4902_v7  ;;  %v6389_v0 = vld [vmem:[#allocation114_spill] sm:$0xff]  ;;  %v6390_v46 = vld [vmem:[#allocation115_spill] sm:$0xff] }
 0x30e   : > { %v2081_v1 = vadd.f32 %v2080_v39, %v6384_v11  ;;  %v2037_v54 = vadd.f32 %v2036_v42, %v4907_v55  ;;  %v2067_v35 = vadd.f32 %v2066_v36, %v4925_v47  ;;  %v2097_v59 = vadd.f32 %v2096_v31, %v6386_v5  ;;  %v6388_v48 = vld [vmem:[#allocation113_spill] sm:$0xff]  ;;  %v6391_v57 = vld [vmem:[#allocation111_spill] sm:$0xff]  ;;  %v6392_v58 = vld [vmem:[#allocation118_spill] sm:$0xff] }
 0x30f   : > { %v2052_v9 = vadd.f32 %v2051_v51, %v4912_v21  ;;  %v2112_v39 = vadd.f32 %v2111_v22, %v6387_v17  ;;  %v2008_v40 = vadd.f32 %v2007_v37, %v6388_v48  ;;  %v2023_v41 = vadd.f32 %v2022_v16, %v6389_v0  ;;  %v6393_v38 = vld [vmem:[#allocation112_spill] sm:$0xff]  ;;  %v6394_v44 = vld [vmem:[#allocation119_spill] sm:$0xff]  ;;  %v6400_v31 = vld [vmem:[#allocation125_spill] sm:$0xff] }
 0x310   : > { %v2082_v2 = vadd.f32 %v2081_v1, %v4930_v53  ;;  %v2038_v8 = vadd.f32 %v2037_v54, %v6390_v46  ;;  %v2068_v55 = vadd.f32 %v2067_v35, %v6392_v58  ;;  %v2098_v47 = vadd.f32 %v2097_v59, %v6394_v44  ;;  %v6395_v60 = vld [vmem:[#allocation120_spill] sm:$0xff]  ;;  %v6396_v42 = vld [vmem:[#allocation123_spill] sm:$0xff]  ;;  %v6399_v1 = vld [vmem:[#allocation117_spill] sm:$0xff] }
 0x311   : > { %v2053_v7 = vadd.f32 %v2052_v9, %v6391_v57  ;;  %v2113_v53 = vadd.f32 %v2112_v39, %v6395_v60  ;;  %v2009_v12 = vadd.f32 %v2008_v40, %v6396_v42  ;;  %v6397_v51 = vld [vmem:[#allocation116_spill] sm:$0xff]  ;;  %v6402_v54 = vld [vmem:[#allocation129_spill] sm:$0xff]  ;;  %v6404_v5 = vld [vmem:[#allocation130_spill] sm:$0xff] }
 0x312   : > { %v2083_v21 = vadd.f32 %v2082_v2, %v6393_v38  ;;  %v2024_v28 = vadd.f32 %v2023_v41, %v6397_v51  ;;  %v6398_v36 = vld [vmem:[#allocation124_spill] sm:$0xff]  ;;  %v2069_v22 = vadd.f32 %v2068_v55, %v6400_v31  ;;  %v2099_v9 = vadd.f32 %v2098_v47, %v6402_v54  ;;  %v6403_v35 = vld [vmem:[#allocation121_spill] sm:$0xff]  ;;  %v6405_v17 = vld [vmem:[#allocation122_spill] sm:$0xff] }
 0x313   : > { %v2039_v11 = vadd.f32 %v2038_v8, %v6398_v36  ;;  %v2054_v32 = vadd.f32 %v2053_v7, %v6399_v1  ;;  %v6401_v37 = vld [vmem:[#allocation128_spill] sm:$0xff]  ;;  %v2114_v2 = vadd.f32 %v2113_v53, %v6403_v35  ;;  %v2010_v59 = vadd.f32 %v2009_v12, %v6404_v5  ;;  %v6406_v48 = vld [vmem:[#allocation134_spill] sm:$0xff]  ;;  %v1993_v47 = vld [vmem:[#allocation2 + $0x18] sm:$0xff] }
 0x314   : > { %v2084_v16 = vadd.f32 %v2083_v21, %v6401_v37  ;;  %v2025_v39 = vadd.f32 %v2024_v28, %v6405_v17  ;;  %v2070_v41 = vadd.f32 %v2069_v22, %v5083_v26  ;;  %v2100_v8 = vadd.f32 %v2099_v9, %v5093_v6  ;;  %v1991_v44 = vld [vmem:[#allocation2 + $0x30] sm:$0xff]  ;;  %v1995_v53 = vld [vmem:[#allocation2 + $0x8] sm:$0xff]  ;;  %v1998_v36 = vld [vmem:[#allocation2 + $0x38] sm:$0xff] }
 0x315   : > { %v2040_v40 = vadd.f32 %v2039_v11, %v6406_v48  ;;  %v2055_v0 = vadd.f32 %v2054_v32, %v5076_v15  ;;  %v2115_v57 = vadd.f32 %v2114_v2, %v5098_v61  ;;  %v2011_v7 = vadd.f32 %v2010_v59, %v5103_v34  ;;  %v1997_v51 = vld [vmem:[#allocation2 + $0x28] sm:$0xff]  ;;  %v2162_v48 = vld [vmem:[#allocation18] sm:$0xff] }
 0x316   : > { %v2085_v46 = vadd.f32 %v2084_v16, %v5088_v63  ;;  %v2026_v58 = vadd.f32 %v2025_v39, %v5108_v4  ;;  %v2071_v21 = vadd.f32 %v2070_v41, %v5123_v45  ;;  %v2101_v26 = vadd.f32 %v2100_v8, %v5133_v23 }
 0x317   : > { %v2041_v55 = vadd.f32 %v2040_v40, %v5113_v14  ;;  %v2056_v38 = vadd.f32 %v2055_v0, %v5118_v10  ;;  %v2116_v63 = vadd.f32 %v2115_v57, %v5138_v27  ;;  %v2012_v6 = vadd.f32 %v2011_v7, %v5143_v19  ;;  %v1992_v14 = vld [vmem:[#allocation2] sm:$0xff] }
 0x318   : > { %v2086_v15 = vadd.f32 %v2085_v46, %v5128_v50  ;;  %v2027_v61 = vadd.f32 %v2026_v58, %v5148_v52  ;;  %v2072_v10 = vadd.f32 %v2071_v21, %v5163_v49  ;;  %v2102_v50 = vadd.f32 %v2101_v26, %v5167_v13  ;;  %v1996_v13 = vld [vmem:[#allocation2 + $0x20] sm:$0xff] }
 0x319   : > { %v2042_v34 = vadd.f32 %v2041_v55, %v5153_v24  ;;  %v2057_v4 = vadd.f32 %v2056_v38, %v5158_v30  ;;  %v2117_v23 = vadd.f32 %v2116_v63, %v5169_v62  ;;  %v2013_v27 = vadd.f32 %v2012_v6, %v5171_v56  ;;  %v1994_v30 = vld [vmem:[#allocation2 + $0x10] sm:$0xff]  ;;  %v6407_v56 = vld [vmem:[#allocation135_spill] sm:$0xff] }
 0x31a   : > { %v2087_v45 = vadd.f32 %v2086_v15, %v5165_v25  ;;  %v2028_v19 = vadd.f32 %v2027_v61, %v5173_v20  ;;  %v2073_v60 = vadd.f32 %v2072_v10, %v5179_v33  ;;  %v2103_v62 = vadd.f32 %v2102_v50, %v5183_v43 }
 0x31b   : > { %v2043_v52 = vadd.f32 %v2042_v34, %v5175_v3  ;;  %v2058_v24 = vadd.f32 %v2057_v4, %v5177_v29  ;;  %v2119_v42 = vadd.f32 %v2013_v27, %v1991_v44  ;;  %v2118_v28 = vadd.f32 %v2117_v23, %v6407_v56 }
 0x31c   : > { %v2088_v49 = vadd.f32 %v2087_v45, %v5181_v18  ;;  %v2120_v25 = vadd.f32 %v2028_v19, %v1992_v14  ;;  %v2123_v29 = vadd.f32 %v2073_v60, %v1995_v53  ;;  %v2125_v1 = vadd.f32 %v2103_v62, %v1997_v51 }
 0x31d   : > { %v2121_v12 = vadd.f32 %v2043_v52, %v1993_v47  ;;  %v2122_v20 = vadd.f32 %v2058_v24, %v1994_v30  ;;  %v2126_v18 = vadd.f32 %v2118_v28, %v1998_v36  ;;  %2137 = vst [vmem:[#allocation2 + $0x30] sm:$0xff] %v2119_v42  ;;  %v1603_v17 = vlaneseq }
 0x31e   : > { %2128 = vst [vmem:[#allocation2] sm:$0xff] %v2120_v25  ;;  %v2146_v3 = vadd.f32 %v2120_v25, %v2119_v42  ;;  %v2124_v11 = vadd.f32 %v2088_v49, %v1996_v13 }
 0x31f   : > { %2129 = vst [vmem:[#allocation2 + $0x18] sm:$0xff] %v2121_v12  ;;  %v1604_v39 = vshrl.u32 %v1603_v17, 7 }
 0x320   : > { %2130 = vst [vmem:[#allocation2 + $0x10] sm:$0xff] %v2122_v20  ;;  %v2147_v33 = vadd.f32 %v2146_v3, %v2121_v12 }
 0x321   : > { %2131 = vst [vmem:[#allocation2 + $0x8] sm:$0xff] %v2123_v29  ;;  %vm2163_vm1 = vcmp.eq.s32.totalorder %v1604_v39, 1 }
 0x322   : > { %2132 = vst [vmem:[#allocation2 + $0x20] sm:$0xff] %v2124_v11  ;;  %v2148_v32 = vadd.f32 %v2147_v33, %v2122_v20 }
 0x323   : > { %2133 = vst [vmem:[#allocation2 + $0x28] sm:$0xff] %v2125_v1 }
 0x324   : > { %2134 = vst [vmem:[#allocation2 + $0x38] sm:$0xff] %v2126_v18  ;;  %v2149_v43 = vadd.f32 %v2148_v32, %v2123_v29 }
 0x326   : > { %v2150_v31 = vadd.f32 %v2149_v43, %v2124_v11 }
 0x328   : > { %v2151_v22 = vadd.f32 %v2150_v31, %v2125_v1 }
 0x32a   : > { %v2152_v37 = vadd.f32 %v2151_v22, %v2126_v18 }
 0x32c   : > { %2153 = vadd.xlane.f32.xlu0 %v2152_v37 }
 0x39f   : > { %v2154_v16 = vpop.xlane.xlu0 %2153 }
 0x3a0   : > { %v2155_v54 = vrot.slane %v2154_v16, 4 }
 0x3a2   : > { %v2156_v9 = vadd.f32 %v2155_v54, %v2154_v16 }
 0x3a4   : > { %v2157_v35 = vrot.slane %v2156_v9, 2 }
 0x3a6   : > { %v2158_v2 = vadd.f32 %v2157_v35, %v2156_v9 }
 0x3a8   : > { %v2159_v5 = vrot.slane %v2158_v2, 1 }
 0x3aa   : > { %v2160_v59 = vadd.f32 %v2159_v5, %v2158_v2 }
 0x3ac   : > { %2836 = vpush %v2160_v59 }
 0x3dd   : > { %s2837_s14 = spop %2836 }
 0x3de   : > { %v2164_v40 = vstv %s2837_s14 }
 0x3df   : > { %v2165_v0 = vsel %vm2163_vm1, %v2164_v40, 0.0 }
 0x3e0   : > { %v2166_v41 = vadd.f32 %v2165_v0, %v2162_v48 }
 0x3e2   : > { %2167 = vst [vmem:[#allocation18] sm:$0xff] %v2166_v41 }
 0x3e3 PF: > { %s2796_s9 = sadd.s32 4294967293, %s3367_s13  ;;  %p2169_p11 = scmp.ge.s32.totalorder %s3367_s13, 3 }
 0x3e4   : > { %p2170_p12 = scmp.lt.s32.totalorder %s3367_s13, 4 }
 0x3e6   : > { %p2171_p1 = pnand %p2170_p12, %p2169_p11 }
 0x3e7   : > { %p5451_p9 = scmp.ne.s32.totalorder (!%p2171_p1), %s2796_s9, 0 }
 0x3e8   : > { %2174 = sbr.rel (%p2171_p1) target bundleno = 1231 (0x4cf), region = 128 }
 0x3ed   : > { %2178 = sbr.rel (%p5451_p9) target bundleno = 1019 (0x3fb), region = 132 }
 0x3f2   : > { %v3294_v46 = vmov 0.0  }
 0x3f3   : > { %2179 = vst [vmem:[#allocation2 + $0x30] sm:$0xff] %v3294_v46 }
 0x3f4   : > { %2180 = vst [vmem:[#allocation2] sm:$0xff] %v3294_v46 }
 0x3f5   : > { %2181 = vst [vmem:[#allocation2 + $0x18] sm:$0xff] %v3294_v46 }
 0x3f6   : > { %2182 = vst [vmem:[#allocation2 + $0x10] sm:$0xff] %v3294_v46 }
 0x3f7   : > { %2183 = vst [vmem:[#allocation2 + $0x8] sm:$0xff] %v3294_v46 }
 0x3f8   : > { %2184 = vst [vmem:[#allocation2 + $0x20] sm:$0xff] %v3294_v46 }
 0x3f9   : > { %2185 = vst [vmem:[#allocation2 + $0x28] sm:$0xff] %v3294_v46 }
 0x3fa   : > { %2186 = vst [vmem:[#allocation2 + $0x38] sm:$0xff] %v3294_v46 }
 0x3fb PF: > { %v2187_v8 = vld [vmem:[#allocation9] sm:$0xff]  ;;  %v2188_v57 = vld [vmem:[#allocation11] sm:$0xff] }
 0x3fc   : > { %v2189_v7 = vsub.f32 %v2187_v8, %v2188_v57  ;;  %v2191_v58 = vld [vmem:[#allocation2 + $0x30] sm:$0xff] }
 0x3fe   : > { %v2190_v55 = vand.u32 2147483647, %v2189_v7  ;;  %2196 = sbr.rel (%p5451_p9) target bundleno = 1231 (0x4cf), region = 136 }
 0x400   : > { %v2192_v38 = vadd.f32 %v2191_v58, %v2190_v55 }
 0x402   : > { %2193 = vst [vmem:[#allocation2 + $0x30] sm:$0xff] %v2192_v38 }
 0x403   : > { %v2198_v15 = vld [vmem:[#allocation2] sm:$0xff]  ;;  %v2199_v26 = vld [vmem:[#allocation2 + $0x18] sm:$0xff]  ;;  %v2200_v6 = vld [vmem:[#allocation2 + $0x10] sm:$0xff]  ;;  %v2221_v49 = vlaneseq }
 0x404   : > { %v2201_v34 = vld [vmem:[#allocation2 + $0x8] sm:$0xff]  ;;  %v2202_v44 = vld [vmem:[#allocation2 + $0x20] sm:$0xff]  ;;  %v2204_v45 = vld [vmem:[#allocation2 + $0x38] sm:$0xff] }
 0x405   : > { %v2203_v47 = vld [vmem:[#allocation2 + $0x28] sm:$0xff]  ;;  %v2222_v42 = vshrl.u32 %v2221_v49, 7  ;;  %v2223_v25 = vld [vmem:[#allocation18] sm:$0xff] }
 0x407   : > { %vm2224_vm2 = vcmp.eq.s32.totalorder %v2222_v42, 2 }
 0x409   : > { %v2197_v21 = vld [vmem:[#allocation2 + $0x30] sm:$0xff] }
 0x40a   : > { %v2205_v63 = vadd.f32 %v2198_v15, %v2197_v21 }
 0x40c   : > { %v2206_v61 = vadd.f32 %v2205_v63, %v2199_v26 }
 0x40e   : > { %v2207_v4 = vadd.f32 %v2206_v61, %v2200_v6 }
 0x410   : > { %v2208_v14 = vadd.f32 %v2207_v4, %v2201_v34 }
 0x412   : > { %v2209_v10 = vadd.f32 %v2208_v14, %v2202_v44 }
 0x414   : > { %v2210_v50 = vadd.f32 %v2209_v10, %v2203_v47 }
 0x416   : > { %v2211_v23 = vadd.f32 %v2210_v50, %v2204_v45 }
 0x418   : > { %2212 = vadd.xlane.f32.xlu0 %v2211_v23 }
 0x48b   : > { %v2213_v27 = vpop.xlane.xlu0 %2212 }
 0x48c   : > { %v2214_v19 = vrot.slane %v2213_v27, 4 }
 0x48e   : > { %v2215_v52 = vadd.f32 %v2214_v19, %v2213_v27 }
 0x490   : > { %v2216_v24 = vrot.slane %v2215_v52, 2 }
 0x492   : > { %v2217_v30 = vadd.f32 %v2216_v24, %v2215_v52 }
 0x494   : > { %v2218_v60 = vrot.slane %v2217_v30, 1 }
 0x496   : > { %v2219_v53 = vadd.f32 %v2218_v60, %v2217_v30 }
 0x498   : > { %2838 = vpush %v2219_v53 }
 0x4c9   : > { %s2839_s16 = spop %2838 }
 0x4ca   : > { %v2225_v12 = vstv %s2839_s16 }
 0x4cb   : > { %v2226_v13 = vsel %vm2224_vm2, %v2225_v12, 0.0 }
 0x4cc   : > { %v2227_v62 = vadd.f32 %v2226_v13, %v2223_v25 }
 0x4ce   : > { %2228 = vst [vmem:[#allocation18] sm:$0xff] %v2227_v62 }
 0x4cf PF: > { %s2799_s15 = sadd.s32 4294967292, %s3367_s13  ;;  %p2230_p4 = scmp.ge.s32.totalorder %s3367_s13, 4 }
 0x4d0   : > { %p2231_p2 = scmp.lt.s32.totalorder %s3367_s13, 5 }
 0x4d2   : > { %p2232_p8 = pnand %p2231_p2, %p2230_p4 }
 0x4d3   : > { %p5462_p3 = scmp.ne.s32.totalorder (!%p2232_p8), %s2799_s15, 0 }
 0x4d4   : > { %2235 = sbr.rel (%p2232_p8) target bundleno = 1470 (0x5be), region = 140 }
 0x4d9   : > { %2239 = sbr.rel (%p5462_p3) target bundleno = 1255 (0x4e7), region = 144 }
 0x4de   : > { %v3295_v51 = vmov 0.0  }
 0x4df   : > { %2240 = vst [vmem:[#allocation2 + $0x30] sm:$0xff] %v3295_v51 }
 0x4e0   : > { %2241 = vst [vmem:[#allocation2] sm:$0xff] %v3295_v51 }
 0x4e1   : > { %2242 = vst [vmem:[#allocation2 + $0x18] sm:$0xff] %v3295_v51 }
 0x4e2   : > { %2243 = vst [vmem:[#allocation2 + $0x10] sm:$0xff] %v3295_v51 }
 0x4e3   : > { %2244 = vst [vmem:[#allocation2 + $0x8] sm:$0xff] %v3295_v51 }
 0x4e4   : > { %2245 = vst [vmem:[#allocation2 + $0x20] sm:$0xff] %v3295_v51 }
 0x4e5   : > { %2246 = vst [vmem:[#allocation2 + $0x28] sm:$0xff] %v3295_v51 }
 0x4e6   : > { %2247 = vst [vmem:[#allocation2 + $0x38] sm:$0xff] %v3295_v51 }
 0x4e7 PF: > { %v2824_v56 = vld [vmem:[#allocation12] sm:$0xff]   ;;  %v2828_v28 = vld [vmem:[#allocation14] sm:$0xff]  }
 0x4e8   : > { %v2825_v20 = vunpack.c.l.bf16 %v2824_v56  ;;  %v2829_v3 = vunpack.c.l.bf16 %v2828_v28  ;;  %v2826_v36 = vunpack.c.h.bf16 %v2824_v56  ;;  %v2830_v29 = vunpack.c.h.bf16 %v2828_v28  ;;  %v2260_v1 = vld [vmem:[#allocation2 + $0x30] sm:$0xff]  ;;  %v2261_v18 = vld [vmem:[#allocation2] sm:$0xff] }
 0x4ea   : > { %v2256_v11 = vsub.f32 %v2825_v20, %v2829_v3  ;;  %v2257_v33 = vsub.f32 %v2826_v36, %v2830_v29 }
 0x4ec   : > { %v2258_v32 = vand.u32 2147483647, %v2256_v11  ;;  %v2259_v43 = vand.u32 2147483647, %v2257_v33 }
 0x4ed   : > { %2268 = sbr.rel (%p5462_p3) target bundleno = 1470 (0x5be), region = 148 }
 0x4ee   : > { %v2262_v31 = vadd.f32 %v2260_v1, %v2258_v32  ;;  %v2263_v22 = vadd.f32 %v2261_v18, %v2259_v43 }
 0x4f0   : > { %2264 = vst [vmem:[#allocation2 + $0x30] sm:$0xff] %v2262_v31 }
 0x4f1   : > { %2265 = vst [vmem:[#allocation2] sm:$0xff] %v2263_v22 }
 0x4f2   : > { %v2271_v54 = vld [vmem:[#allocation2 + $0x18] sm:$0xff]  ;;  %v2272_v35 = vld [vmem:[#allocation2 + $0x10] sm:$0xff]  ;;  %v2273_v5 = vld [vmem:[#allocation2 + $0x8] sm:$0xff]  ;;  %v2293_v15 = vlaneseq }
 0x4f3   : > { %v2274_v17 = vld [vmem:[#allocation2 + $0x20] sm:$0xff]  ;;  %v2275_v48 = vld [vmem:[#allocation2 + $0x28] sm:$0xff]  ;;  %v2276_v0 = vld [vmem:[#allocation2 + $0x38] sm:$0xff] }
 0x4f4   : > { %v2294_v26 = vshrl.u32 %v2293_v15, 7  ;;  %v2295_v63 = vld [vmem:[#allocation18] sm:$0xff] }
 0x4f6   : > { %vm2296_vm3 = vcmp.eq.s32.totalorder %v2294_v26, 3 }
 0x4f7   : > { %v2269_v37 = vld [vmem:[#allocation2 + $0x30] sm:$0xff] }
 0x4f8   : > { %v2270_v16 = vld [vmem:[#allocation2] sm:$0xff] }
 0x4f9   : > { %v2277_v9 = vadd.f32 %v2270_v16, %v2269_v37 }
 0x4fb   : > { %v2278_v2 = vadd.f32 %v2277_v9, %v2271_v54 }
 0x4fd   : > { %v2279_v59 = vadd.f32 %v2278_v2, %v2272_v35 }
 0x4ff   : > { %v2280_v39 = vadd.f32 %v2279_v59, %v2273_v5 }
 0x501   : > { %v2281_v40 = vadd.f32 %v2280_v39, %v2274_v17 }
 0x503   : > { %v2282_v41 = vadd.f32 %v2281_v40, %v2275_v48 }
 0x505   : > { %v2283_v46 = vadd.f32 %v2282_v41, %v2276_v0 }
 0x507   : > { %2284 = vadd.xlane.f32.xlu0 %v2283_v46 }
 0x57a   : > { %v2285_v8 = vpop.xlane.xlu0 %2284 }
 0x57b   : > { %v2286_v57 = vrot.slane %v2285_v8, 4 }
 0x57d   : > { %v2287_v7 = vadd.f32 %v2286_v57, %v2285_v8 }
 0x57f   : > { %v2288_v58 = vrot.slane %v2287_v7, 2 }
 0x581   : > { %v2289_v55 = vadd.f32 %v2288_v58, %v2287_v7 }
 0x583   : > { %v2290_v38 = vrot.slane %v2289_v55, 1 }
 0x585   : > { %v2291_v21 = vadd.f32 %v2290_v38, %v2289_v55 }
 0x587   : > { %2840 = vpush %v2291_v21 }
 0x5b8   : > { %s2841_s0 = spop %2840 }
 0x5b9   : > { %v2297_v6 = vstv %s2841_s0 }
 0x5ba   : > { %v2298_v61 = vsel %vm2296_vm3, %v2297_v6, 0.0 }
 0x5bb   : > { %v2299_v34 = vadd.f32 %v2298_v61, %v2295_v63 }
 0x5bd   : > { %2300 = vst [vmem:[#allocation18] sm:$0xff] %v2299_v34 }
 0x5be PF: > { %s2802_s26 = sadd.s32 4294967291, %s3367_s13  ;;  %p2302_p13 = scmp.ge.s32.totalorder %s3367_s13, 5 }
 0x5bf   : > { %p2303_p5 = scmp.lt.s32.totalorder %s3367_s13, 6 }
 0x5c1   : > { %p2304_p6 = pnand %p2303_p5, %p2302_p13 }
 0x5c2   : > { %p5473_p7 = scmp.ne.s32.totalorder (!%p2304_p6), %s2802_s26, 0 }
 0x5c3   : > { %2307 = sbr.rel (%p2304_p6) target bundleno = 1706 (0x6aa), region = 152 }
 0x5c8   : > { %2311 = sbr.rel (%p5473_p7) target bundleno = 1494 (0x5d6), region = 156 }
 0x5cd   : > { %v3296_v4 = vmov 0.0  }
 0x5ce   : > { %2312 = vst [vmem:[#allocation2 + $0x30] sm:$0xff] %v3296_v4 }
 0x5cf   : > { %2313 = vst [vmem:[#allocation2] sm:$0xff] %v3296_v4 }
 0x5d0   : > { %2314 = vst [vmem:[#allocation2 + $0x18] sm:$0xff] %v3296_v4 }
 0x5d1   : > { %2315 = vst [vmem:[#allocation2 + $0x10] sm:$0xff] %v3296_v4 }
 0x5d2   : > { %2316 = vst [vmem:[#allocation2 + $0x8] sm:$0xff] %v3296_v4 }
 0x5d3   : > { %2317 = vst [vmem:[#allocation2 + $0x20] sm:$0xff] %v3296_v4 }
 0x5d4   : > { %2318 = vst [vmem:[#allocation2 + $0x28] sm:$0xff] %v3296_v4 }
 0x5d5   : > { %2319 = vst [vmem:[#allocation2 + $0x38] sm:$0xff] %v3296_v4 }
 0x5d6 PF: > { %v2320_v44 = vld [vmem:[#allocation15] sm:$0xff]  ;;  %v2321_v14 = vld [vmem:[#allocation17] sm:$0xff] }
 0x5d7   : > { %v2322_v47 = vsub.f32 %v2320_v44, %v2321_v14  ;;  %v2324_v10 = vld [vmem:[#allocation2 + $0x30] sm:$0xff] }
 0x5d9   : > { %v2323_v45 = vand.u32 2147483647, %v2322_v47  ;;  %2329 = sbr.rel (%p5473_p7) target bundleno = 1706 (0x6aa), region = 160 }
 0x5db   : > { %v2325_v50 = vadd.f32 %v2324_v10, %v2323_v45 }
 0x5dd   : > { %2326 = vst [vmem:[#allocation2 + $0x30] sm:$0xff] %v2325_v50 }
 0x5de   : > { %v2331_v27 = vld [vmem:[#allocation2] sm:$0xff]  ;;  %v2332_v19 = vld [vmem:[#allocation2 + $0x18] sm:$0xff]  ;;  %v2333_v24 = vld [vmem:[#allocation2 + $0x10] sm:$0xff]  ;;  %v2354_v33 = vlaneseq }
 0x5df   : > { %v2334_v60 = vld [vmem:[#allocation2 + $0x8] sm:$0xff]  ;;  %v2335_v49 = vld [vmem:[#allocation2 + $0x20] sm:$0xff]  ;;  %v2337_v13 = vld [vmem:[#allocation2 + $0x38] sm:$0xff] }
 0x5e0   : > { %v2336_v25 = vld [vmem:[#allocation2 + $0x28] sm:$0xff]  ;;  %v2355_v1 = vshrl.u32 %v2354_v33, 7  ;;  %v2356_v18 = vld [vmem:[#allocation18] sm:$0xff] }
 0x5e2   : > { %vm2357_vm4 = vcmp.eq.s32.totalorder %v2355_v1, 4 }
 0x5e4   : > { %v2330_v23 = vld [vmem:[#allocation2 + $0x30] sm:$0xff] }
 0x5e5   : > { %v2338_v52 = vadd.f32 %v2331_v27, %v2330_v23 }
 0x5e7   : > { %v2339_v30 = vadd.f32 %v2338_v52, %v2332_v19 }
 0x5e9   : > { %v2340_v53 = vadd.f32 %v2339_v30, %v2333_v24 }
 0x5eb   : > { %v2341_v42 = vadd.f32 %v2340_v53, %v2334_v60 }
 0x5ed   : > { %v2342_v12 = vadd.f32 %v2341_v42, %v2335_v49 }
 0x5ef   : > { %v2343_v62 = vadd.f32 %v2342_v12, %v2336_v25 }
 0x5f1   : > { %v2344_v51 = vadd.f32 %v2343_v62, %v2337_v13 }
 0x5f3   : > { %2345 = vadd.xlane.f32.xlu0 %v2344_v51 }
 0x666   : > { %v2346_v56 = vpop.xlane.xlu0 %2345 }
 0x667   : > { %v2347_v28 = vrot.slane %v2346_v56, 4 }
 0x669   : > { %v2348_v20 = vadd.f32 %v2347_v28, %v2346_v56 }
 0x66b   : > { %v2349_v3 = vrot.slane %v2348_v20, 2 }
 0x66d   : > { %v2350_v36 = vadd.f32 %v2349_v3, %v2348_v20 }
 0x66f   : > { %v2351_v29 = vrot.slane %v2350_v36, 1 }
 0x671   : > { %v2352_v11 = vadd.f32 %v2351_v29, %v2350_v36 }
 0x673   : > { %2842 = vpush %v2352_v11 }
 0x6a4   : > { %s2843_s23 = spop %2842 }
 0x6a5   : > { %v2358_v32 = vstv %s2843_s23 }
 0x6a6   : > { %v2359_v43 = vsel %vm2357_vm4, %v2358_v32, 0.0 }
 0x6a7   : > { %v2360_v31 = vadd.f32 %v2359_v43, %v2356_v18 }
 0x6a9   : > { %2361 = vst [vmem:[#allocation18] sm:$0xff] %v2360_v31 }
 0x6aa PF: > { %p2864_p0 = scmp.eq.s32.totalorder %s3367_s13, 5  ;;  %s6411_s22 = sld [smem:[#allocation177_spill]] }
 0x6ab   : > { %s3297_s12 = smov [#allocation18]  }
 0x6ac   : > { %s2368_s17 = sshll.u32 %s3297_s12, 4  ;;  %s2369_s17 = int_to_ptr.vmem [resolvable:$true] %s2368_s17 }
 0x6b0   : > { %s2370_s27 = sshll.u32 %s6411_s22, 4  ;;  %s2371_s27 = int_to_ptr.hbm [resolvable:$true] %s2370_s27 }
 0x6b1   : > { %2861 = dma.vmem_to_hbm [thread:$0]  (%p2864_p0), %s2369_s17, 128, %s2371_s27, [#allocation5]  }
 0x6b2   : > { %3257 = dma.done.wait (%p2864_p0), [#allocation5], 128  }
 0x6b3   : > { %3259 = vsyncadd (%p2864_p0), [#allocation5], 4294967168 }
 0x6b4 PF: > { %s6412_s12 = sld [smem:[#allocation25_spill]]  ;;  %s6414_s30 = smov %s3266_s10 }
 0x6b5   : > { %s6413_s28 = sld [smem:[#allocation26_spill]]  ;;  %s6415_s10 = smov %s3270_s11 }
 0x6ba   : > { %p32_p10 = scmp.ge.s32.totalorder %s6412_s12, 8  }
 0x6bb   : > { %s6416_s11 = smov %s6413_s28 }
 0x6bc   :  { %34 = sbr.rel (!%p32_p10) target bundleno = 15 (0xf), region = 257 }
 0x6c1   :  { %2384 = vsyncpa [#allocation4], 1 }
 0x6c2   :  { %2386 = vsyncpa [#allocation4 + $0x1], 1 }
 0x6c3   :  { %2387 = vsyncpa [#allocation7], 1 }
 0x6c4   :  { %2389 = vsyncpa [#allocation7 + $0x1], 1 }
 0x6c5   :  { %2390 = vsyncpa [#allocation10], 1 }
 0x6c6   :  { %2392 = vsyncpa [#allocation10 + $0x1], 1 }
 0x6c7   :  { %2393 = vsyncpa [#allocation13], 1 }
 0x6c8   :  { %2395 = vsyncpa [#allocation13 + $0x1], 1 }
 0x6c9   :  { %2396 = vsyncpa [#allocation16], 1 }
 0x6ca   :  { %2398 = vsyncpa [#allocation16 + $0x1], 1 }
 0x6cb   :  { %2399 = vsyncpa [#allocation5], 1 }
 0x6cc   :  { %2401 = vsyncpa [#allocation5 + $0x1], 1 }

</bundles_post_ra>
